<compile_context>
chip_gen: v7x
topology: tpu7x:2x2x1
jax: 0.10.0
libtpu: 0.0.40
codegen_flags: <defaults>
</compile_context>

<pallas_src>
import functools

import jax
import jax.numpy as jnp
import numpy as np
from jax.experimental import pallas as pl
from jax.experimental.pallas import tpu as pltpu

COMPUTE_DTYPE = jnp.bfloat16   # bf16 storage / MXU inputs, f32 accumulation


# ----------------------------------------------------------------------------
# small helpers
# ----------------------------------------------------------------------------
def _ru(n, m):
    return ((n + m - 1) // m) * m


def _pad_to(a, axis, target):
    pad = target - a.shape[axis]
    if pad == 0:
        return a
    widths = [(0, 0)] * a.ndim
    widths[axis] = (0, pad)
    return jnp.pad(a, widths)


def _apply_act(y, act):
    if act == "relu":
        return jnp.maximum(y, 0.0)
    if act == "tanh":
        return jnp.tanh(y)
    if act == "sigmoid":
        return jax.nn.sigmoid(y)
    return y


# ----------------------------------------------------------------------------
# Pallas kernels
# ----------------------------------------------------------------------------
def _dense_kernel(x_ref, w_ref, b_ref, s_ref, t_ref, o_ref, acc_ref,
                  *, act, post_act):
    # y = post_act( act(x @ W + b) * bn_scale + bn_shift ), K-tiled accumulation
    @pl.when(pl.program_id(2) == 0)
    def _():
        acc_ref[...] = jnp.zeros_like(acc_ref)

    acc_ref[...] += jnp.dot(x_ref[...], w_ref[...],
                            preferred_element_type=jnp.float32)

    @pl.when(pl.program_id(2) == pl.num_programs(2) - 1)
    def _():
        y = acc_ref[...] + b_ref[...]
        y = _apply_act(y, act)
        y = y * s_ref[...] + t_ref[...]
        o_ref[...] = _apply_act(y, post_act).astype(o_ref.dtype)


def dense(x2d, W, b, scale, shift, act="none", post_act="none", out_dtype=None):
    """x2d: (N, Cin), W: (Cin, Cout) -> (N, Cout). Tiled MXU matmul with fused
    bias / activation / eval-mode BatchNorm affine."""
    N, Cin = x2d.shape
    Cout = W.shape[-1]
    if out_dtype is None:
        out_dtype = x2d.dtype
    x2d = x2d.astype(W.dtype)

    TN = 128
    Np = _ru(N, TN)
    Kp = _ru(Cin, 128)
    TK = Kp if Kp <= 512 else 512
    Kp = _ru(Kp, TK)
    Cp = _ru(Cout, 128)
    TC = Cp if Cp <= 256 else 256
    Cp = _ru(Cp, TC)

    xp = _pad_to(_pad_to(x2d, 0, Np), 1, Kp)
    Wp = _pad_to(_pad_to(W, 0, Kp), 1, Cp)
    bp = _pad_to(b.reshape(1, Cout).astype(jnp.float32), 1, Cp)
    sp = _pad_to(scale.reshape(1, Cout).astype(jnp.float32), 1, Cp)
    tp = _pad_to(shift.reshape(1, Cout).astype(jnp.float32), 1, Cp)

    kern = functools.partial(_dense_kernel, act=act, post_act=post_act)
    y = pl.pallas_call(
        kern,
        out_shape=jax.ShapeDtypeStruct((Np, Cp), out_dtype),
        grid=(Np // TN, Cp // TC, Kp // TK),
        in_specs=[
            pl.BlockSpec((TN, TK), lambda i, j, k: (i, k)),
            pl.BlockSpec((TK, TC), lambda i, j, k: (k, j)),
            pl.BlockSpec((1, TC), lambda i, j, k: (0, j)),
            pl.BlockSpec((1, TC), lambda i, j, k: (0, j)),
            pl.BlockSpec((1, TC), lambda i, j, k: (0, j)),
        ],
        out_specs=pl.BlockSpec((TN, TC), lambda i, j, k: (i, j)),
        scratch_shapes=[pltpu.VMEM((TN, TC), jnp.float32)],
        compiler_params=pltpu.CompilerParams(
            dimension_semantics=("parallel", "parallel", "arbitrary")),
    )(xp, Wp, bp, sp, tp)
    return y[:N, :Cout]


def _conv_kernel(xp_ref, w_ref, b_ref, g_ref, s_ref, t_ref, o_ref,
                 *, kernel, dilation, T, act, post_act):
    # Dilated "same" conv as K accumulated matmuls over time-shifted slices of
    # the reflect-padded input block (no HBM unfold). g_ref: per-batch extra
    # pre-activation bias (used for the ASP global-context term).
    x = xp_ref[0]                                      # (Tp, Cin)
    acc = jnp.dot(x[0:T, :], w_ref[0], preferred_element_type=jnp.float32)
    for k in range(1, kernel):
        off = k * dilation
        acc = acc + jnp.dot(x[off:off + T, :], w_ref[k],
                            preferred_element_type=jnp.float32)
    y = acc + b_ref[...] + g_ref[0]
    y = _apply_act(y, act)
    y = y * s_ref[...] + t_ref[...]
    o_ref[0] = _apply_act(y, post_act).astype(o_ref.dtype)


def conv1d_same(x, p, kernel, dilation, act, post_act="none",
                extra_bias=None, out_dtype=None):
    """SpeechBrain Conv1d(padding='same', padding_mode='reflect') fused with
    activation + eval-mode BN. 1x1 convs without a per-batch bias go through
    the fully tiled dense() path; K>1 (and per-batch-bias) convs use the
    tap-accumulating kernel."""
    B, T, Cin = x.shape
    W, b, scale, shift = p["W"], p["b"], p["scale"], p["shift"]
    Cout = W.shape[-1]
    if out_dtype is None:
        out_dtype = x.dtype

    if kernel == 1 and extra_bias is None:
        y = dense(x.reshape(B * T, Cin), W.reshape(Cin, Cout), b, scale, shift,
                  act=act, post_act=post_act, out_dtype=out_dtype)
        return y.reshape(B, T, Cout)

    pad = dilation * (kernel - 1) // 2
    xp = jnp.pad(x, ((0, 0), (pad, pad), (0, 0)), mode="reflect") if pad else x
    Tp = xp.shape[1]

    Cp = _ru(Cout, 128)
    TC = 128
    Wp = _pad_to(W, 2, Cp)                                  # (kernel, Cin, Cp)
    bp = _pad_to(b.reshape(1, Cout).astype(jnp.float32), 1, Cp)
    sp = _pad_to(scale.reshape(1, Cout).astype(jnp.float32), 1, Cp)
    tp = _pad_to(shift.reshape(1, Cout).astype(jnp.float32), 1, Cp)
    g = extra_bias if extra_bias is not None else jnp.zeros((B, Cout),
                                                            jnp.float32)
    gp = _pad_to(g.astype(jnp.float32).reshape(B, 1, Cout), 2, Cp)

    kern = functools.partial(_conv_kernel, kernel=kernel, dilation=dilation,
                             T=T, act=act, post_act=post_act)
    y = pl.pallas_call(
        kern,
        out_shape=jax.ShapeDtypeStruct((B, T, Cp), out_dtype),
        grid=(B, Cp // TC),
        in_specs=[
            pl.BlockSpec((1, Tp, Cin), lambda bi, j: (bi, 0, 0)),
            pl.BlockSpec((kernel, Cin, TC), lambda bi, j: (0, 0, j)),
            pl.BlockSpec((1, TC), lambda bi, j: (0, j)),
            pl.BlockSpec((1, 1, TC), lambda bi, j: (bi, 0, j)),
            pl.BlockSpec((1, TC), lambda bi, j: (0, j)),
            pl.BlockSpec((1, TC), lambda bi, j: (0, j)),
        ],
        out_specs=pl.BlockSpec((1, T, TC), lambda bi, j: (bi, 0, j)),
        compiler_params=pltpu.CompilerParams(
            dimension_semantics=("parallel", "parallel")),
    )(xp.astype(W.dtype), Wp, bp, gp, sp, tp)
    return y[..., :Cout]


def _normalize_kernel(x_ref, o_ref, *, inv_t):
    x = x_ref[0].astype(jnp.float32)                    # (T, F)
    mean = jnp.sum(x, axis=0, keepdims=True) * inv_t
    o_ref[0] = (x - mean).astype(o_ref.dtype)


def normalize_time(x, out_dtype):
    """normalize_tensor: subtract per-(batch, feature) mean over time."""
    B, T, F = x.shape
    kern = functools.partial(_normalize_kernel, inv_t=1.0 / T)
    return pl.pallas_call(
        kern,
        out_shape=jax.ShapeDtypeStruct((B, T, F), out_dtype),
        grid=(B,),
        in_specs=[pl.BlockSpec((1, T, F), lambda b: (b, 0, 0))],
        out_specs=pl.BlockSpec((1, T, F), lambda b: (b, 0, 0)),
        compiler_params=pltpu.CompilerParams(dimension_semantics=("parallel",)),
    )(x)


def _mean_std_kernel(x_ref, mean_ref, std_ref, *, eps, inv_t):
    # uniform-weight statistics (mask is all-ones): no (B,T,C) weight tensor.
    x = x_ref[0].astype(jnp.float32)                    # (T, C)
    mean = jnp.sum(x, axis=0, keepdims=True) * inv_t
    var = jnp.sum((x - mean) ** 2, axis=0, keepdims=True) * inv_t
    mean_ref[0] = mean
    std_ref[0] = jnp.sqrt(jnp.maximum(var, eps))


def mean_std_time(x, eps=1e-12):
    B, T, C = x.shape
    kern = functools.partial(_mean_std_kernel, eps=eps, inv_t=1.0 / T)
    return pl.pallas_call(
        kern,
        out_shape=(jax.ShapeDtypeStruct((B, 1, C), jnp.float32),
                   jax.ShapeDtypeStruct((B, 1, C), jnp.float32)),
        grid=(B,),
        in_specs=[pl.BlockSpec((1, T, C), lambda b: (b, 0, 0))],
        out_specs=(pl.BlockSpec((1, 1, C), lambda b: (b, 0, 0)),
                   pl.BlockSpec((1, 1, C), lambda b: (b, 0, 0))),
        compiler_params=pltpu.CompilerParams(dimension_semantics=("parallel",)),
    )(x)


def _softmax_wstats_kernel(a_ref, x_ref, mean_ref, std_ref, *, eps):
    # fused: softmax over T of attention logits + attention-weighted mean/std
    a = a_ref[0].astype(jnp.float32)                    # (T, C) logits
    x = x_ref[0].astype(jnp.float32)                    # (T, C)
    m = jnp.max(a, axis=0, keepdims=True)
    e = jnp.exp(a - m)
    w = e * pl.reciprocal(jnp.sum(e, axis=0, keepdims=True), approx=True)
    mean = jnp.sum(w * x, axis=0, keepdims=True)
    var = jnp.sum(w * (x - mean) ** 2, axis=0, keepdims=True)
    mean_ref[0] = mean
    std_ref[0] = jnp.sqrt(jnp.maximum(var, eps))


def softmax_wstats(a, x, eps=1e-12):
    B, T, C = x.shape
    kern = functools.partial(_softmax_wstats_kernel, eps=eps)
    return pl.pallas_call(
        kern,
        out_shape=(jax.ShapeDtypeStruct((B, 1, C), jnp.float32),
                   jax.ShapeDtypeStruct((B, 1, C), jnp.float32)),
        grid=(B,),
        in_specs=[pl.BlockSpec((1, T, C), lambda b: (b, 0, 0)),
                  pl.BlockSpec((1, T, C), lambda b: (b, 0, 0))],
        out_specs=(pl.BlockSpec((1, 1, C), lambda b: (b, 0, 0)),
                   pl.BlockSpec((1, 1, C), lambda b: (b, 0, 0))),
        compiler_params=pltpu.CompilerParams(dimension_semantics=("parallel",)),
    )(a, x)


def _se_residual_kernel(x_ref, s_ref, r_ref, o_ref):
    y = x_ref[0].astype(jnp.float32) * s_ref[0] + r_ref[0].astype(jnp.float32)
    o_ref[0] = y.astype(o_ref.dtype)


def se_apply_residual(x, s, residual):
    B, T, C = x.shape
    TT = 16 if (T % 16 == 0 and T > 16) else T           # T-tiled elementwise
    return pl.pallas_call(
        _se_residual_kernel,
        out_shape=jax.ShapeDtypeStruct((B, T, C), x.dtype),
        grid=(B, T // TT),
        in_specs=[
            pl.BlockSpec((1, TT, C), lambda b, t: (b, t, 0)),
            pl.BlockSpec((1, 1, C), lambda b, t: (b, 0, 0)),
            pl.BlockSpec((1, TT, C), lambda b, t: (b, t, 0)),
        ],
        out_specs=pl.BlockSpec((1, TT, C), lambda b, t: (b, t, 0)),
        compiler_params=pltpu.CompilerParams(
            dimension_semantics=("parallel", "parallel")),
    )(x, s, residual)


# ----------------------------------------------------------------------------
# ECAPA-TDNN building blocks (JAX glue around the Pallas kernels)
# ----------------------------------------------------------------------------
def tdnn_block(x, p, kernel, dilation, post_act="none"):
    # Conv1d -> ReLU -> BatchNorm1d (eval-mode affine), fully fused in-kernel.
    return conv1d_same(x, p, kernel, dilation, act="relu", post_act=post_act)


def res2net_block(x, plist, scale, kernel, dilation):
    B, T, C = x.shape
    chunk = C // scale
    chunks = [x[..., i * chunk:(i + 1) * chunk] for i in range(scale)]
    ys = [chunks[0]]
    for i in range(1, scale):
        inp = chunks[i] if i == 1 else chunks[i] + ys[-1]
        ys.append(tdnn_block(inp, plist[i - 1], kernel, dilation))
    return jnp.concatenate(ys, axis=-1)


def se_block(x, p1, p2):
    # lens == ones -> mask all-ones -> plain mean over time (uniform kernel)
    B, T, C = x.shape
    s_mean, _ = mean_std_time(x)
    se_c = p1["W"].shape[-1]
    s = dense(s_mean.reshape(B, C), p1["W"].reshape(C, se_c),
              p1["b"], p1["scale"], p1["shift"], act="relu",
              out_dtype=jnp.float32)
    s = dense(s, p2["W"].reshape(se_c, C),
              p2["b"], p2["scale"], p2["shift"], act="sigmoid",
              out_dtype=jnp.float32)
    return s.reshape(B, 1, C)


def se_res2net_block(x, p, scale, kernel, dilation):
    residual = x
    y = tdnn_block(x, p["tdnn1"], 1, 1)
    y = res2net_block(y, p["res2"], scale, kernel, dilation)
    y = tdnn_block(y, p["tdnn2"], 1, 1)
    s = se_block(y, p["se1"], p["se2"])
    return se_apply_residual(y, s, residual)


def attentive_stats_pooling(x, p_tdnn, p_conv, eps=1e-12):
    B, T, C = x.shape
    # global-context stats (mask all-ones -> uniform weights), f32
    mean_g, std_g = mean_std_time(x, eps)
    att = p_tdnn["W"].shape[-1]
    W_full = p_tdnn["W"].reshape(3 * C, att)
    Wx = W_full[:C]                       # rows acting on x
    Wms = W_full[C:]                      # rows acting on [mean; std]
    # per-batch pre-activation bias replaces broadcast+concat of (B,T,3C)
    g_in = jnp.concatenate([mean_g, std_g], axis=-1).reshape(B, 2 * C)
    gbias = dense(g_in, Wms,
                  jnp.zeros((att,), jnp.float32),
                  jnp.ones((att,), jnp.float32),
                  jnp.zeros((att,), jnp.float32),
                  act="none", out_dtype=jnp.float32)          # (B, att)
    p_x = {"W": Wx.reshape(1, C, att), "b": p_tdnn["b"],
           "scale": p_tdnn["scale"], "shift": p_tdnn["shift"]}
    a = conv1d_same(x, p_x, 1, 1, act="relu", post_act="tanh",
                    extra_bias=gbias)                          # attn TDNN+tanh
    logits = conv1d_same(a, p_conv, 1, 1, act="none")          # attention conv
    mean, std = softmax_wstats(logits, x, eps)                 # fused softmax+stats
    return jnp.concatenate([mean, std], axis=-1)               # (B, 1, 2C) f32


def speaker_embeddings_forward(x, params, cfg):
    # lens = ones(B) -> every length mask is all-ones (handled implicitly).
    x = normalize_time(x, out_dtype=COMPUTE_DTYPE)             # normalize_tensor
    h = tdnn_block(x, params["block0"], cfg["kernels"][0], cfg["dils"][0])
    xl = []
    for i in (1, 2, 3):
        h = se_res2net_block(h, params["block%d" % i], cfg["res2net_scale"],
                             cfg["kernels"][i], cfg["dils"][i])
        xl.append(h)
    h = jnp.concatenate(xl, axis=-1)                           # MFA concat
    h = tdnn_block(h, params["mfa"], cfg["kernels"][4], cfg["dils"][4])
    pooled = attentive_stats_pooling(h, params["asp_tdnn"], params["asp_conv"])
    B = x.shape[0]
    lin = cfg["lin_neurons"]
    # asp_bn (eval-mode affine) has been folded exactly into fc_W / fc_b.
    emb = dense(pooled.reshape(B, -1), params["fc_W"], params["fc_b"],
                jnp.ones((lin,), jnp.float32), jnp.zeros((lin,), jnp.float32),
                act="none", out_dtype=jnp.float32)
    return emb.reshape(B, 1, lin)                              # torch (B,1,lin)


# ----------------------------------------------------------------------------
# Deterministic synthetic parameter initialization
# ----------------------------------------------------------------------------
def _conv_params(key, kernel, cin, cout):
    k1, k2 = jax.random.split(key)
    W = (jax.random.normal(k1, (kernel, cin, cout), jnp.float32)
         / np.sqrt(kernel * cin))
    b = 0.05 * jax.random.normal(k2, (cout,), jnp.float32)
    return {"W": W, "b": b}


def _bn_affine(key, c, eps=1e-5):
    k1, k2, k3, k4 = jax.random.split(key, 4)
    gamma = 1.0 + 0.1 * jax.random.normal(k1, (c,), jnp.float32)
    beta = 0.1 * jax.random.normal(k2, (c,), jnp.float32)
    rmean = 0.1 * jax.random.normal(k3, (c,), jnp.float32)
    rvar = 1.0 + 0.1 * jax.random.uniform(k4, (c,), jnp.float32)
    scale = gamma / jnp.sqrt(rvar + eps)
    shift = beta - rmean * scale
    return scale, shift


def _tdnn_params(key, kernel, cin, cout):
    k1, k2 = jax.random.split(key)
    p = _conv_params(k1, kernel, cin, cout)
    p["scale"], p["shift"] = _bn_affine(k2, cout)
    p["W"] = p["W"].astype(COMPUTE_DTYPE)
    return p


def _plain_conv_params(key, kernel, cin, cout):
    p = _conv_params(key, kernel, cin, cout)
    p["scale"] = jnp.ones((cout,), jnp.float32)
    p["shift"] = jnp.zeros((cout,), jnp.float32)
    p["W"] = p["W"].astype(COMPUTE_DTYPE)
    return p


def _se_res2_params(key, cin, cout, scale, kernel, se_ch):
    ks = jax.random.split(key, 5)
    chunk = cout // scale
    res2_keys = jax.random.split(ks[1], scale - 1)
    return {
        "tdnn1": _tdnn_params(ks[0], 1, cin, cout),
        "res2": [_tdnn_params(res2_keys[j], kernel, chunk, chunk)
                 for j in range(scale - 1)],
        "tdnn2": _tdnn_params(ks[2], 1, cout, cout),
        "se1": _plain_conv_params(ks[3], 1, cout, se_ch),
        "se2": _plain_conv_params(ks[4], 1, se_ch, cout),
    }


def init_params(key, cfg):
    C, K = cfg["channels"], cfg["kernels"]
    ks = jax.random.split(key, 10)
    p = {"block0": _tdnn_params(ks[0], K[0], cfg["feat"], C[0])}
    for i in (1, 2, 3):
        p["block%d" % i] = _se_res2_params(ks[i], C[i - 1], C[i],
                                           cfg["res2net_scale"], K[i],
                                           cfg["se_channels"])
    cat_c = C[1] + C[2] + C[3]
    p["mfa"] = _tdnn_params(ks[4], K[4], cat_c, C[4])
    p["asp_tdnn"] = _tdnn_params(ks[5], 1, 3 * C[4], cfg["attention_channels"])
    p["asp_conv"] = _plain_conv_params(ks[6], 1, cfg["attention_channels"], C[4])
    # asp_bn (eval) and fc (1x1 conv) are both linear -> exact analytic fold.
    bn_scale, bn_shift = _bn_affine(ks[7], 2 * C[4])
    fc = _conv_params(ks[8], 1, 2 * C[4], cfg["lin_neurons"])
    Wfc = fc["W"].reshape(2 * C[4], cfg["lin_neurons"])
    p["fc_W"] = (bn_scale[:, None] * Wfc).astype(jnp.float32)  # keep head in f32
    p["fc_b"] = (bn_shift @ Wfc + fc["b"]).astype(jnp.float32)
    return p


# ----------------------------------------------------------------------------
if __name__ == "__main__":
    # Scaled-down ECAPA-TDNN config (real model: feat=80, channels=[1024]*4+[3072],
    # att=128, scale=8, se=128, lin=192). Structure / dataflow is identical.
    cfg = dict(
        feat=16,
        channels=[32, 32, 32, 32, 96],
        kernels=[5, 3, 3, 3, 1],
        dils=[1, 2, 3, 4, 1],
        res2net_scale=4,
        se_channels=16,
        attention_channels=16,
        lin_neurons=32,
    )
    key = jax.random.PRNGKey(0)
    kx, kp = jax.random.split(key)
    B, T = 2, 32  # torch reference input was (1, 101, 80); small analogue here
    x = jax.random.uniform(kx, (B, T, cfg["feat"]), jnp.float32)
    params = init_params(kp, cfg)

    fwd = jax.jit(lambda xx, pp: speaker_embeddings_forward(xx, pp, cfg))
    out = jax.block_until_ready(fwd(x, params))
    assert out.shape == (B, 1, cfg["lin_neurons"]), out.shape
    assert bool(jnp.all(jnp.isfinite(out.astype(jnp.float32))))
    print("KERNEL_OK")
</pallas_src>

<mosaic_0001>
module attributes {stable_mosaic.version = 11 : i64} {
  func.func @_normalize_kernel(%arg0: i32, %arg1: memref<1x32x16xf32, #tpu.memory_space<vmem>>, %arg2: memref<1x32x16xbf16, #tpu.memory_space<vmem>>) attributes {dimension_semantics = [#tpu.dimension_semantics<parallel>], iteration_bounds = array<i64: 2>, scalar_prefetch = 0 : i64, scratch_operands = 0 : i64, tpu.core_type = #tpu.core_type<tc>, window_params = [{transform_indices = @transform_0, window_bounds = array<i64: 1, 32, 16>}, {transform_indices = @transform_1, window_bounds = array<i64: 1, 32, 16>}]} {
    %c0 = arith.constant 0 : index
    %c0_0 = arith.constant 0 : index
    %c0_1 = arith.constant 0 : index
    %0 = vector.load %arg1[%c0, %c0_0, %c0_1] : memref<1x32x16xf32, #tpu.memory_space<vmem>>, vector<1x32x16xf32>
    %1 = vector.shape_cast %0 : vector<1x32x16xf32> to vector<32x16xf32>
    %cst = arith.constant dense<0.000000e+00> : vector<16xf32>
    %2 = vector.multi_reduction <add>, %1, %cst [0] : vector<32x16xf32> to vector<16xf32>
    %3 = vector.shape_cast %2 : vector<16xf32> to vector<1x16xf32>
    %cst_2 = arith.constant 3.125000e-02 : f32
    %4 = vector.broadcast %cst_2 : f32 to vector<1x16xf32>
    %5 = arith.mulf %3, %4 : vector<1x16xf32>
    %6 = vector.broadcast %5 : vector<1x16xf32> to vector<32x16xf32>
    %7 = arith.subf %1, %6 : vector<32x16xf32>
    %8 = arith.truncf %7 : vector<32x16xf32> to vector<32x16xbf16>
    %c0_3 = arith.constant 0 : index
    %c0_4 = arith.constant 0 : index
    %c0_5 = arith.constant 0 : index
    %9 = vector.load %arg2[%c0_3, %c0_4, %c0_5] : memref<1x32x16xbf16, #tpu.memory_space<vmem>>, vector<1x32x16xbf16>
    %10 = vector.shape_cast %9 : vector<1x32x16xbf16> to vector<32x16xbf16>
    %11 = vector.shape_cast %8 : vector<32x16xbf16> to vector<1x32x16xbf16>
    tpu.vector_store %arg2[%c0_3, %c0_4, %c0_5], %11 {strides = array<i32>} : memref<1x32x16xbf16, #tpu.memory_space<vmem>>, vector<1x32x16xbf16>,
    return
  }
  func.func @transform_0(%arg0: i32) -> (i32, i32, i32) {
    %c0_i32 = arith.constant 0 : i32
    %c0_i32_0 = arith.constant 0 : i32
    %c0_i32_1 = arith.constant 0 : i32
    return %arg0, %c0_i32, %c0_i32_0 : i32, i32, i32
  }
  func.func @transform_1(%arg0: i32) -> (i32, i32, i32) {
    %c0_i32 = arith.constant 0 : i32
    %c0_i32_0 = arith.constant 0 : i32
    %c0_i32_1 = arith.constant 0 : i32
    return %arg0, %c0_i32, %c0_i32_0 : i32, i32, i32
  }
}

module attributes {stable_mosaic.version = 11 : i64} {
  func.func @_conv_kernel(%arg0: i32, %arg1: i32, %arg2: memref<1x36x16xbf16, #tpu.memory_space<vmem>>, %arg3: memref<5x16x128xbf16, #tpu.memory_space<vmem>>, %arg4: memref<1x128xf32, #tpu.memory_space<vmem>>, %arg5: memref<1x1x128xf32, #tpu.memory_space<vmem>>, %arg6: memref<1x128xf32, #tpu.memory_space<vmem>>, %arg7: memref<1x128xf32, #tpu.memory_space<vmem>>, %arg8: memref<1x32x128xbf16, #tpu.memory_space<vmem>>) attributes {dimension_semantics = [#tpu.dimension_semantics<parallel>, #tpu.dimension_semantics<parallel>], iteration_bounds = array<i64: 2, 1>, scalar_prefetch = 0 : i64, scratch_operands = 0 : i64, tpu.core_type = #tpu.core_type<tc>, window_params = [{transform_indices = @transform_0, window_bounds = array<i64: 1, 36, 16>}, {transform_indices = @transform_1, window_bounds = array<i64: 5, 16, 128>}, {transform_indices = @transform_2, window_bounds = array<i64: 1, 128>}, {transform_indices = @transform_3, window_bounds = array<i64: 1, 1, 128>}, {transform_indices = @transform_4, window_bounds = array<i64: 1, 128>}, {transform_indices = @transform_5, window_bounds = array<i64: 1, 128>}, {transform_indices = @transform_6, window_bounds = array<i64: 1, 32, 128>}]} {
    %c0 = arith.constant 0 : index
    %c0_0 = arith.constant 0 : index
    %c0_1 = arith.constant 0 : index
    %0 = vector.load %arg2[%c0, %c0_0, %c0_1] : memref<1x36x16xbf16, #tpu.memory_space<vmem>>, vector<1x36x16xbf16>
    %1 = vector.shape_cast %0 : vector<1x36x16xbf16> to vector<36x16xbf16>
    %2 = vector.extract_strided_slice %1 {offsets = [0, 0], sizes = [32, 16], strides = [1, 1]} : vector<36x16xbf16> to vector<32x16xbf16>
    %c0_2 = arith.constant 0 : index
    %c0_3 = arith.constant 0 : index
    %c0_4 = arith.constant 0 : index
    %3 = vector.load %arg3[%c0_2, %c0_3, %c0_4] : memref<5x16x128xbf16, #tpu.memory_space<vmem>>, vector<1x16x128xbf16>
    %4 = vector.shape_cast %3 : vector<1x16x128xbf16> to vector<16x128xbf16>
    %cst = arith.constant dense<0.000000e+00> : vector<32x128xf32>
    %5 = tpu.matmul %2, %4, %cst {dimension_numbers = #tpu.dot_dimension_numbers<[1], [0], [0], [1], [0, 0, 1, 1], [], []>} : vector<32x16xbf16>, vector<16x128xbf16>, vector<32x128xf32> -> vector<32x128xf32>
    %6 = vector.extract_strided_slice %1 {offsets = [1, 0], sizes = [32, 16], strides = [1, 1]} : vector<36x16xbf16> to vector<32x16xbf16>
    %c1 = arith.constant 1 : index
    %c0_5 = arith.constant 0 : index
    %c0_6 = arith.constant 0 : index
    %7 = vector.load %arg3[%c1, %c0_5, %c0_6] : memref<5x16x128xbf16, #tpu.memory_space<vmem>>, vector<1x16x128xbf16>
    %8 = vector.shape_cast %7 : vector<1x16x128xbf16> to vector<16x128xbf16>
    %cst_7 = arith.constant dense<0.000000e+00> : vector<32x128xf32>
    %9 = tpu.matmul %6, %8, %cst_7 {dimension_numbers = #tpu.dot_dimension_numbers<[1], [0], [0], [1], [0, 0, 1, 1], [], []>} : vector<32x16xbf16>, vector<16x128xbf16>, vector<32x128xf32> -> vector<32x128xf32>
    %10 = arith.addf %5, %9 : vector<32x128xf32>
    %11 = vector.extract_strided_slice %1 {offsets = [2, 0], sizes = [32, 16], strides = [1, 1]} : vector<36x16xbf16> to vector<32x16xbf16>
    %c2 = arith.constant 2 : index
    %c0_8 = arith.constant 0 : index
    %c0_9 = arith.constant 0 : index
    %12 = vector.load %arg3[%c2, %c0_8, %c0_9] : memref<5x16x128xbf16, #tpu.memory_space<vmem>>, vector<1x16x128xbf16>
    %13 = vector.shape_cast %12 : vector<1x16x128xbf16> to vector<16x128xbf16>
    %cst_10 = arith.constant dense<0.000000e+00> : vector<32x128xf32>
    %14 = tpu.matmul %11, %13, %cst_10 {dimension_numbers = #tpu.dot_dimension_numbers<[1], [0], [0], [1], [0, 0, 1, 1], [], []>} : vector<32x16xbf16>, vector<16x128xbf16>, vector<32x128xf32> -> vector<32x128xf32>
    %15 = arith.addf %10, %14 : vector<32x128xf32>
    %16 = vector.extract_strided_slice %1 {offsets = [3, 0], sizes = [32, 16], strides = [1, 1]} : vector<36x16xbf16> to vector<32x16xbf16>
    %c3 = arith.constant 3 : index
    %c0_11 = arith.constant 0 : index
    %c0_12 = arith.constant 0 : index
    %17 = vector.load %arg3[%c3, %c0_11, %c0_12] : memref<5x16x128xbf16, #tpu.memory_space<vmem>>, vector<1x16x128xbf16>
    %18 = vector.shape_cast %17 : vector<1x16x128xbf16> to vector<16x128xbf16>
    %cst_13 = arith.constant dense<0.000000e+00> : vector<32x128xf32>
    %19 = tpu.matmul %16, %18, %cst_13 {dimension_numbers = #tpu.dot_dimension_numbers<[1], [0], [0], [1], [0, 0, 1, 1], [], []>} : vector<32x16xbf16>, vector<16x128xbf16>, vector<32x128xf32> -> vector<32x128xf32>
    %20 = arith.addf %15, %19 : vector<32x128xf32>
    %21 = vector.extract_strided_slice %1 {offsets = [4, 0], sizes = [32, 16], strides = [1, 1]} : vector<36x16xbf16> to vector<32x16xbf16>
    %c4 = arith.constant 4 : index
    %c0_14 = arith.constant 0 : index
    %c0_15 = arith.constant 0 : index
    %22 = vector.load %arg3[%c4, %c0_14, %c0_15] : memref<5x16x128xbf16, #tpu.memory_space<vmem>>, vector<1x16x128xbf16>
    %23 = vector.shape_cast %22 : vector<1x16x128xbf16> to vector<16x128xbf16>
    %cst_16 = arith.constant dense<0.000000e+00> : vector<32x128xf32>
    %24 = tpu.matmul %21, %23, %cst_16 {dimension_numbers = #tpu.dot_dimension_numbers<[1], [0], [0], [1], [0, 0, 1, 1], [], []>} : vector<32x16xbf16>, vector<16x128xbf16>, vector<32x128xf32> -> vector<32x128xf32>
    %25 = arith.addf %20, %24 : vector<32x128xf32>
    %c0_17 = arith.constant 0 : index
    %c0_18 = arith.constant 0 : index
    %26 = vector.load %arg4[%c0_17, %c0_18] : memref<1x128xf32, #tpu.memory_space<vmem>>, vector<1x128xf32>
    %27 = vector.broadcast %26 : vector<1x128xf32> to vector<32x128xf32>
    %28 = arith.addf %25, %27 : vector<32x128xf32>
    %c0_19 = arith.constant 0 : index
    %c0_20 = arith.constant 0 : index
    %c0_21 = arith.constant 0 : index
    %29 = vector.load %arg5[%c0_19, %c0_20, %c0_21] : memref<1x1x128xf32, #tpu.memory_space<vmem>>, vector<1x1x128xf32>
    %30 = vector.shape_cast %29 : vector<1x1x128xf32> to vector<1x128xf32>
    %31 = vector.broadcast %30 : vector<1x128xf32> to vector<32x128xf32>
    %32 = arith.addf %28, %31 : vector<32x128xf32>
    %cst_22 = arith.constant 0.000000e+00 : f32
    %33 = vector.broadcast %cst_22 : f32 to vector<32x128xf32>
    %34 = arith.maximumf %32, %33 : vector<32x128xf32>
    %c0_23 = arith.constant 0 : index
    %c0_24 = arith.constant 0 : index
    %35 = vector.load %arg6[%c0_23, %c0_24] : memref<1x128xf32, #tpu.memory_space<vmem>>, vector<1x128xf32>
    %36 = vector.broadcast %35 : vector<1x128xf32> to vector<32x128xf32>
    %37 = arith.mulf %34, %36 : vector<32x128xf32>
    %c0_25 = arith.constant 0 : index
    %c0_26 = arith.constant 0 : index
    %38 = vector.load %arg7[%c0_25, %c0_26] : memref<1x128xf32, #tpu.memory_space<vmem>>, vector<1x128xf32>
    %39 = vector.broadcast %38 : vector<1x128xf32> to vector<32x128xf32>
    %40 = arith.addf %37, %39 : vector<32x128xf32>
    %41 = arith.truncf %40 : vector<32x128xf32> to vector<32x128xbf16>
    %c0_27 = arith.constant 0 : index
    %c0_28 = arith.constant 0 : index
    %c0_29 = arith.constant 0 : index
    %42 = vector.load %arg8[%c0_27, %c0_28, %c0_29] : memref<1x32x128xbf16, #tpu.memory_space<vmem>>, vector<1x32x128xbf16>
    %43 = vector.shape_cast %42 : vector<1x32x128xbf16> to vector<32x128xbf16>
    %44 = vector.shape_cast %41 : vector<32x128xbf16> to vector<1x32x128xbf16>
    tpu.vector_store %arg8[%c0_27, %c0_28, %c0_29], %44 {strides = array<i32>} : memref<1x32x128xbf16, #tpu.memory_space<vmem>>, vector<1x32x128xbf16>,
    return
  }
  func.func @transform_0(%arg0: i32, %arg1: i32) -> (i32, i32, i32) {
    %c0_i32 = arith.constant 0 : i32
    %c0_i32_0 = arith.constant 0 : i32
    %c0_i32_1 = arith.constant 0 : i32
    return %arg0, %c0_i32, %c0_i32_0 : i32, i32, i32
  }
  func.func @transform_1(%arg0: i32, %arg1: i32) -> (i32, i32, i32) {
    %c0_i32 = arith.constant 0 : i32
    %c0_i32_0 = arith.constant 0 : i32
    %c0_i32_1 = arith.constant 0 : i32
    return %c0_i32, %c0_i32_0, %arg1 : i32, i32, i32
  }
  func.func @transform_2(%arg0: i32, %arg1: i32) -> (i32, i32) {
    %c0_i32 = arith.constant 0 : i32
    %c0_i32_0 = arith.constant 0 : i32
    return %c0_i32, %arg1 : i32, i32
  }
  func.func @transform_3(%arg0: i32, %arg1: i32) -> (i32, i32, i32) {
    %c0_i32 = arith.constant 0 : i32
    %c0_i32_0 = arith.constant 0 : i32
    return %arg0, %c0_i32, %arg1 : i32, i32, i32
  }
  func.func @transform_4(%arg0: i32, %arg1: i32) -> (i32, i32) {
    %c0_i32 = arith.constant 0 : i32
    %c0_i32_0 = arith.constant 0 : i32
    return %c0_i32, %arg1 : i32, i32
  }
  func.func @transform_5(%arg0: i32, %arg1: i32) -> (i32, i32) {
    %c0_i32 = arith.constant 0 : i32
    %c0_i32_0 = arith.constant 0 : i32
    return %c0_i32, %arg1 : i32, i32
  }
  func.func @transform_6(%arg0: i32, %arg1: i32) -> (i32, i32, i32) {
    %c0_i32 = arith.constant 0 : i32
    %c0_i32_0 = arith.constant 0 : i32
    return %arg0, %c0_i32, %arg1 : i32, i32, i32
  }
}

module attributes {stable_mosaic.version = 11 : i64} {
  func.func @_dense_kernel(%arg0: i32, %arg1: i32, %arg2: i32, %arg3: memref<128x128xbf16, #tpu.memory_space<vmem>>, %arg4: memref<128x128xbf16, #tpu.memory_space<vmem>>, %arg5: memref<1x128xf32, #tpu.memory_space<vmem>>, %arg6: memref<1x128xf32, #tpu.memory_space<vmem>>, %arg7: memref<1x128xf32, #tpu.memory_space<vmem>>, %arg8: memref<128x128xbf16, #tpu.memory_space<vmem>>, %arg9: memref<128x128xf32, #tpu.memory_space<vmem>>) attributes {dimension_semantics = [#tpu.dimension_semantics<parallel>, #tpu.dimension_semantics<parallel>, #tpu.dimension_semantics<arbitrary>], iteration_bounds = array<i64: 1, 1, 1>, scalar_prefetch = 0 : i64, scratch_operands = 1 : i64, tpu.core_type = #tpu.core_type<tc>, window_params = [{transform_indices = @transform_0, window_bounds = array<i64: 128, 128>}, {transform_indices = @transform_1, window_bounds = array<i64: 128, 128>}, {transform_indices = @transform_2, window_bounds = array<i64: 1, 128>}, {transform_indices = @transform_3, window_bounds = array<i64: 1, 128>}, {transform_indices = @transform_4, window_bounds = array<i64: 1, 128>}, {transform_indices = @transform_5, window_bounds = array<i64: 128, 128>}]} {
    %c0_i32 = arith.constant 0 : i32
    %0 = arith.cmpi eq, %arg2, %c0_i32 : i32
    %1 = arith.extui %0 : i1 to i32
    %c0_i32_0 = arith.constant 0 : i32
    %2 = arith.cmpi ne, %1, %c0_i32_0 : i32
    scf.if %2 {
      %cst_10 = arith.constant 0.000000e+00 : f32
      %12 = vector.broadcast %cst_10 : f32 to vector<128x128xf32>
      %c0_11 = arith.constant 0 : index
      %c0_12 = arith.constant 0 : index
      %13 = vector.load %arg9[%c0_11, %c0_12] : memref<128x128xf32, #tpu.memory_space<vmem>>, vector<128x128xf32>
      tpu.vector_store %arg9[%c0_11, %c0_12], %12 {strides = array<i32>} : memref<128x128xf32, #tpu.memory_space<vmem>>, vector<128x128xf32>,
    } else {
    }
    %c0 = arith.constant 0 : index
    %c0_1 = arith.constant 0 : index
    %3 = vector.load %arg9[%c0, %c0_1] : memref<128x128xf32, #tpu.memory_space<vmem>>, vector<128x128xf32>
    %c0_2 = arith.constant 0 : index
    %c0_3 = arith.constant 0 : index
    %4 = vector.load %arg3[%c0_2, %c0_3] : memref<128x128xbf16, #tpu.memory_space<vmem>>, vector<128x128xbf16>
    %c0_4 = arith.constant 0 : index
    %c0_5 = arith.constant 0 : index
    %5 = vector.load %arg4[%c0_4, %c0_5] : memref<128x128xbf16, #tpu.memory_space<vmem>>, vector<128x128xbf16>
    %cst = arith.constant dense<0.000000e+00> : vector<128x128xf32>
    %6 = tpu.matmul %4, %5, %cst {dimension_numbers = #tpu.dot_dimension_numbers<[1], [0], [0], [1], [0, 0, 1, 1], [], []>} : vector<128x128xbf16>, vector<128x128xbf16>, vector<128x128xf32> -> vector<128x128xf32>
    %7 = arith.addf %3, %6 : vector<128x128xf32>
    %c0_6 = arith.constant 0 : index
    %c0_7 = arith.constant 0 : index
    %8 = vector.load %arg9[%c0_6, %c0_7] : memref<128x128xf32, #tpu.memory_space<vmem>>, vector<128x128xf32>
    tpu.vector_store %arg9[%c0_6, %c0_7], %7 {strides = array<i32>} : memref<128x128xf32, #tpu.memory_space<vmem>>, vector<128x128xf32>,
    %c0_i32_8 = arith.constant 0 : i32
    %9 = arith.cmpi eq, %arg2, %c0_i32_8 : i32
    %10 = arith.extui %9 : i1 to i32
    %c0_i32_9 = arith.constant 0 : i32
    %11 = arith.cmpi ne, %10, %c0_i32_9 : i32
    scf.if %11 {
      %c0_10 = arith.constant 0 : index
      %c0_11 = arith.constant 0 : index
      %12 = vector.load %arg9[%c0_10, %c0_11] : memref<128x128xf32, #tpu.memory_space<vmem>>, vector<128x128xf32>
      %c0_12 = arith.constant 0 : index
      %c0_13 = arith.constant 0 : index
      %13 = vector.load %arg5[%c0_12, %c0_13] : memref<1x128xf32, #tpu.memory_space<vmem>>, vector<1x128xf32>
      %14 = vector.broadcast %13 : vector<1x128xf32> to vector<128x128xf32>
      %15 = arith.addf %12, %14 : vector<128x128xf32>
      %cst_14 = arith.constant 0.000000e+00 : f32
      %16 = vector.broadcast %cst_14 : f32 to vector<128x128xf32>
      %17 = arith.maximumf %15, %16 : vector<128x128xf32>
      %c0_15 = arith.constant 0 : index
      %c0_16 = arith.constant 0 : index
      %18 = vector.load %arg6[%c0_15, %c0_16] : memref<1x128xf32, #tpu.memory_space<vmem>>, vector<1x128xf32>
      %19 = vector.broadcast %18 : vector<1x128xf32> to vector<128x128xf32>
      %20 = arith.mulf %17, %19 : vector<128x128xf32>
      %c0_17 = arith.constant 0 : index
      %c0_18 = arith.constant 0 : index
      %21 = vector.load %arg7[%c0_17, %c0_18] : memref<1x128xf32, #tpu.memory_space<vmem>>, vector<1x128xf32>
      %22 = vector.broadcast %21 : vector<1x128xf32> to vector<128x128xf32>
      %23 = arith.addf %20, %22 : vector<128x128xf32>
      %24 = arith.truncf %23 : vector<128x128xf32> to vector<128x128xbf16>
      %c0_19 = arith.constant 0 : index
      %c0_20 = arith.constant 0 : index
      %25 = vector.load %arg8[%c0_19, %c0_20] : memref<128x128xbf16, #tpu.memory_space<vmem>>, vector<128x128xbf16>
      tpu.vector_store %arg8[%c0_19, %c0_20], %24 {strides = array<i32>} : memref<128x128xbf16, #tpu.memory_space<vmem>>, vector<128x128xbf16>,
    } else {
    }
    return
  }
  func.func @transform_0(%arg0: i32, %arg1: i32, %arg2: i32) -> (i32, i32) {
    %c0_i32 = arith.constant 0 : i32
    return %arg0, %arg2 : i32, i32
  }
  func.func @transform_1(%arg0: i32, %arg1: i32, %arg2: i32) -> (i32, i32) {
    %c0_i32 = arith.constant 0 : i32
    return %arg2, %arg1 : i32, i32
  }
  func.func @transform_2(%arg0: i32, %arg1: i32, %arg2: i32) -> (i32, i32) {
    %c0_i32 = arith.constant 0 : i32
    %c0_i32_0 = arith.constant 0 : i32
    return %c0_i32, %arg1 : i32, i32
  }
  func.func @transform_3(%arg0: i32, %arg1: i32, %arg2: i32) -> (i32, i32) {
    %c0_i32 = arith.constant 0 : i32
    %c0_i32_0 = arith.constant 0 : i32
    return %c0_i32, %arg1 : i32, i32
  }
  func.func @transform_4(%arg0: i32, %arg1: i32, %arg2: i32) -> (i32, i32) {
    %c0_i32 = arith.constant 0 : i32
    %c0_i32_0 = arith.constant 0 : i32
    return %c0_i32, %arg1 : i32, i32
  }
  func.func @transform_5(%arg0: i32, %arg1: i32, %arg2: i32) -> (i32, i32) {
    %c0_i32 = arith.constant 0 : i32
    return %arg0, %arg1 : i32, i32
  }
}

module attributes {stable_mosaic.version = 11 : i64} {
  func.func @_conv_kernel(%arg0: i32, %arg1: i32, %arg2: memref<1x36x8xbf16, #tpu.memory_space<vmem>>, %arg3: memref<3x8x128xbf16, #tpu.memory_space<vmem>>, %arg4: memref<1x128xf32, #tpu.memory_space<vmem>>, %arg5: memref<1x1x128xf32, #tpu.memory_space<vmem>>, %arg6: memref<1x128xf32, #tpu.memory_space<vmem>>, %arg7: memref<1x128xf32, #tpu.memory_space<vmem>>, %arg8: memref<1x32x128xbf16, #tpu.memory_space<vmem>>) attributes {dimension_semantics = [#tpu.dimension_semantics<parallel>, #tpu.dimension_semantics<parallel>], iteration_bounds = array<i64: 2, 1>, scalar_prefetch = 0 : i64, scratch_operands = 0 : i64, tpu.core_type = #tpu.core_type<tc>, window_params = [{transform_indices = @transform_0, window_bounds = array<i64: 1, 36, 8>}, {transform_indices = @transform_1, window_bounds = array<i64: 3, 8, 128>}, {transform_indices = @transform_2, window_bounds = array<i64: 1, 128>}, {transform_indices = @transform_3, window_bounds = array<i64: 1, 1, 128>}, {transform_indices = @transform_4, window_bounds = array<i64: 1, 128>}, {transform_indices = @transform_5, window_bounds = array<i64: 1, 128>}, {transform_indices = @transform_6, window_bounds = array<i64: 1, 32, 128>}]} {
    %c0 = arith.constant 0 : index
    %c0_0 = arith.constant 0 : index
    %c0_1 = arith.constant 0 : index
    %0 = vector.load %arg2[%c0, %c0_0, %c0_1] : memref<1x36x8xbf16, #tpu.memory_space<vmem>>, vector<1x36x8xbf16>
    %1 = vector.shape_cast %0 : vector<1x36x8xbf16> to vector<36x8xbf16>
    %2 = vector.extract_strided_slice %1 {offsets = [0, 0], sizes = [32, 8], strides = [1, 1]} : vector<36x8xbf16> to vector<32x8xbf16>
    %c0_2 = arith.constant 0 : index
    %c0_3 = arith.constant 0 : index
    %c0_4 = arith.constant 0 : index
    %3 = vector.load %arg3[%c0_2, %c0_3, %c0_4] : memref<3x8x128xbf16, #tpu.memory_space<vmem>>, vector<1x8x128xbf16>
    %4 = vector.shape_cast %3 : vector<1x8x128xbf16> to vector<8x128xbf16>
    %cst = arith.constant dense<0.000000e+00> : vector<32x128xf32>
    %5 = tpu.matmul %2, %4, %cst {dimension_numbers = #tpu.dot_dimension_numbers<[1], [0], [0], [1], [0, 0, 1, 1], [], []>} : vector<32x8xbf16>, vector<8x128xbf16>, vector<32x128xf32> -> vector<32x128xf32>
    %6 = vector.extract_strided_slice %1 {offsets = [2, 0], sizes = [32, 8], strides = [1, 1]} : vector<36x8xbf16> to vector<32x8xbf16>
    %c1 = arith.constant 1 : index
    %c0_5 = arith.constant 0 : index
    %c0_6 = arith.constant 0 : index
    %7 = vector.load %arg3[%c1, %c0_5, %c0_6] : memref<3x8x128xbf16, #tpu.memory_space<vmem>>, vector<1x8x128xbf16>
    %8 = vector.shape_cast %7 : vector<1x8x128xbf16> to vector<8x128xbf16>
    %cst_7 = arith.constant dense<0.000000e+00> : vector<32x128xf32>
    %9 = tpu.matmul %6, %8, %cst_7 {dimension_numbers = #tpu.dot_dimension_numbers<[1], [0], [0], [1], [0, 0, 1, 1], [], []>} : vector<32x8xbf16>, vector<8x128xbf16>, vector<32x128xf32> -> vector<32x128xf32>
    %10 = arith.addf %5, %9 : vector<32x128xf32>
    %11 = vector.extract_strided_slice %1 {offsets = [4, 0], sizes = [32, 8], strides = [1, 1]} : vector<36x8xbf16> to vector<32x8xbf16>
    %c2 = arith.constant 2 : index
    %c0_8 = arith.constant 0 : index
    %c0_9 = arith.constant 0 : index
    %12 = vector.load %arg3[%c2, %c0_8, %c0_9] : memref<3x8x128xbf16, #tpu.memory_space<vmem>>, vector<1x8x128xbf16>
    %13 = vector.shape_cast %12 : vector<1x8x128xbf16> to vector<8x128xbf16>
    %cst_10 = arith.constant dense<0.000000e+00> : vector<32x128xf32>
    %14 = tpu.matmul %11, %13, %cst_10 {dimension_numbers = #tpu.dot_dimension_numbers<[1], [0], [0], [1], [0, 0, 1, 1], [], []>} : vector<32x8xbf16>, vector<8x128xbf16>, vector<32x128xf32> -> vector<32x128xf32>
    %15 = arith.addf %10, %14 : vector<32x128xf32>
    %c0_11 = arith.constant 0 : index
    %c0_12 = arith.constant 0 : index
    %16 = vector.load %arg4[%c0_11, %c0_12] : memref<1x128xf32, #tpu.memory_space<vmem>>, vector<1x128xf32>
    %17 = vector.broadcast %16 : vector<1x128xf32> to vector<32x128xf32>
    %18 = arith.addf %15, %17 : vector<32x128xf32>
    %c0_13 = arith.constant 0 : index
    %c0_14 = arith.constant 0 : index
    %c0_15 = arith.constant 0 : index
    %19 = vector.load %arg5[%c0_13, %c0_14, %c0_15] : memref<1x1x128xf32, #tpu.memory_space<vmem>>, vector<1x1x128xf32>
    %20 = vector.shape_cast %19 : vector<1x1x128xf32> to vector<1x128xf32>
    %21 = vector.broadcast %20 : vector<1x128xf32> to vector<32x128xf32>
    %22 = arith.addf %18, %21 : vector<32x128xf32>
    %cst_16 = arith.constant 0.000000e+00 : f32
    %23 = vector.broadcast %cst_16 : f32 to vector<32x128xf32>
    %24 = arith.maximumf %22, %23 : vector<32x128xf32>
    %c0_17 = arith.constant 0 : index
    %c0_18 = arith.constant 0 : index
    %25 = vector.load %arg6[%c0_17, %c0_18] : memref<1x128xf32, #tpu.memory_space<vmem>>, vector<1x128xf32>
    %26 = vector.broadcast %25 : vector<1x128xf32> to vector<32x128xf32>
    %27 = arith.mulf %24, %26 : vector<32x128xf32>
    %c0_19 = arith.constant 0 : index
    %c0_20 = arith.constant 0 : index
    %28 = vector.load %arg7[%c0_19, %c0_20] : memref<1x128xf32, #tpu.memory_space<vmem>>, vector<1x128xf32>
    %29 = vector.broadcast %28 : vector<1x128xf32> to vector<32x128xf32>
    %30 = arith.addf %27, %29 : vector<32x128xf32>
    %31 = arith.truncf %30 : vector<32x128xf32> to vector<32x128xbf16>
    %c0_21 = arith.constant 0 : index
    %c0_22 = arith.constant 0 : index
    %c0_23 = arith.constant 0 : index
    %32 = vector.load %arg8[%c0_21, %c0_22, %c0_23] : memref<1x32x128xbf16, #tpu.memory_space<vmem>>, vector<1x32x128xbf16>
    %33 = vector.shape_cast %32 : vector<1x32x128xbf16> to vector<32x128xbf16>
    %34 = vector.shape_cast %31 : vector<32x128xbf16> to vector<1x32x128xbf16>
    tpu.vector_store %arg8[%c0_21, %c0_22, %c0_23], %34 {strides = array<i32>} : memref<1x32x128xbf16, #tpu.memory_space<vmem>>, vector<1x32x128xbf16>,
    return
  }
  func.func @transform_0(%arg0: i32, %arg1: i32) -> (i32, i32, i32) {
    %c0_i32 = arith.constant 0 : i32
    %c0_i32_0 = arith.constant 0 : i32
    %c0_i32_1 = arith.constant 0 : i32
    return %arg0, %c0_i32, %c0_i32_0 : i32, i32, i32
  }
  func.func @transform_1(%arg0: i32, %arg1: i32) -> (i32, i32, i32) {
    %c0_i32 = arith.constant 0 : i32
    %c0_i32_0 = arith.constant 0 : i32
    %c0_i32_1 = arith.constant 0 : i32
    return %c0_i32, %c0_i32_0, %arg1 : i32, i32, i32
  }
  func.func @transform_2(%arg0: i32, %arg1: i32) -> (i32, i32) {
    %c0_i32 = arith.constant 0 : i32
    %c0_i32_0 = arith.constant 0 : i32
    return %c0_i32, %arg1 : i32, i32
  }
  func.func @transform_3(%arg0: i32, %arg1: i32) -> (i32, i32, i32) {
    %c0_i32 = arith.constant 0 : i32
    %c0_i32_0 = arith.constant 0 : i32
    return %arg0, %c0_i32, %arg1 : i32, i32, i32
  }
  func.func @transform_4(%arg0: i32, %arg1: i32) -> (i32, i32) {
    %c0_i32 = arith.constant 0 : i32
    %c0_i32_0 = arith.constant 0 : i32
    return %c0_i32, %arg1 : i32, i32
  }
  func.func @transform_5(%arg0: i32, %arg1: i32) -> (i32, i32) {
    %c0_i32 = arith.constant 0 : i32
    %c0_i32_0 = arith.constant 0 : i32
    return %c0_i32, %arg1 : i32, i32
  }
  func.func @transform_6(%arg0: i32, %arg1: i32) -> (i32, i32, i32) {
    %c0_i32 = arith.constant 0 : i32
    %c0_i32_0 = arith.constant 0 : i32
    return %arg0, %c0_i32, %arg1 : i32, i32, i32
  }
}

module attributes {stable_mosaic.version = 11 : i64} {
  func.func @_mean_std_kernel(%arg0: i32, %arg1: memref<1x32x32xbf16, #tpu.memory_space<vmem>>, %arg2: memref<1x1x32xf32, #tpu.memory_space<vmem>>, %arg3: memref<1x1x32xf32, #tpu.memory_space<vmem>>) attributes {dimension_semantics = [#tpu.dimension_semantics<parallel>], iteration_bounds = array<i64: 2>, scalar_prefetch = 0 : i64, scratch_operands = 0 : i64, tpu.core_type = #tpu.core_type<tc>, window_params = [{transform_indices = @transform_0, window_bounds = array<i64: 1, 32, 32>}, {transform_indices = @transform_1, window_bounds = array<i64: 1, 1, 32>}, {transform_indices = @transform_2, window_bounds = array<i64: 1, 1, 32>}]} {
    %c0 = arith.constant 0 : index
    %c0_0 = arith.constant 0 : index
    %c0_1 = arith.constant 0 : index
    %0 = vector.load %arg1[%c0, %c0_0, %c0_1] : memref<1x32x32xbf16, #tpu.memory_space<vmem>>, vector<1x32x32xbf16>
    %1 = vector.shape_cast %0 : vector<1x32x32xbf16> to vector<32x32xbf16>
    %2 = arith.extf %1 : vector<32x32xbf16> to vector<32x32xf32>
    %cst = arith.constant dense<0.000000e+00> : vector<32xf32>
    %3 = vector.multi_reduction <add>, %2, %cst [0] : vector<32x32xf32> to vector<32xf32>
    %4 = vector.shape_cast %3 : vector<32xf32> to vector<1x32xf32>
    %cst_2 = arith.constant 3.125000e-02 : f32
    %5 = vector.broadcast %cst_2 : f32 to vector<1x32xf32>
    %6 = arith.mulf %4, %5 : vector<1x32xf32>
    %7 = vector.broadcast %6 : vector<1x32xf32> to vector<32x32xf32>
    %8 = arith.subf %2, %7 : vector<32x32xf32>
    %9 = arith.mulf %8, %8 : vector<32x32xf32>
    %cst_3 = arith.constant dense<0.000000e+00> : vector<32xf32>
    %10 = vector.multi_reduction <add>, %9, %cst_3 [0] : vector<32x32xf32> to vector<32xf32>
    %11 = vector.shape_cast %10 : vector<32xf32> to vector<1x32xf32>
    %cst_4 = arith.constant 3.125000e-02 : f32
    %12 = vector.broadcast %cst_4 : f32 to vector<1x32xf32>
    %13 = arith.mulf %11, %12 : vector<1x32xf32>
    %c0_5 = arith.constant 0 : index
    %c0_6 = arith.constant 0 : index
    %c0_7 = arith.constant 0 : index
    %14 = vector.load %arg2[%c0_5, %c0_6, %c0_7] : memref<1x1x32xf32, #tpu.memory_space<vmem>>, vector<1x1x32xf32>
    %15 = vector.shape_cast %14 : vector<1x1x32xf32> to vector<1x32xf32>
    %16 = vector.shape_cast %6 : vector<1x32xf32> to vector<1x1x32xf32>
    tpu.vector_store %arg2[%c0_5, %c0_6, %c0_7], %16 {strides = array<i32>} : memref<1x1x32xf32, #tpu.memory_space<vmem>>, vector<1x1x32xf32>,
    %cst_8 = arith.constant 9.99999996E-13 : f32
    %17 = vector.broadcast %cst_8 : f32 to vector<1x32xf32>
    %18 = arith.maximumf %13, %17 : vector<1x32xf32>
    %19 = math.sqrt %18 : vector<1x32xf32>
    %c0_9 = arith.constant 0 : index
    %c0_10 = arith.constant 0 : index
    %c0_11 = arith.constant 0 : index
    %20 = vector.load %arg3[%c0_9, %c0_10, %c0_11] : memref<1x1x32xf32, #tpu.memory_space<vmem>>, vector<1x1x32xf32>
    %21 = vector.shape_cast %20 : vector<1x1x32xf32> to vector<1x32xf32>
    %22 = vector.shape_cast %19 : vector<1x32xf32> to vector<1x1x32xf32>
    tpu.vector_store %arg3[%c0_9, %c0_10, %c0_11], %22 {strides = array<i32>} : memref<1x1x32xf32, #tpu.memory_space<vmem>>, vector<1x1x32xf32>,
    return
  }
  func.func @transform_0(%arg0: i32) -> (i32, i32, i32) {
    %c0_i32 = arith.constant 0 : i32
    %c0_i32_0 = arith.constant 0 : i32
    %c0_i32_1 = arith.constant 0 : i32
    return %arg0, %c0_i32, %c0_i32_0 : i32, i32, i32
  }
  func.func @transform_1(%arg0: i32) -> (i32, i32, i32) {
    %c0_i32 = arith.constant 0 : i32
    %c0_i32_0 = arith.constant 0 : i32
    %c0_i32_1 = arith.constant 0 : i32
    return %arg0, %c0_i32, %c0_i32_0 : i32, i32, i32
  }
  func.func @transform_2(%arg0: i32) -> (i32, i32, i32) {
    %c0_i32 = arith.constant 0 : i32
    %c0_i32_0 = arith.constant 0 : i32
    %c0_i32_1 = arith.constant 0 : i32
    return %arg0, %c0_i32, %c0_i32_0 : i32, i32, i32
  }
}

module attributes {stable_mosaic.version = 11 : i64} {
  func.func @_dense_kernel(%arg0: i32, %arg1: i32, %arg2: i32, %arg3: memref<128x128xbf16, #tpu.memory_space<vmem>>, %arg4: memref<128x128xbf16, #tpu.memory_space<vmem>>, %arg5: memref<1x128xf32, #tpu.memory_space<vmem>>, %arg6: memref<1x128xf32, #tpu.memory_space<vmem>>, %arg7: memref<1x128xf32, #tpu.memory_space<vmem>>, %arg8: memref<128x128xf32, #tpu.memory_space<vmem>>, %arg9: memref<128x128xf32, #tpu.memory_space<vmem>>) attributes {dimension_semantics = [#tpu.dimension_semantics<parallel>, #tpu.dimension_semantics<parallel>, #tpu.dimension_semantics<arbitrary>], iteration_bounds = array<i64: 1, 1, 1>, scalar_prefetch = 0 : i64, scratch_operands = 1 : i64, tpu.core_type = #tpu.core_type<tc>, window_params = [{transform_indices = @transform_0, window_bounds = array<i64: 128, 128>}, {transform_indices = @transform_1, window_bounds = array<i64: 128, 128>}, {transform_indices = @transform_2, window_bounds = array<i64: 1, 128>}, {transform_indices = @transform_3, window_bounds = array<i64: 1, 128>}, {transform_indices = @transform_4, window_bounds = array<i64: 1, 128>}, {transform_indices = @transform_5, window_bounds = array<i64: 128, 128>}]} {
    %c0_i32 = arith.constant 0 : i32
    %0 = arith.cmpi eq, %arg2, %c0_i32 : i32
    %1 = arith.extui %0 : i1 to i32
    %c0_i32_0 = arith.constant 0 : i32
    %2 = arith.cmpi ne, %1, %c0_i32_0 : i32
    scf.if %2 {
      %cst_10 = arith.constant 0.000000e+00 : f32
      %12 = vector.broadcast %cst_10 : f32 to vector<128x128xf32>
      %c0_11 = arith.constant 0 : index
      %c0_12 = arith.constant 0 : index
      %13 = vector.load %arg9[%c0_11, %c0_12] : memref<128x128xf32, #tpu.memory_space<vmem>>, vector<128x128xf32>
      tpu.vector_store %arg9[%c0_11, %c0_12], %12 {strides = array<i32>} : memref<128x128xf32, #tpu.memory_space<vmem>>, vector<128x128xf32>,
    } else {
    }
    %c0 = arith.constant 0 : index
    %c0_1 = arith.constant 0 : index
    %3 = vector.load %arg9[%c0, %c0_1] : memref<128x128xf32, #tpu.memory_space<vmem>>, vector<128x128xf32>
    %c0_2 = arith.constant 0 : index
    %c0_3 = arith.constant 0 : index
    %4 = vector.load %arg3[%c0_2, %c0_3] : memref<128x128xbf16, #tpu.memory_space<vmem>>, vector<128x128xbf16>
    %c0_4 = arith.constant 0 : index
    %c0_5 = arith.constant 0 : index
    %5 = vector.load %arg4[%c0_4, %c0_5] : memref<128x128xbf16, #tpu.memory_space<vmem>>, vector<128x128xbf16>
    %cst = arith.constant dense<0.000000e+00> : vector<128x128xf32>
    %6 = tpu.matmul %4, %5, %cst {dimension_numbers = #tpu.dot_dimension_numbers<[1], [0], [0], [1], [0, 0, 1, 1], [], []>} : vector<128x128xbf16>, vector<128x128xbf16>, vector<128x128xf32> -> vector<128x128xf32>
    %7 = arith.addf %3, %6 : vector<128x128xf32>
    %c0_6 = arith.constant 0 : index
    %c0_7 = arith.constant 0 : index
    %8 = vector.load %arg9[%c0_6, %c0_7] : memref<128x128xf32, #tpu.memory_space<vmem>>, vector<128x128xf32>
    tpu.vector_store %arg9[%c0_6, %c0_7], %7 {strides = array<i32>} : memref<128x128xf32, #tpu.memory_space<vmem>>, vector<128x128xf32>,
    %c0_i32_8 = arith.constant 0 : i32
    %9 = arith.cmpi eq, %arg2, %c0_i32_8 : i32
    %10 = arith.extui %9 : i1 to i32
    %c0_i32_9 = arith.constant 0 : i32
    %11 = arith.cmpi ne, %10, %c0_i32_9 : i32
    scf.if %11 {
      %c0_10 = arith.constant 0 : index
      %c0_11 = arith.constant 0 : index
      %12 = vector.load %arg9[%c0_10, %c0_11] : memref<128x128xf32, #tpu.memory_space<vmem>>, vector<128x128xf32>
      %c0_12 = arith.constant 0 : index
      %c0_13 = arith.constant 0 : index
      %13 = vector.load %arg5[%c0_12, %c0_13] : memref<1x128xf32, #tpu.memory_space<vmem>>, vector<1x128xf32>
      %14 = vector.broadcast %13 : vector<1x128xf32> to vector<128x128xf32>
      %15 = arith.addf %12, %14 : vector<128x128xf32>
      %cst_14 = arith.constant 0.000000e+00 : f32
      %16 = vector.broadcast %cst_14 : f32 to vector<128x128xf32>
      %17 = arith.maximumf %15, %16 : vector<128x128xf32>
      %c0_15 = arith.constant 0 : index
      %c0_16 = arith.constant 0 : index
      %18 = vector.load %arg6[%c0_15, %c0_16] : memref<1x128xf32, #tpu.memory_space<vmem>>, vector<1x128xf32>
      %19 = vector.broadcast %18 : vector<1x128xf32> to vector<128x128xf32>
      %20 = arith.mulf %17, %19 : vector<128x128xf32>
      %c0_17 = arith.constant 0 : index
      %c0_18 = arith.constant 0 : index
      %21 = vector.load %arg7[%c0_17, %c0_18] : memref<1x128xf32, #tpu.memory_space<vmem>>, vector<1x128xf32>
      %22 = vector.broadcast %21 : vector<1x128xf32> to vector<128x128xf32>
      %23 = arith.addf %20, %22 : vector<128x128xf32>
      %c0_19 = arith.constant 0 : index
      %c0_20 = arith.constant 0 : index
      %24 = vector.load %arg8[%c0_19, %c0_20] : memref<128x128xf32, #tpu.memory_space<vmem>>, vector<128x128xf32>
      tpu.vector_store %arg8[%c0_19, %c0_20], %23 {strides = array<i32>} : memref<128x128xf32, #tpu.memory_space<vmem>>, vector<128x128xf32>,
    } else {
    }
    return
  }
  func.func @transform_0(%arg0: i32, %arg1: i32, %arg2: i32) -> (i32, i32) {
    %c0_i32 = arith.constant 0 : i32
    return %arg0, %arg2 : i32, i32
  }
  func.func @transform_1(%arg0: i32, %arg1: i32, %arg2: i32) -> (i32, i32) {
    %c0_i32 = arith.constant 0 : i32
    return %arg2, %arg1 : i32, i32
  }
  func.func @transform_2(%arg0: i32, %arg1: i32, %arg2: i32) -> (i32, i32) {
    %c0_i32 = arith.constant 0 : i32
    %c0_i32_0 = arith.constant 0 : i32
    return %c0_i32, %arg1 : i32, i32
  }
  func.func @transform_3(%arg0: i32, %arg1: i32, %arg2: i32) -> (i32, i32) {
    %c0_i32 = arith.constant 0 : i32
    %c0_i32_0 = arith.constant 0 : i32
    return %c0_i32, %arg1 : i32, i32
  }
  func.func @transform_4(%arg0: i32, %arg1: i32, %arg2: i32) -> (i32, i32) {
    %c0_i32 = arith.constant 0 : i32
    %c0_i32_0 = arith.constant 0 : i32
    return %c0_i32, %arg1 : i32, i32
  }
  func.func @transform_5(%arg0: i32, %arg1: i32, %arg2: i32) -> (i32, i32) {
    %c0_i32 = arith.constant 0 : i32
    return %arg0, %arg1 : i32, i32
  }
}

module attributes {stable_mosaic.version = 11 : i64} {
  func.func @_se_residual_kernel(%arg0: i32, %arg1: i32, %arg2: memref<1x16x32xbf16, #tpu.memory_space<vmem>>, %arg3: memref<1x1x32xf32, #tpu.memory_space<vmem>>, %arg4: memref<1x16x32xbf16, #tpu.memory_space<vmem>>, %arg5: memref<1x16x32xbf16, #tpu.memory_space<vmem>>) attributes {dimension_semantics = [#tpu.dimension_semantics<parallel>, #tpu.dimension_semantics<parallel>], iteration_bounds = array<i64: 2, 2>, scalar_prefetch = 0 : i64, scratch_operands = 0 : i64, tpu.core_type = #tpu.core_type<tc>, window_params = [{transform_indices = @transform_0, window_bounds = array<i64: 1, 16, 32>}, {transform_indices = @transform_1, window_bounds = array<i64: 1, 1, 32>}, {transform_indices = @transform_2, window_bounds = array<i64: 1, 16, 32>}, {transform_indices = @transform_3, window_bounds = array<i64: 1, 16, 32>}]} {
    %c0 = arith.constant 0 : index
    %c0_0 = arith.constant 0 : index
    %c0_1 = arith.constant 0 : index
    %0 = vector.load %arg2[%c0, %c0_0, %c0_1] : memref<1x16x32xbf16, #tpu.memory_space<vmem>>, vector<1x16x32xbf16>
    %1 = vector.shape_cast %0 : vector<1x16x32xbf16> to vector<16x32xbf16>
    %2 = arith.extf %1 : vector<16x32xbf16> to vector<16x32xf32>
    %c0_2 = arith.constant 0 : index
    %c0_3 = arith.constant 0 : index
    %c0_4 = arith.constant 0 : index
    %3 = vector.load %arg3[%c0_2, %c0_3, %c0_4] : memref<1x1x32xf32, #tpu.memory_space<vmem>>, vector<1x1x32xf32>
    %4 = vector.shape_cast %3 : vector<1x1x32xf32> to vector<1x32xf32>
    %5 = vector.broadcast %4 : vector<1x32xf32> to vector<16x32xf32>
    %6 = arith.mulf %2, %5 : vector<16x32xf32>
    %c0_5 = arith.constant 0 : index
    %c0_6 = arith.constant 0 : index
    %c0_7 = arith.constant 0 : index
    %7 = vector.load %arg4[%c0_5, %c0_6, %c0_7] : memref<1x16x32xbf16, #tpu.memory_space<vmem>>, vector<1x16x32xbf16>
    %8 = vector.shape_cast %7 : vector<1x16x32xbf16> to vector<16x32xbf16>
    %9 = arith.extf %8 : vector<16x32xbf16> to vector<16x32xf32>
    %10 = arith.addf %6, %9 : vector<16x32xf32>
    %11 = arith.truncf %10 : vector<16x32xf32> to vector<16x32xbf16>
    %c0_8 = arith.constant 0 : index
    %c0_9 = arith.constant 0 : index
    %c0_10 = arith.constant 0 : index
    %12 = vector.load %arg5[%c0_8, %c0_9, %c0_10] : memref<1x16x32xbf16, #tpu.memory_space<vmem>>, vector<1x16x32xbf16>
    %13 = vector.shape_cast %12 : vector<1x16x32xbf16> to vector<16x32xbf16>
    %14 = vector.shape_cast %11 : vector<16x32xbf16> to vector<1x16x32xbf16>
    tpu.vector_store %arg5[%c0_8, %c0_9, %c0_10], %14 {strides = array<i32>} : memref<1x16x32xbf16, #tpu.memory_space<vmem>>, vector<1x16x32xbf16>,
    return
  }
  func.func @transform_0(%arg0: i32, %arg1: i32) -> (i32, i32, i32) {
    %c0_i32 = arith.constant 0 : i32
    %c0_i32_0 = arith.constant 0 : i32
    return %arg0, %arg1, %c0_i32 : i32, i32, i32
  }
  func.func @transform_1(%arg0: i32, %arg1: i32) -> (i32, i32, i32) {
    %c0_i32 = arith.constant 0 : i32
    %c0_i32_0 = arith.constant 0 : i32
    %c0_i32_1 = arith.constant 0 : i32
    return %arg0, %c0_i32, %c0_i32_0 : i32, i32, i32
  }
  func.func @transform_2(%arg0: i32, %arg1: i32) -> (i32, i32, i32) {
    %c0_i32 = arith.constant 0 : i32
    %c0_i32_0 = arith.constant 0 : i32
    return %arg0, %arg1, %c0_i32 : i32, i32, i32
  }
  func.func @transform_3(%arg0: i32, %arg1: i32) -> (i32, i32, i32) {
    %c0_i32 = arith.constant 0 : i32
    %c0_i32_0 = arith.constant 0 : i32
    return %arg0, %arg1, %c0_i32 : i32, i32, i32
  }
}

module attributes {stable_mosaic.version = 11 : i64} {
  func.func @_dense_kernel(%arg0: i32, %arg1: i32, %arg2: i32, %arg3: memref<128x128xbf16, #tpu.memory_space<vmem>>, %arg4: memref<128x128xbf16, #tpu.memory_space<vmem>>, %arg5: memref<1x128xf32, #tpu.memory_space<vmem>>, %arg6: memref<1x128xf32, #tpu.memory_space<vmem>>, %arg7: memref<1x128xf32, #tpu.memory_space<vmem>>, %arg8: memref<128x128xf32, #tpu.memory_space<vmem>>, %arg9: memref<128x128xf32, #tpu.memory_space<vmem>>) attributes {dimension_semantics = [#tpu.dimension_semantics<parallel>, #tpu.dimension_semantics<parallel>, #tpu.dimension_semantics<arbitrary>], iteration_bounds = array<i64: 1, 1, 1>, scalar_prefetch = 0 : i64, scratch_operands = 1 : i64, tpu.core_type = #tpu.core_type<tc>, window_params = [{transform_indices = @transform_0, window_bounds = array<i64: 128, 128>}, {transform_indices = @transform_1, window_bounds = array<i64: 128, 128>}, {transform_indices = @transform_2, window_bounds = array<i64: 1, 128>}, {transform_indices = @transform_3, window_bounds = array<i64: 1, 128>}, {transform_indices = @transform_4, window_bounds = array<i64: 1, 128>}, {transform_indices = @transform_5, window_bounds = array<i64: 128, 128>}]} {
    %c0_i32 = arith.constant 0 : i32
    %0 = arith.cmpi eq, %arg2, %c0_i32 : i32
    %1 = arith.extui %0 : i1 to i32
    %c0_i32_0 = arith.constant 0 : i32
    %2 = arith.cmpi ne, %1, %c0_i32_0 : i32
    scf.if %2 {
      %cst_10 = arith.constant 0.000000e+00 : f32
      %12 = vector.broadcast %cst_10 : f32 to vector<128x128xf32>
      %c0_11 = arith.constant 0 : index
      %c0_12 = arith.constant 0 : index
      %13 = vector.load %arg9[%c0_11, %c0_12] : memref<128x128xf32, #tpu.memory_space<vmem>>, vector<128x128xf32>
      tpu.vector_store %arg9[%c0_11, %c0_12], %12 {strides = array<i32>} : memref<128x128xf32, #tpu.memory_space<vmem>>, vector<128x128xf32>,
    } else {
    }
    %c0 = arith.constant 0 : index
    %c0_1 = arith.constant 0 : index
    %3 = vector.load %arg9[%c0, %c0_1] : memref<128x128xf32, #tpu.memory_space<vmem>>, vector<128x128xf32>
    %c0_2 = arith.constant 0 : index
    %c0_3 = arith.constant 0 : index
    %4 = vector.load %arg3[%c0_2, %c0_3] : memref<128x128xbf16, #tpu.memory_space<vmem>>, vector<128x128xbf16>
    %c0_4 = arith.constant 0 : index
    %c0_5 = arith.constant 0 : index
    %5 = vector.load %arg4[%c0_4, %c0_5] : memref<128x128xbf16, #tpu.memory_space<vmem>>, vector<128x128xbf16>
    %cst = arith.constant dense<0.000000e+00> : vector<128x128xf32>
    %6 = tpu.matmul %4, %5, %cst {dimension_numbers = #tpu.dot_dimension_numbers<[1], [0], [0], [1], [0, 0, 1, 1], [], []>} : vector<128x128xbf16>, vector<128x128xbf16>, vector<128x128xf32> -> vector<128x128xf32>
    %7 = arith.addf %3, %6 : vector<128x128xf32>
    %c0_6 = arith.constant 0 : index
    %c0_7 = arith.constant 0 : index
    %8 = vector.load %arg9[%c0_6, %c0_7] : memref<128x128xf32, #tpu.memory_space<vmem>>, vector<128x128xf32>
    tpu.vector_store %arg9[%c0_6, %c0_7], %7 {strides = array<i32>} : memref<128x128xf32, #tpu.memory_space<vmem>>, vector<128x128xf32>,
    %c0_i32_8 = arith.constant 0 : i32
    %9 = arith.cmpi eq, %arg2, %c0_i32_8 : i32
    %10 = arith.extui %9 : i1 to i32
    %c0_i32_9 = arith.constant 0 : i32
    %11 = arith.cmpi ne, %10, %c0_i32_9 : i32
    scf.if %11 {
      %c0_10 = arith.constant 0 : index
      %c0_11 = arith.constant 0 : index
      %12 = vector.load %arg9[%c0_10, %c0_11] : memref<128x128xf32, #tpu.memory_space<vmem>>, vector<128x128xf32>
      %c0_12 = arith.constant 0 : index
      %c0_13 = arith.constant 0 : index
      %13 = vector.load %arg5[%c0_12, %c0_13] : memref<1x128xf32, #tpu.memory_space<vmem>>, vector<1x128xf32>
      %14 = vector.broadcast %13 : vector<1x128xf32> to vector<128x128xf32>
      %15 = arith.addf %12, %14 : vector<128x128xf32>
      %16 = arith.negf %15 : vector<128x128xf32>
      %17 = math.exp %16 : vector<128x128xf32>
      %cst_14 = arith.constant 1.000000e+00 : f32
      %18 = vector.broadcast %cst_14 : f32 to vector<128x128xf32>
      %19 = arith.addf %18, %17 : vector<128x128xf32>
      %20 = arith.divf %18, %19 : vector<128x128xf32>
      %c0_15 = arith.constant 0 : index
      %c0_16 = arith.constant 0 : index
      %21 = vector.load %arg6[%c0_15, %c0_16] : memref<1x128xf32, #tpu.memory_space<vmem>>, vector<1x128xf32>
      %22 = vector.broadcast %21 : vector<1x128xf32> to vector<128x128xf32>
      %23 = arith.mulf %20, %22 : vector<128x128xf32>
      %c0_17 = arith.constant 0 : index
      %c0_18 = arith.constant 0 : index
      %24 = vector.load %arg7[%c0_17, %c0_18] : memref<1x128xf32, #tpu.memory_space<vmem>>, vector<1x128xf32>
      %25 = vector.broadcast %24 : vector<1x128xf32> to vector<128x128xf32>
      %26 = arith.addf %23, %25 : vector<128x128xf32>
      %c0_19 = arith.constant 0 : index
      %c0_20 = arith.constant 0 : index
      %27 = vector.load %arg8[%c0_19, %c0_20] : memref<128x128xf32, #tpu.memory_space<vmem>>, vector<128x128xf32>
      tpu.vector_store %arg8[%c0_19, %c0_20], %26 {strides = array<i32>} : memref<128x128xf32, #tpu.memory_space<vmem>>, vector<128x128xf32>,
    } else {
    }
    return
  }
  func.func @transform_0(%arg0: i32, %arg1: i32, %arg2: i32) -> (i32, i32) {
    %c0_i32 = arith.constant 0 : i32
    return %arg0, %arg2 : i32, i32
  }
  func.func @transform_1(%arg0: i32, %arg1: i32, %arg2: i32) -> (i32, i32) {
    %c0_i32 = arith.constant 0 : i32
    return %arg2, %arg1 : i32, i32
  }
  func.func @transform_2(%arg0: i32, %arg1: i32, %arg2: i32) -> (i32, i32) {
    %c0_i32 = arith.constant 0 : i32
    %c0_i32_0 = arith.constant 0 : i32
    return %c0_i32, %arg1 : i32, i32
  }
  func.func @transform_3(%arg0: i32, %arg1: i32, %arg2: i32) -> (i32, i32) {
    %c0_i32 = arith.constant 0 : i32
    %c0_i32_0 = arith.constant 0 : i32
    return %c0_i32, %arg1 : i32, i32
  }
  func.func @transform_4(%arg0: i32, %arg1: i32, %arg2: i32) -> (i32, i32) {
    %c0_i32 = arith.constant 0 : i32
    %c0_i32_0 = arith.constant 0 : i32
    return %c0_i32, %arg1 : i32, i32
  }
  func.func @transform_5(%arg0: i32, %arg1: i32, %arg2: i32) -> (i32, i32) {
    %c0_i32 = arith.constant 0 : i32
    return %arg0, %arg1 : i32, i32
  }
}

module attributes {stable_mosaic.version = 11 : i64} {
  func.func @_conv_kernel(%arg0: i32, %arg1: i32, %arg2: memref<1x38x8xbf16, #tpu.memory_space<vmem>>, %arg3: memref<3x8x128xbf16, #tpu.memory_space<vmem>>, %arg4: memref<1x128xf32, #tpu.memory_space<vmem>>, %arg5: memref<1x1x128xf32, #tpu.memory_space<vmem>>, %arg6: memref<1x128xf32, #tpu.memory_space<vmem>>, %arg7: memref<1x128xf32, #tpu.memory_space<vmem>>, %arg8: memref<1x32x128xbf16, #tpu.memory_space<vmem>>) attributes {dimension_semantics = [#tpu.dimension_semantics<parallel>, #tpu.dimension_semantics<parallel>], iteration_bounds = array<i64: 2, 1>, scalar_prefetch = 0 : i64, scratch_operands = 0 : i64, tpu.core_type = #tpu.core_type<tc>, window_params = [{transform_indices = @transform_0, window_bounds = array<i64: 1, 38, 8>}, {transform_indices = @transform_1, window_bounds = array<i64: 3, 8, 128>}, {transform_indices = @transform_2, window_bounds = array<i64: 1, 128>}, {transform_indices = @transform_3, window_bounds = array<i64: 1, 1, 128>}, {transform_indices = @transform_4, window_bounds = array<i64: 1, 128>}, {transform_indices = @transform_5, window_bounds = array<i64: 1, 128>}, {transform_indices = @transform_6, window_bounds = array<i64: 1, 32, 128>}]} {
    %c0 = arith.constant 0 : index
    %c0_0 = arith.constant 0 : index
    %c0_1 = arith.constant 0 : index
    %0 = vector.load %arg2[%c0, %c0_0, %c0_1] : memref<1x38x8xbf16, #tpu.memory_space<vmem>>, vector<1x38x8xbf16>
    %1 = vector.shape_cast %0 : vector<1x38x8xbf16> to vector<38x8xbf16>
    %2 = vector.extract_strided_slice %1 {offsets = [0, 0], sizes = [32, 8], strides = [1, 1]} : vector<38x8xbf16> to vector<32x8xbf16>
    %c0_2 = arith.constant 0 : index
    %c0_3 = arith.constant 0 : index
    %c0_4 = arith.constant 0 : index
    %3 = vector.load %arg3[%c0_2, %c0_3, %c0_4] : memref<3x8x128xbf16, #tpu.memory_space<vmem>>, vector<1x8x128xbf16>
    %4 = vector.shape_cast %3 : vector<1x8x128xbf16> to vector<8x128xbf16>
    %cst = arith.constant dense<0.000000e+00> : vector<32x128xf32>
    %5 = tpu.matmul %2, %4, %cst {dimension_numbers = #tpu.dot_dimension_numbers<[1], [0], [0], [1], [0, 0, 1, 1], [], []>} : vector<32x8xbf16>, vector<8x128xbf16>, vector<32x128xf32> -> vector<32x128xf32>
    %6 = vector.extract_strided_slice %1 {offsets = [3, 0], sizes = [32, 8], strides = [1, 1]} : vector<38x8xbf16> to vector<32x8xbf16>
    %c1 = arith.constant 1 : index
    %c0_5 = arith.constant 0 : index
    %c0_6 = arith.constant 0 : index
    %7 = vector.load %arg3[%c1, %c0_5, %c0_6] : memref<3x8x128xbf16, #tpu.memory_space<vmem>>, vector<1x8x128xbf16>
    %8 = vector.shape_cast %7 : vector<1x8x128xbf16> to vector<8x128xbf16>
    %cst_7 = arith.constant dense<0.000000e+00> : vector<32x128xf32>
    %9 = tpu.matmul %6, %8, %cst_7 {dimension_numbers = #tpu.dot_dimension_numbers<[1], [0], [0], [1], [0, 0, 1, 1], [], []>} : vector<32x8xbf16>, vector<8x128xbf16>, vector<32x128xf32> -> vector<32x128xf32>
    %10 = arith.addf %5, %9 : vector<32x128xf32>
    %11 = vector.extract_strided_slice %1 {offsets = [6, 0], sizes = [32, 8], strides = [1, 1]} : vector<38x8xbf16> to vector<32x8xbf16>
    %c2 = arith.constant 2 : index
    %c0_8 = arith.constant 0 : index
    %c0_9 = arith.constant 0 : index
    %12 = vector.load %arg3[%c2, %c0_8, %c0_9] : memref<3x8x128xbf16, #tpu.memory_space<vmem>>, vector<1x8x128xbf16>
    %13 = vector.shape_cast %12 : vector<1x8x128xbf16> to vector<8x128xbf16>
    %cst_10 = arith.constant dense<0.000000e+00> : vector<32x128xf32>
    %14 = tpu.matmul %11, %13, %cst_10 {dimension_numbers = #tpu.dot_dimension_numbers<[1], [0], [0], [1], [0, 0, 1, 1], [], []>} : vector<32x8xbf16>, vector<8x128xbf16>, vector<32x128xf32> -> vector<32x128xf32>
    %15 = arith.addf %10, %14 : vector<32x128xf32>
    %c0_11 = arith.constant 0 : index
    %c0_12 = arith.constant 0 : index
    %16 = vector.load %arg4[%c0_11, %c0_12] : memref<1x128xf32, #tpu.memory_space<vmem>>, vector<1x128xf32>
    %17 = vector.broadcast %16 : vector<1x128xf32> to vector<32x128xf32>
    %18 = arith.addf %15, %17 : vector<32x128xf32>
    %c0_13 = arith.constant 0 : index
    %c0_14 = arith.constant 0 : index
    %c0_15 = arith.constant 0 : index
    %19 = vector.load %arg5[%c0_13, %c0_14, %c0_15] : memref<1x1x128xf32, #tpu.memory_space<vmem>>, vector<1x1x128xf32>
    %20 = vector.shape_cast %19 : vector<1x1x128xf32> to vector<1x128xf32>
    %21 = vector.broadcast %20 : vector<1x128xf32> to vector<32x128xf32>
    %22 = arith.addf %18, %21 : vector<32x128xf32>
    %cst_16 = arith.constant 0.000000e+00 : f32
    %23 = vector.broadcast %cst_16 : f32 to vector<32x128xf32>
    %24 = arith.maximumf %22, %23 : vector<32x128xf32>
    %c0_17 = arith.constant 0 : index
    %c0_18 = arith.constant 0 : index
    %25 = vector.load %arg6[%c0_17, %c0_18] : memref<1x128xf32, #tpu.memory_space<vmem>>, vector<1x128xf32>
    %26 = vector.broadcast %25 : vector<1x128xf32> to vector<32x128xf32>
    %27 = arith.mulf %24, %26 : vector<32x128xf32>
    %c0_19 = arith.constant 0 : index
    %c0_20 = arith.constant 0 : index
    %28 = vector.load %arg7[%c0_19, %c0_20] : memref<1x128xf32, #tpu.memory_space<vmem>>, vector<1x128xf32>
    %29 = vector.broadcast %28 : vector<1x128xf32> to vector<32x128xf32>
    %30 = arith.addf %27, %29 : vector<32x128xf32>
    %31 = arith.truncf %30 : vector<32x128xf32> to vector<32x128xbf16>
    %c0_21 = arith.constant 0 : index
    %c0_22 = arith.constant 0 : index
    %c0_23 = arith.constant 0 : index
    %32 = vector.load %arg8[%c0_21, %c0_22, %c0_23] : memref<1x32x128xbf16, #tpu.memory_space<vmem>>, vector<1x32x128xbf16>
    %33 = vector.shape_cast %32 : vector<1x32x128xbf16> to vector<32x128xbf16>
    %34 = vector.shape_cast %31 : vector<32x128xbf16> to vector<1x32x128xbf16>
    tpu.vector_store %arg8[%c0_21, %c0_22, %c0_23], %34 {strides = array<i32>} : memref<1x32x128xbf16, #tpu.memory_space<vmem>>, vector<1x32x128xbf16>,
    return
  }
  func.func @transform_0(%arg0: i32, %arg1: i32) -> (i32, i32, i32) {
    %c0_i32 = arith.constant 0 : i32
    %c0_i32_0 = arith.constant 0 : i32
    %c0_i32_1 = arith.constant 0 : i32
    return %arg0, %c0_i32, %c0_i32_0 : i32, i32, i32
  }
  func.func @transform_1(%arg0: i32, %arg1: i32) -> (i32, i32, i32) {
    %c0_i32 = arith.constant 0 : i32
    %c0_i32_0 = arith.constant 0 : i32
    %c0_i32_1 = arith.constant 0 : i32
    return %c0_i32, %c0_i32_0, %arg1 : i32, i32, i32
  }
  func.func @transform_2(%arg0: i32, %arg1: i32) -> (i32, i32) {
    %c0_i32 = arith.constant 0 : i32
    %c0_i32_0 = arith.constant 0 : i32
    return %c0_i32, %arg1 : i32, i32
  }
  func.func @transform_3(%arg0: i32, %arg1: i32) -> (i32, i32, i32) {
    %c0_i32 = arith.constant 0 : i32
    %c0_i32_0 = arith.constant 0 : i32
    return %arg0, %c0_i32, %arg1 : i32, i32, i32
  }
  func.func @transform_4(%arg0: i32, %arg1: i32) -> (i32, i32) {
    %c0_i32 = arith.constant 0 : i32
    %c0_i32_0 = arith.constant 0 : i32
    return %c0_i32, %arg1 : i32, i32
  }
  func.func @transform_5(%arg0: i32, %arg1: i32) -> (i32, i32) {
    %c0_i32 = arith.constant 0 : i32
    %c0_i32_0 = arith.constant 0 : i32
    return %c0_i32, %arg1 : i32, i32
  }
  func.func @transform_6(%arg0: i32, %arg1: i32) -> (i32, i32, i32) {
    %c0_i32 = arith.constant 0 : i32
    %c0_i32_0 = arith.constant 0 : i32
    return %arg0, %c0_i32, %arg1 : i32, i32, i32
  }
}

module attributes {stable_mosaic.version = 11 : i64} {
  func.func @_conv_kernel(%arg0: i32, %arg1: i32, %arg2: memref<1x40x8xbf16, #tpu.memory_space<vmem>>, %arg3: memref<3x8x128xbf16, #tpu.memory_space<vmem>>, %arg4: memref<1x128xf32, #tpu.memory_space<vmem>>, %arg5: memref<1x1x128xf32, #tpu.memory_space<vmem>>, %arg6: memref<1x128xf32, #tpu.memory_space<vmem>>, %arg7: memref<1x128xf32, #tpu.memory_space<vmem>>, %arg8: memref<1x32x128xbf16, #tpu.memory_space<vmem>>) attributes {dimension_semantics = [#tpu.dimension_semantics<parallel>, #tpu.dimension_semantics<parallel>], iteration_bounds = array<i64: 2, 1>, scalar_prefetch = 0 : i64, scratch_operands = 0 : i64, tpu.core_type = #tpu.core_type<tc>, window_params = [{transform_indices = @transform_0, window_bounds = array<i64: 1, 40, 8>}, {transform_indices = @transform_1, window_bounds = array<i64: 3, 8, 128>}, {transform_indices = @transform_2, window_bounds = array<i64: 1, 128>}, {transform_indices = @transform_3, window_bounds = array<i64: 1, 1, 128>}, {transform_indices = @transform_4, window_bounds = array<i64: 1, 128>}, {transform_indices = @transform_5, window_bounds = array<i64: 1, 128>}, {transform_indices = @transform_6, window_bounds = array<i64: 1, 32, 128>}]} {
    %c0 = arith.constant 0 : index
    %c0_0 = arith.constant 0 : index
    %c0_1 = arith.constant 0 : index
    %0 = vector.load %arg2[%c0, %c0_0, %c0_1] : memref<1x40x8xbf16, #tpu.memory_space<vmem>>, vector<1x40x8xbf16>
    %1 = vector.shape_cast %0 : vector<1x40x8xbf16> to vector<40x8xbf16>
    %2 = vector.extract_strided_slice %1 {offsets = [0, 0], sizes = [32, 8], strides = [1, 1]} : vector<40x8xbf16> to vector<32x8xbf16>
    %c0_2 = arith.constant 0 : index
    %c0_3 = arith.constant 0 : index
    %c0_4 = arith.constant 0 : index
    %3 = vector.load %arg3[%c0_2, %c0_3, %c0_4] : memref<3x8x128xbf16, #tpu.memory_space<vmem>>, vector<1x8x128xbf16>
    %4 = vector.shape_cast %3 : vector<1x8x128xbf16> to vector<8x128xbf16>
    %cst = arith.constant dense<0.000000e+00> : vector<32x128xf32>
    %5 = tpu.matmul %2, %4, %cst {dimension_numbers = #tpu.dot_dimension_numbers<[1], [0], [0], [1], [0, 0, 1, 1], [], []>} : vector<32x8xbf16>, vector<8x128xbf16>, vector<32x128xf32> -> vector<32x128xf32>
    %6 = vector.extract_strided_slice %1 {offsets = [4, 0], sizes = [32, 8], strides = [1, 1]} : vector<40x8xbf16> to vector<32x8xbf16>
    %c1 = arith.constant 1 : index
    %c0_5 = arith.constant 0 : index
    %c0_6 = arith.constant 0 : index
    %7 = vector.load %arg3[%c1, %c0_5, %c0_6] : memref<3x8x128xbf16, #tpu.memory_space<vmem>>, vector<1x8x128xbf16>
    %8 = vector.shape_cast %7 : vector<1x8x128xbf16> to vector<8x128xbf16>
    %cst_7 = arith.constant dense<0.000000e+00> : vector<32x128xf32>
    %9 = tpu.matmul %6, %8, %cst_7 {dimension_numbers = #tpu.dot_dimension_numbers<[1], [0], [0], [1], [0, 0, 1, 1], [], []>} : vector<32x8xbf16>, vector<8x128xbf16>, vector<32x128xf32> -> vector<32x128xf32>
    %10 = arith.addf %5, %9 : vector<32x128xf32>
    %11 = vector.extract_strided_slice %1 {offsets = [8, 0], sizes = [32, 8], strides = [1, 1]} : vector<40x8xbf16> to vector<32x8xbf16>
    %c2 = arith.constant 2 : index
    %c0_8 = arith.constant 0 : index
    %c0_9 = arith.constant 0 : index
    %12 = vector.load %arg3[%c2, %c0_8, %c0_9] : memref<3x8x128xbf16, #tpu.memory_space<vmem>>, vector<1x8x128xbf16>
    %13 = vector.shape_cast %12 : vector<1x8x128xbf16> to vector<8x128xbf16>
    %cst_10 = arith.constant dense<0.000000e+00> : vector<32x128xf32>
    %14 = tpu.matmul %11, %13, %cst_10 {dimension_numbers = #tpu.dot_dimension_numbers<[1], [0], [0], [1], [0, 0, 1, 1], [], []>} : vector<32x8xbf16>, vector<8x128xbf16>, vector<32x128xf32> -> vector<32x128xf32>
    %15 = arith.addf %10, %14 : vector<32x128xf32>
    %c0_11 = arith.constant 0 : index
    %c0_12 = arith.constant 0 : index
    %16 = vector.load %arg4[%c0_11, %c0_12] : memref<1x128xf32, #tpu.memory_space<vmem>>, vector<1x128xf32>
    %17 = vector.broadcast %16 : vector<1x128xf32> to vector<32x128xf32>
    %18 = arith.addf %15, %17 : vector<32x128xf32>
    %c0_13 = arith.constant 0 : index
    %c0_14 = arith.constant 0 : index
    %c0_15 = arith.constant 0 : index
    %19 = vector.load %arg5[%c0_13, %c0_14, %c0_15] : memref<1x1x128xf32, #tpu.memory_space<vmem>>, vector<1x1x128xf32>
    %20 = vector.shape_cast %19 : vector<1x1x128xf32> to vector<1x128xf32>
    %21 = vector.broadcast %20 : vector<1x128xf32> to vector<32x128xf32>
    %22 = arith.addf %18, %21 : vector<32x128xf32>
    %cst_16 = arith.constant 0.000000e+00 : f32
    %23 = vector.broadcast %cst_16 : f32 to vector<32x128xf32>
    %24 = arith.maximumf %22, %23 : vector<32x128xf32>
    %c0_17 = arith.constant 0 : index
    %c0_18 = arith.constant 0 : index
    %25 = vector.load %arg6[%c0_17, %c0_18] : memref<1x128xf32, #tpu.memory_space<vmem>>, vector<1x128xf32>
    %26 = vector.broadcast %25 : vector<1x128xf32> to vector<32x128xf32>
    %27 = arith.mulf %24, %26 : vector<32x128xf32>
    %c0_19 = arith.constant 0 : index
    %c0_20 = arith.constant 0 : index
    %28 = vector.load %arg7[%c0_19, %c0_20] : memref<1x128xf32, #tpu.memory_space<vmem>>, vector<1x128xf32>
    %29 = vector.broadcast %28 : vector<1x128xf32> to vector<32x128xf32>
    %30 = arith.addf %27, %29 : vector<32x128xf32>
    %31 = arith.truncf %30 : vector<32x128xf32> to vector<32x128xbf16>
    %c0_21 = arith.constant 0 : index
    %c0_22 = arith.constant 0 : index
    %c0_23 = arith.constant 0 : index
    %32 = vector.load %arg8[%c0_21, %c0_22, %c0_23] : memref<1x32x128xbf16, #tpu.memory_space<vmem>>, vector<1x32x128xbf16>
    %33 = vector.shape_cast %32 : vector<1x32x128xbf16> to vector<32x128xbf16>
    %34 = vector.shape_cast %31 : vector<32x128xbf16> to vector<1x32x128xbf16>
    tpu.vector_store %arg8[%c0_21, %c0_22, %c0_23], %34 {strides = array<i32>} : memref<1x32x128xbf16, #tpu.memory_space<vmem>>, vector<1x32x128xbf16>,
    return
  }
  func.func @transform_0(%arg0: i32, %arg1: i32) -> (i32, i32, i32) {
    %c0_i32 = arith.constant 0 : i32
    %c0_i32_0 = arith.constant 0 : i32
    %c0_i32_1 = arith.constant 0 : i32
    return %arg0, %c0_i32, %c0_i32_0 : i32, i32, i32
  }
  func.func @transform_1(%arg0: i32, %arg1: i32) -> (i32, i32, i32) {
    %c0_i32 = arith.constant 0 : i32
    %c0_i32_0 = arith.constant 0 : i32
    %c0_i32_1 = arith.constant 0 : i32
    return %c0_i32, %c0_i32_0, %arg1 : i32, i32, i32
  }
  func.func @transform_2(%arg0: i32, %arg1: i32) -> (i32, i32) {
    %c0_i32 = arith.constant 0 : i32
    %c0_i32_0 = arith.constant 0 : i32
    return %c0_i32, %arg1 : i32, i32
  }
  func.func @transform_3(%arg0: i32, %arg1: i32) -> (i32, i32, i32) {
    %c0_i32 = arith.constant 0 : i32
    %c0_i32_0 = arith.constant 0 : i32
    return %arg0, %c0_i32, %arg1 : i32, i32, i32
  }
  func.func @transform_4(%arg0: i32, %arg1: i32) -> (i32, i32) {
    %c0_i32 = arith.constant 0 : i32
    %c0_i32_0 = arith.constant 0 : i32
    return %c0_i32, %arg1 : i32, i32
  }
  func.func @transform_5(%arg0: i32, %arg1: i32) -> (i32, i32) {
    %c0_i32 = arith.constant 0 : i32
    %c0_i32_0 = arith.constant 0 : i32
    return %c0_i32, %arg1 : i32, i32
  }
  func.func @transform_6(%arg0: i32, %arg1: i32) -> (i32, i32, i32) {
    %c0_i32 = arith.constant 0 : i32
    %c0_i32_0 = arith.constant 0 : i32
    return %arg0, %c0_i32, %arg1 : i32, i32, i32
  }
}

module attributes {stable_mosaic.version = 11 : i64} {
  func.func @_mean_std_kernel(%arg0: i32, %arg1: memref<1x32x96xbf16, #tpu.memory_space<vmem>>, %arg2: memref<1x1x96xf32, #tpu.memory_space<vmem>>, %arg3: memref<1x1x96xf32, #tpu.memory_space<vmem>>) attributes {dimension_semantics = [#tpu.dimension_semantics<parallel>], iteration_bounds = array<i64: 2>, scalar_prefetch = 0 : i64, scratch_operands = 0 : i64, tpu.core_type = #tpu.core_type<tc>, window_params = [{transform_indices = @transform_0, window_bounds = array<i64: 1, 32, 96>}, {transform_indices = @transform_1, window_bounds = array<i64: 1, 1, 96>}, {transform_indices = @transform_2, window_bounds = array<i64: 1, 1, 96>}]} {
    %c0 = arith.constant 0 : index
    %c0_0 = arith.constant 0 : index
    %c0_1 = arith.constant 0 : index
    %0 = vector.load %arg1[%c0, %c0_0, %c0_1] : memref<1x32x96xbf16, #tpu.memory_space<vmem>>, vector<1x32x96xbf16>
    %1 = vector.shape_cast %0 : vector<1x32x96xbf16> to vector<32x96xbf16>
    %2 = arith.extf %1 : vector<32x96xbf16> to vector<32x96xf32>
    %cst = arith.constant dense<0.000000e+00> : vector<96xf32>
    %3 = vector.multi_reduction <add>, %2, %cst [0] : vector<32x96xf32> to vector<96xf32>
    %4 = vector.shape_cast %3 : vector<96xf32> to vector<1x96xf32>
    %cst_2 = arith.constant 3.125000e-02 : f32
    %5 = vector.broadcast %cst_2 : f32 to vector<1x96xf32>
    %6 = arith.mulf %4, %5 : vector<1x96xf32>
    %7 = vector.broadcast %6 : vector<1x96xf32> to vector<32x96xf32>
    %8 = arith.subf %2, %7 : vector<32x96xf32>
    %9 = arith.mulf %8, %8 : vector<32x96xf32>
    %cst_3 = arith.constant dense<0.000000e+00> : vector<96xf32>
    %10 = vector.multi_reduction <add>, %9, %cst_3 [0] : vector<32x96xf32> to vector<96xf32>
    %11 = vector.shape_cast %10 : vector<96xf32> to vector<1x96xf32>
    %cst_4 = arith.constant 3.125000e-02 : f32
    %12 = vector.broadcast %cst_4 : f32 to vector<1x96xf32>
    %13 = arith.mulf %11, %12 : vector<1x96xf32>
    %c0_5 = arith.constant 0 : index
    %c0_6 = arith.constant 0 : index
    %c0_7 = arith.constant 0 : index
    %14 = vector.load %arg2[%c0_5, %c0_6, %c0_7] : memref<1x1x96xf32, #tpu.memory_space<vmem>>, vector<1x1x96xf32>
    %15 = vector.shape_cast %14 : vector<1x1x96xf32> to vector<1x96xf32>
    %16 = vector.shape_cast %6 : vector<1x96xf32> to vector<1x1x96xf32>
    tpu.vector_store %arg2[%c0_5, %c0_6, %c0_7], %16 {strides = array<i32>} : memref<1x1x96xf32, #tpu.memory_space<vmem>>, vector<1x1x96xf32>,
    %cst_8 = arith.constant 9.99999996E-13 : f32
    %17 = vector.broadcast %cst_8 : f32 to vector<1x96xf32>
    %18 = arith.maximumf %13, %17 : vector<1x96xf32>
    %19 = math.sqrt %18 : vector<1x96xf32>
    %c0_9 = arith.constant 0 : index
    %c0_10 = arith.constant 0 : index
    %c0_11 = arith.constant 0 : index
    %20 = vector.load %arg3[%c0_9, %c0_10, %c0_11] : memref<1x1x96xf32, #tpu.memory_space<vmem>>, vector<1x1x96xf32>
    %21 = vector.shape_cast %20 : vector<1x1x96xf32> to vector<1x96xf32>
    %22 = vector.shape_cast %19 : vector<1x96xf32> to vector<1x1x96xf32>
    tpu.vector_store %arg3[%c0_9, %c0_10, %c0_11], %22 {strides = array<i32>} : memref<1x1x96xf32, #tpu.memory_space<vmem>>, vector<1x1x96xf32>,
    return
  }
  func.func @transform_0(%arg0: i32) -> (i32, i32, i32) {
    %c0_i32 = arith.constant 0 : i32
    %c0_i32_0 = arith.constant 0 : i32
    %c0_i32_1 = arith.constant 0 : i32
    return %arg0, %c0_i32, %c0_i32_0 : i32, i32, i32
  }
  func.func @transform_1(%arg0: i32) -> (i32, i32, i32) {
    %c0_i32 = arith.constant 0 : i32
    %c0_i32_0 = arith.constant 0 : i32
    %c0_i32_1 = arith.constant 0 : i32
    return %arg0, %c0_i32, %c0_i32_0 : i32, i32, i32
  }
  func.func @transform_2(%arg0: i32) -> (i32, i32, i32) {
    %c0_i32 = arith.constant 0 : i32
    %c0_i32_0 = arith.constant 0 : i32
    %c0_i32_1 = arith.constant 0 : i32
    return %arg0, %c0_i32, %c0_i32_0 : i32, i32, i32
  }
}

module attributes {stable_mosaic.version = 11 : i64} {
  func.func @_dense_kernel(%arg0: i32, %arg1: i32, %arg2: i32, %arg3: memref<128x256xbf16, #tpu.memory_space<vmem>>, %arg4: memref<256x128xbf16, #tpu.memory_space<vmem>>, %arg5: memref<1x128xf32, #tpu.memory_space<vmem>>, %arg6: memref<1x128xf32, #tpu.memory_space<vmem>>, %arg7: memref<1x128xf32, #tpu.memory_space<vmem>>, %arg8: memref<128x128xf32, #tpu.memory_space<vmem>>, %arg9: memref<128x128xf32, #tpu.memory_space<vmem>>) attributes {dimension_semantics = [#tpu.dimension_semantics<parallel>, #tpu.dimension_semantics<parallel>, #tpu.dimension_semantics<arbitrary>], iteration_bounds = array<i64: 1, 1, 1>, scalar_prefetch = 0 : i64, scratch_operands = 1 : i64, tpu.core_type = #tpu.core_type<tc>, window_params = [{transform_indices = @transform_0, window_bounds = array<i64: 128, 256>}, {transform_indices = @transform_1, window_bounds = array<i64: 256, 128>}, {transform_indices = @transform_2, window_bounds = array<i64: 1, 128>}, {transform_indices = @transform_3, window_bounds = array<i64: 1, 128>}, {transform_indices = @transform_4, window_bounds = array<i64: 1, 128>}, {transform_indices = @transform_5, window_bounds = array<i64: 128, 128>}]} {
    %c0_i32 = arith.constant 0 : i32
    %0 = arith.cmpi eq, %arg2, %c0_i32 : i32
    %1 = arith.extui %0 : i1 to i32
    %c0_i32_0 = arith.constant 0 : i32
    %2 = arith.cmpi ne, %1, %c0_i32_0 : i32
    scf.if %2 {
      %cst_10 = arith.constant 0.000000e+00 : f32
      %12 = vector.broadcast %cst_10 : f32 to vector<128x128xf32>
      %c0_11 = arith.constant 0 : index
      %c0_12 = arith.constant 0 : index
      %13 = vector.load %arg9[%c0_11, %c0_12] : memref<128x128xf32, #tpu.memory_space<vmem>>, vector<128x128xf32>
      tpu.vector_store %arg9[%c0_11, %c0_12], %12 {strides = array<i32>} : memref<128x128xf32, #tpu.memory_space<vmem>>, vector<128x128xf32>,
    } else {
    }
    %c0 = arith.constant 0 : index
    %c0_1 = arith.constant 0 : index
    %3 = vector.load %arg9[%c0, %c0_1] : memref<128x128xf32, #tpu.memory_space<vmem>>, vector<128x128xf32>
    %c0_2 = arith.constant 0 : index
    %c0_3 = arith.constant 0 : index
    %4 = vector.load %arg3[%c0_2, %c0_3] : memref<128x256xbf16, #tpu.memory_space<vmem>>, vector<128x256xbf16>
    %c0_4 = arith.constant 0 : index
    %c0_5 = arith.constant 0 : index
    %5 = vector.load %arg4[%c0_4, %c0_5] : memref<256x128xbf16, #tpu.memory_space<vmem>>, vector<256x128xbf16>
    %cst = arith.constant dense<0.000000e+00> : vector<128x128xf32>
    %6 = tpu.matmul %4, %5, %cst {dimension_numbers = #tpu.dot_dimension_numbers<[1], [0], [0], [1], [0, 0, 1, 1], [], []>} : vector<128x256xbf16>, vector<256x128xbf16>, vector<128x128xf32> -> vector<128x128xf32>
    %7 = arith.addf %3, %6 : vector<128x128xf32>
    %c0_6 = arith.constant 0 : index
    %c0_7 = arith.constant 0 : index
    %8 = vector.load %arg9[%c0_6, %c0_7] : memref<128x128xf32, #tpu.memory_space<vmem>>, vector<128x128xf32>
    tpu.vector_store %arg9[%c0_6, %c0_7], %7 {strides = array<i32>} : memref<128x128xf32, #tpu.memory_space<vmem>>, vector<128x128xf32>,
    %c0_i32_8 = arith.constant 0 : i32
    %9 = arith.cmpi eq, %arg2, %c0_i32_8 : i32
    %10 = arith.extui %9 : i1 to i32
    %c0_i32_9 = arith.constant 0 : i32
    %11 = arith.cmpi ne, %10, %c0_i32_9 : i32
    scf.if %11 {
      %c0_10 = arith.constant 0 : index
      %c0_11 = arith.constant 0 : index
      %12 = vector.load %arg9[%c0_10, %c0_11] : memref<128x128xf32, #tpu.memory_space<vmem>>, vector<128x128xf32>
      %c0_12 = arith.constant 0 : index
      %c0_13 = arith.constant 0 : index
      %13 = vector.load %arg5[%c0_12, %c0_13] : memref<1x128xf32, #tpu.memory_space<vmem>>, vector<1x128xf32>
      %14 = vector.broadcast %13 : vector<1x128xf32> to vector<128x128xf32>
      %15 = arith.addf %12, %14 : vector<128x128xf32>
      %c0_14 = arith.constant 0 : index
      %c0_15 = arith.constant 0 : index
      %16 = vector.load %arg6[%c0_14, %c0_15] : memref<1x128xf32, #tpu.memory_space<vmem>>, vector<1x128xf32>
      %17 = vector.broadcast %16 : vector<1x128xf32> to vector<128x128xf32>
      %18 = arith.mulf %15, %17 : vector<128x128xf32>
      %c0_16 = arith.constant 0 : index
      %c0_17 = arith.constant 0 : index
      %19 = vector.load %arg7[%c0_16, %c0_17] : memref<1x128xf32, #tpu.memory_space<vmem>>, vector<1x128xf32>
      %20 = vector.broadcast %19 : vector<1x128xf32> to vector<128x128xf32>
      %21 = arith.addf %18, %20 : vector<128x128xf32>
      %c0_18 = arith.constant 0 : index
      %c0_19 = arith.constant 0 : index
      %22 = vector.load %arg8[%c0_18, %c0_19] : memref<128x128xf32, #tpu.memory_space<vmem>>, vector<128x128xf32>
      tpu.vector_store %arg8[%c0_18, %c0_19], %21 {strides = array<i32>} : memref<128x128xf32, #tpu.memory_space<vmem>>, vector<128x128xf32>,
    } else {
    }
    return
  }
  func.func @transform_0(%arg0: i32, %arg1: i32, %arg2: i32) -> (i32, i32) {
    %c0_i32 = arith.constant 0 : i32
    return %arg0, %arg2 : i32, i32
  }
  func.func @transform_1(%arg0: i32, %arg1: i32, %arg2: i32) -> (i32, i32) {
    %c0_i32 = arith.constant 0 : i32
    return %arg2, %arg1 : i32, i32
  }
  func.func @transform_2(%arg0: i32, %arg1: i32, %arg2: i32) -> (i32, i32) {
    %c0_i32 = arith.constant 0 : i32
    %c0_i32_0 = arith.constant 0 : i32
    return %c0_i32, %arg1 : i32, i32
  }
  func.func @transform_3(%arg0: i32, %arg1: i32, %arg2: i32) -> (i32, i32) {
    %c0_i32 = arith.constant 0 : i32
    %c0_i32_0 = arith.constant 0 : i32
    return %c0_i32, %arg1 : i32, i32
  }
  func.func @transform_4(%arg0: i32, %arg1: i32, %arg2: i32) -> (i32, i32) {
    %c0_i32 = arith.constant 0 : i32
    %c0_i32_0 = arith.constant 0 : i32
    return %c0_i32, %arg1 : i32, i32
  }
  func.func @transform_5(%arg0: i32, %arg1: i32, %arg2: i32) -> (i32, i32) {
    %c0_i32 = arith.constant 0 : i32
    return %arg0, %arg1 : i32, i32
  }
}

module attributes {stable_mosaic.version = 11 : i64} {
  func.func @_dense_kernel(%arg0: i32, %arg1: i32, %arg2: i32, %arg3: memref<128x128xbf16, #tpu.memory_space<vmem>>, %arg4: memref<128x128xbf16, #tpu.memory_space<vmem>>, %arg5: memref<1x128xf32, #tpu.memory_space<vmem>>, %arg6: memref<1x128xf32, #tpu.memory_space<vmem>>, %arg7: memref<1x128xf32, #tpu.memory_space<vmem>>, %arg8: memref<128x128xbf16, #tpu.memory_space<vmem>>, %arg9: memref<128x128xf32, #tpu.memory_space<vmem>>) attributes {dimension_semantics = [#tpu.dimension_semantics<parallel>, #tpu.dimension_semantics<parallel>, #tpu.dimension_semantics<arbitrary>], iteration_bounds = array<i64: 1, 1, 1>, scalar_prefetch = 0 : i64, scratch_operands = 1 : i64, tpu.core_type = #tpu.core_type<tc>, window_params = [{transform_indices = @transform_0, window_bounds = array<i64: 128, 128>}, {transform_indices = @transform_1, window_bounds = array<i64: 128, 128>}, {transform_indices = @transform_2, window_bounds = array<i64: 1, 128>}, {transform_indices = @transform_3, window_bounds = array<i64: 1, 128>}, {transform_indices = @transform_4, window_bounds = array<i64: 1, 128>}, {transform_indices = @transform_5, window_bounds = array<i64: 128, 128>}]} {
    %c0_i32 = arith.constant 0 : i32
    %0 = arith.cmpi eq, %arg2, %c0_i32 : i32
    %1 = arith.extui %0 : i1 to i32
    %c0_i32_0 = arith.constant 0 : i32
    %2 = arith.cmpi ne, %1, %c0_i32_0 : i32
    scf.if %2 {
      %cst_10 = arith.constant 0.000000e+00 : f32
      %12 = vector.broadcast %cst_10 : f32 to vector<128x128xf32>
      %c0_11 = arith.constant 0 : index
      %c0_12 = arith.constant 0 : index
      %13 = vector.load %arg9[%c0_11, %c0_12] : memref<128x128xf32, #tpu.memory_space<vmem>>, vector<128x128xf32>
      tpu.vector_store %arg9[%c0_11, %c0_12], %12 {strides = array<i32>} : memref<128x128xf32, #tpu.memory_space<vmem>>, vector<128x128xf32>,
    } else {
    }
    %c0 = arith.constant 0 : index
    %c0_1 = arith.constant 0 : index
    %3 = vector.load %arg9[%c0, %c0_1] : memref<128x128xf32, #tpu.memory_space<vmem>>, vector<128x128xf32>
    %c0_2 = arith.constant 0 : index
    %c0_3 = arith.constant 0 : index
    %4 = vector.load %arg3[%c0_2, %c0_3] : memref<128x128xbf16, #tpu.memory_space<vmem>>, vector<128x128xbf16>
    %c0_4 = arith.constant 0 : index
    %c0_5 = arith.constant 0 : index
    %5 = vector.load %arg4[%c0_4, %c0_5] : memref<128x128xbf16, #tpu.memory_space<vmem>>, vector<128x128xbf16>
    %cst = arith.constant dense<0.000000e+00> : vector<128x128xf32>
    %6 = tpu.matmul %4, %5, %cst {dimension_numbers = #tpu.dot_dimension_numbers<[1], [0], [0], [1], [0, 0, 1, 1], [], []>} : vector<128x128xbf16>, vector<128x128xbf16>, vector<128x128xf32> -> vector<128x128xf32>
    %7 = arith.addf %3, %6 : vector<128x128xf32>
    %c0_6 = arith.constant 0 : index
    %c0_7 = arith.constant 0 : index
    %8 = vector.load %arg9[%c0_6, %c0_7] : memref<128x128xf32, #tpu.memory_space<vmem>>, vector<128x128xf32>
    tpu.vector_store %arg9[%c0_6, %c0_7], %7 {strides = array<i32>} : memref<128x128xf32, #tpu.memory_space<vmem>>, vector<128x128xf32>,
    %c0_i32_8 = arith.constant 0 : i32
    %9 = arith.cmpi eq, %arg2, %c0_i32_8 : i32
    %10 = arith.extui %9 : i1 to i32
    %c0_i32_9 = arith.constant 0 : i32
    %11 = arith.cmpi ne, %10, %c0_i32_9 : i32
    scf.if %11 {
      %c0_10 = arith.constant 0 : index
      %c0_11 = arith.constant 0 : index
      %12 = vector.load %arg9[%c0_10, %c0_11] : memref<128x128xf32, #tpu.memory_space<vmem>>, vector<128x128xf32>
      %c0_12 = arith.constant 0 : index
      %c0_13 = arith.constant 0 : index
      %13 = vector.load %arg5[%c0_12, %c0_13] : memref<1x128xf32, #tpu.memory_space<vmem>>, vector<1x128xf32>
      %14 = vector.broadcast %13 : vector<1x128xf32> to vector<128x128xf32>
      %15 = arith.addf %12, %14 : vector<128x128xf32>
      %c0_14 = arith.constant 0 : index
      %c0_15 = arith.constant 0 : index
      %16 = vector.load %arg6[%c0_14, %c0_15] : memref<1x128xf32, #tpu.memory_space<vmem>>, vector<1x128xf32>
      %17 = vector.broadcast %16 : vector<1x128xf32> to vector<128x128xf32>
      %18 = arith.mulf %15, %17 : vector<128x128xf32>
      %c0_16 = arith.constant 0 : index
      %c0_17 = arith.constant 0 : index
      %19 = vector.load %arg7[%c0_16, %c0_17] : memref<1x128xf32, #tpu.memory_space<vmem>>, vector<1x128xf32>
      %20 = vector.broadcast %19 : vector<1x128xf32> to vector<128x128xf32>
      %21 = arith.addf %18, %20 : vector<128x128xf32>
      %22 = arith.truncf %21 : vector<128x128xf32> to vector<128x128xbf16>
      %c0_18 = arith.constant 0 : index
      %c0_19 = arith.constant 0 : index
      %23 = vector.load %arg8[%c0_18, %c0_19] : memref<128x128xbf16, #tpu.memory_space<vmem>>, vector<128x128xbf16>
      tpu.vector_store %arg8[%c0_18, %c0_19], %22 {strides = array<i32>} : memref<128x128xbf16, #tpu.memory_space<vmem>>, vector<128x128xbf16>,
    } else {
    }
    return
  }
  func.func @transform_0(%arg0: i32, %arg1: i32, %arg2: i32) -> (i32, i32) {
    %c0_i32 = arith.constant 0 : i32
    return %arg0, %arg2 : i32, i32
  }
  func.func @transform_1(%arg0: i32, %arg1: i32, %arg2: i32) -> (i32, i32) {
    %c0_i32 = arith.constant 0 : i32
    return %arg2, %arg1 : i32, i32
  }
  func.func @transform_2(%arg0: i32, %arg1: i32, %arg2: i32) -> (i32, i32) {
    %c0_i32 = arith.constant 0 : i32
    %c0_i32_0 = arith.constant 0 : i32
    return %c0_i32, %arg1 : i32, i32
  }
  func.func @transform_3(%arg0: i32, %arg1: i32, %arg2: i32) -> (i32, i32) {
    %c0_i32 = arith.constant 0 : i32
    %c0_i32_0 = arith.constant 0 : i32
    return %c0_i32, %arg1 : i32, i32
  }
  func.func @transform_4(%arg0: i32, %arg1: i32, %arg2: i32) -> (i32, i32) {
    %c0_i32 = arith.constant 0 : i32
    %c0_i32_0 = arith.constant 0 : i32
    return %c0_i32, %arg1 : i32, i32
  }
  func.func @transform_5(%arg0: i32, %arg1: i32, %arg2: i32) -> (i32, i32) {
    %c0_i32 = arith.constant 0 : i32
    return %arg0, %arg1 : i32, i32
  }
}

module attributes {stable_mosaic.version = 11 : i64} {
  func.func @_conv_kernel(%arg0: i32, %arg1: i32, %arg2: memref<1x32x96xbf16, #tpu.memory_space<vmem>>, %arg3: memref<1x96x128xbf16, #tpu.memory_space<vmem>>, %arg4: memref<1x128xf32, #tpu.memory_space<vmem>>, %arg5: memref<1x1x128xf32, #tpu.memory_space<vmem>>, %arg6: memref<1x128xf32, #tpu.memory_space<vmem>>, %arg7: memref<1x128xf32, #tpu.memory_space<vmem>>, %arg8: memref<1x32x128xbf16, #tpu.memory_space<vmem>>) attributes {dimension_semantics = [#tpu.dimension_semantics<parallel>, #tpu.dimension_semantics<parallel>], iteration_bounds = array<i64: 2, 1>, scalar_prefetch = 0 : i64, scratch_operands = 0 : i64, tpu.core_type = #tpu.core_type<tc>, window_params = [{transform_indices = @transform_0, window_bounds = array<i64: 1, 32, 96>}, {transform_indices = @transform_1, window_bounds = array<i64: 1, 96, 128>}, {transform_indices = @transform_2, window_bounds = array<i64: 1, 128>}, {transform_indices = @transform_3, window_bounds = array<i64: 1, 1, 128>}, {transform_indices = @transform_4, window_bounds = array<i64: 1, 128>}, {transform_indices = @transform_5, window_bounds = array<i64: 1, 128>}, {transform_indices = @transform_6, window_bounds = array<i64: 1, 32, 128>}]} {
    %c0 = arith.constant 0 : index
    %c0_0 = arith.constant 0 : index
    %c0_1 = arith.constant 0 : index
    %0 = vector.load %arg2[%c0, %c0_0, %c0_1] : memref<1x32x96xbf16, #tpu.memory_space<vmem>>, vector<1x32x96xbf16>
    %1 = vector.shape_cast %0 : vector<1x32x96xbf16> to vector<32x96xbf16>
    %c0_2 = arith.constant 0 : index
    %c0_3 = arith.constant 0 : index
    %c0_4 = arith.constant 0 : index
    %2 = vector.load %arg3[%c0_2, %c0_3, %c0_4] : memref<1x96x128xbf16, #tpu.memory_space<vmem>>, vector<1x96x128xbf16>
    %3 = vector.shape_cast %2 : vector<1x96x128xbf16> to vector<96x128xbf16>
    %cst = arith.constant dense<0.000000e+00> : vector<32x128xf32>
    %4 = tpu.matmul %1, %3, %cst {dimension_numbers = #tpu.dot_dimension_numbers<[1], [0], [0], [1], [0, 0, 1, 1], [], []>} : vector<32x96xbf16>, vector<96x128xbf16>, vector<32x128xf32> -> vector<32x128xf32>
    %c0_5 = arith.constant 0 : index
    %c0_6 = arith.constant 0 : index
    %5 = vector.load %arg4[%c0_5, %c0_6] : memref<1x128xf32, #tpu.memory_space<vmem>>, vector<1x128xf32>
    %6 = vector.broadcast %5 : vector<1x128xf32> to vector<32x128xf32>
    %7 = arith.addf %4, %6 : vector<32x128xf32>
    %c0_7 = arith.constant 0 : index
    %c0_8 = arith.constant 0 : index
    %c0_9 = arith.constant 0 : index
    %8 = vector.load %arg5[%c0_7, %c0_8, %c0_9] : memref<1x1x128xf32, #tpu.memory_space<vmem>>, vector<1x1x128xf32>
    %9 = vector.shape_cast %8 : vector<1x1x128xf32> to vector<1x128xf32>
    %10 = vector.broadcast %9 : vector<1x128xf32> to vector<32x128xf32>
    %11 = arith.addf %7, %10 : vector<32x128xf32>
    %cst_10 = arith.constant 0.000000e+00 : f32
    %12 = vector.broadcast %cst_10 : f32 to vector<32x128xf32>
    %13 = arith.maximumf %11, %12 : vector<32x128xf32>
    %c0_11 = arith.constant 0 : index
    %c0_12 = arith.constant 0 : index
    %14 = vector.load %arg6[%c0_11, %c0_12] : memref<1x128xf32, #tpu.memory_space<vmem>>, vector<1x128xf32>
    %15 = vector.broadcast %14 : vector<1x128xf32> to vector<32x128xf32>
    %16 = arith.mulf %13, %15 : vector<32x128xf32>
    %c0_13 = arith.constant 0 : index
    %c0_14 = arith.constant 0 : index
    %17 = vector.load %arg7[%c0_13, %c0_14] : memref<1x128xf32, #tpu.memory_space<vmem>>, vector<1x128xf32>
    %18 = vector.broadcast %17 : vector<1x128xf32> to vector<32x128xf32>
    %19 = arith.addf %16, %18 : vector<32x128xf32>
    %20 = math.tanh %19 : vector<32x128xf32>
    %21 = arith.truncf %20 : vector<32x128xf32> to vector<32x128xbf16>
    %c0_15 = arith.constant 0 : index
    %c0_16 = arith.constant 0 : index
    %c0_17 = arith.constant 0 : index
    %22 = vector.load %arg8[%c0_15, %c0_16, %c0_17] : memref<1x32x128xbf16, #tpu.memory_space<vmem>>, vector<1x32x128xbf16>
    %23 = vector.shape_cast %22 : vector<1x32x128xbf16> to vector<32x128xbf16>
    %24 = vector.shape_cast %21 : vector<32x128xbf16> to vector<1x32x128xbf16>
    tpu.vector_store %arg8[%c0_15, %c0_16, %c0_17], %24 {strides = array<i32>} : memref<1x32x128xbf16, #tpu.memory_space<vmem>>, vector<1x32x128xbf16>,
    return
  }
  func.func @transform_0(%arg0: i32, %arg1: i32) -> (i32, i32, i32) {
    %c0_i32 = arith.constant 0 : i32
    %c0_i32_0 = arith.constant 0 : i32
    %c0_i32_1 = arith.constant 0 : i32
    return %arg0, %c0_i32, %c0_i32_0 : i32, i32, i32
  }
  func.func @transform_1(%arg0: i32, %arg1: i32) -> (i32, i32, i32) {
    %c0_i32 = arith.constant 0 : i32
    %c0_i32_0 = arith.constant 0 : i32
    %c0_i32_1 = arith.constant 0 : i32
    return %c0_i32, %c0_i32_0, %arg1 : i32, i32, i32
  }
  func.func @transform_2(%arg0: i32, %arg1: i32) -> (i32, i32) {
    %c0_i32 = arith.constant 0 : i32
    %c0_i32_0 = arith.constant 0 : i32
    return %c0_i32, %arg1 : i32, i32
  }
  func.func @transform_3(%arg0: i32, %arg1: i32) -> (i32, i32, i32) {
    %c0_i32 = arith.constant 0 : i32
    %c0_i32_0 = arith.constant 0 : i32
    return %arg0, %c0_i32, %arg1 : i32, i32, i32
  }
  func.func @transform_4(%arg0: i32, %arg1: i32) -> (i32, i32) {
    %c0_i32 = arith.constant 0 : i32
    %c0_i32_0 = arith.constant 0 : i32
    return %c0_i32, %arg1 : i32, i32
  }
  func.func @transform_5(%arg0: i32, %arg1: i32) -> (i32, i32) {
    %c0_i32 = arith.constant 0 : i32
    %c0_i32_0 = arith.constant 0 : i32
    return %c0_i32, %arg1 : i32, i32
  }
  func.func @transform_6(%arg0: i32, %arg1: i32) -> (i32, i32, i32) {
    %c0_i32 = arith.constant 0 : i32
    %c0_i32_0 = arith.constant 0 : i32
    return %arg0, %c0_i32, %arg1 : i32, i32, i32
  }
}

module attributes {stable_mosaic.version = 11 : i64} {
  func.func @_softmax_wstats_kernel(%arg0: i32, %arg1: memref<1x32x96xbf16, #tpu.memory_space<vmem>>, %arg2: memref<1x32x96xbf16, #tpu.memory_space<vmem>>, %arg3: memref<1x1x96xf32, #tpu.memory_space<vmem>>, %arg4: memref<1x1x96xf32, #tpu.memory_space<vmem>>) attributes {dimension_semantics = [#tpu.dimension_semantics<parallel>], iteration_bounds = array<i64: 2>, scalar_prefetch = 0 : i64, scratch_operands = 0 : i64, tpu.core_type = #tpu.core_type<tc>, window_params = [{transform_indices = @transform_0, window_bounds = array<i64: 1, 32, 96>}, {transform_indices = @transform_1, window_bounds = array<i64: 1, 32, 96>}, {transform_indices = @transform_2, window_bounds = array<i64: 1, 1, 96>}, {transform_indices = @transform_3, window_bounds = array<i64: 1, 1, 96>}]} {
    %c0 = arith.constant 0 : index
    %c0_0 = arith.constant 0 : index
    %c0_1 = arith.constant 0 : index
    %0 = vector.load %arg1[%c0, %c0_0, %c0_1] : memref<1x32x96xbf16, #tpu.memory_space<vmem>>, vector<1x32x96xbf16>
    %1 = vector.shape_cast %0 : vector<1x32x96xbf16> to vector<32x96xbf16>
    %2 = arith.extf %1 : vector<32x96xbf16> to vector<32x96xf32>
    %c0_2 = arith.constant 0 : index
    %c0_3 = arith.constant 0 : index
    %c0_4 = arith.constant 0 : index
    %3 = vector.load %arg2[%c0_2, %c0_3, %c0_4] : memref<1x32x96xbf16, #tpu.memory_space<vmem>>, vector<1x32x96xbf16>
    %4 = vector.shape_cast %3 : vector<1x32x96xbf16> to vector<32x96xbf16>
    %5 = arith.extf %4 : vector<32x96xbf16> to vector<32x96xf32>
    %cst = arith.constant dense<0xFF800000> : vector<96xf32>
    %6 = vector.multi_reduction <maximumf>, %2, %cst [0] : vector<32x96xf32> to vector<96xf32>
    %7 = vector.shape_cast %6 : vector<96xf32> to vector<1x96xf32>
    %8 = vector.broadcast %7 : vector<1x96xf32> to vector<32x96xf32>
    %9 = arith.subf %2, %8 : vector<32x96xf32>
    %10 = math.exp %9 : vector<32x96xf32>
    %cst_5 = arith.constant dense<0.000000e+00> : vector<96xf32>
    %11 = vector.multi_reduction <add>, %10, %cst_5 [0] : vector<32x96xf32> to vector<96xf32>
    %12 = vector.shape_cast %11 : vector<96xf32> to vector<1x96xf32>
    %13 = tpu.reciprocal %12 {approx = true} : vector<1x96xf32> -> vector<1x96xf32>
    %14 = vector.broadcast %13 : vector<1x96xf32> to vector<32x96xf32>
    %15 = arith.mulf %10, %14 : vector<32x96xf32>
    %16 = arith.mulf %15, %5 : vector<32x96xf32>
    %cst_6 = arith.constant dense<0.000000e+00> : vector<96xf32>
    %17 = vector.multi_reduction <add>, %16, %cst_6 [0] : vector<32x96xf32> to vector<96xf32>
    %18 = vector.shape_cast %17 : vector<96xf32> to vector<1x96xf32>
    %19 = vector.broadcast %18 : vector<1x96xf32> to vector<32x96xf32>
    %20 = arith.subf %5, %19 : vector<32x96xf32>
    %21 = arith.mulf %20, %20 : vector<32x96xf32>
    %22 = arith.mulf %15, %21 : vector<32x96xf32>
    %cst_7 = arith.constant dense<0.000000e+00> : vector<96xf32>
    %23 = vector.multi_reduction <add>, %22, %cst_7 [0] : vector<32x96xf32> to vector<96xf32>
    %24 = vector.shape_cast %23 : vector<96xf32> to vector<1x96xf32>
    %c0_8 = arith.constant 0 : index
    %c0_9 = arith.constant 0 : index
    %c0_10 = arith.constant 0 : index
    %25 = vector.load %arg3[%c0_8, %c0_9, %c0_10] : memref<1x1x96xf32, #tpu.memory_space<vmem>>, vector<1x1x96xf32>
    %26 = vector.shape_cast %25 : vector<1x1x96xf32> to vector<1x96xf32>
    %27 = vector.shape_cast %18 : vector<1x96xf32> to vector<1x1x96xf32>
    tpu.vector_store %arg3[%c0_8, %c0_9, %c0_10], %27 {strides = array<i32>} : memref<1x1x96xf32, #tpu.memory_space<vmem>>, vector<1x1x96xf32>,
    %cst_11 = arith.constant 9.99999996E-13 : f32
    %28 = vector.broadcast %cst_11 : f32 to vector<1x96xf32>
    %29 = arith.maximumf %24, %28 : vector<1x96xf32>
    %30 = math.sqrt %29 : vector<1x96xf32>
    %c0_12 = arith.constant 0 : index
    %c0_13 = arith.constant 0 : index
    %c0_14 = arith.constant 0 : index
    %31 = vector.load %arg4[%c0_12, %c0_13, %c0_14] : memref<1x1x96xf32, #tpu.memory_space<vmem>>, vector<1x1x96xf32>
    %32 = vector.shape_cast %31 : vector<1x1x96xf32> to vector<1x96xf32>
    %33 = vector.shape_cast %30 : vector<1x96xf32> to vector<1x1x96xf32>
    tpu.vector_store %arg4[%c0_12, %c0_13, %c0_14], %33 {strides = array<i32>} : memref<1x1x96xf32, #tpu.memory_space<vmem>>, vector<1x1x96xf32>,
    return
  }
  func.func @transform_0(%arg0: i32) -> (i32, i32, i32) {
    %c0_i32 = arith.constant 0 : i32
    %c0_i32_0 = arith.constant 0 : i32
    %c0_i32_1 = arith.constant 0 : i32
    return %arg0, %c0_i32, %c0_i32_0 : i32, i32, i32
  }
  func.func @transform_1(%arg0: i32) -> (i32, i32, i32) {
    %c0_i32 = arith.constant 0 : i32
    %c0_i32_0 = arith.constant 0 : i32
    %c0_i32_1 = arith.constant 0 : i32
    return %arg0, %c0_i32, %c0_i32_0 : i32, i32, i32
  }
  func.func @transform_2(%arg0: i32) -> (i32, i32, i32) {
    %c0_i32 = arith.constant 0 : i32
    %c0_i32_0 = arith.constant 0 : i32
    %c0_i32_1 = arith.constant 0 : i32
    return %arg0, %c0_i32, %c0_i32_0 : i32, i32, i32
  }
  func.func @transform_3(%arg0: i32) -> (i32, i32, i32) {
    %c0_i32 = arith.constant 0 : i32
    %c0_i32_0 = arith.constant 0 : i32
    %c0_i32_1 = arith.constant 0 : i32
    return %arg0, %c0_i32, %c0_i32_0 : i32, i32, i32
  }
}

module attributes {stable_mosaic.version = 11 : i64} {
  func.func @_dense_kernel(%arg0: i32, %arg1: i32, %arg2: i32, %arg3: memref<128x256xf32, #tpu.memory_space<vmem>>, %arg4: memref<256x128xf32, #tpu.memory_space<vmem>>, %arg5: memref<1x128xf32, #tpu.memory_space<vmem>>, %arg6: memref<1x128xf32, #tpu.memory_space<vmem>>, %arg7: memref<1x128xf32, #tpu.memory_space<vmem>>, %arg8: memref<128x128xf32, #tpu.memory_space<vmem>>, %arg9: memref<128x128xf32, #tpu.memory_space<vmem>>) attributes {dimension_semantics = [#tpu.dimension_semantics<parallel>, #tpu.dimension_semantics<parallel>, #tpu.dimension_semantics<arbitrary>], iteration_bounds = array<i64: 1, 1, 1>, scalar_prefetch = 0 : i64, scratch_operands = 1 : i64, tpu.core_type = #tpu.core_type<tc>, window_params = [{transform_indices = @transform_0, window_bounds = array<i64: 128, 256>}, {transform_indices = @transform_1, window_bounds = array<i64: 256, 128>}, {transform_indices = @transform_2, window_bounds = array<i64: 1, 128>}, {transform_indices = @transform_3, window_bounds = array<i64: 1, 128>}, {transform_indices = @transform_4, window_bounds = array<i64: 1, 128>}, {transform_indices = @transform_5, window_bounds = array<i64: 128, 128>}]} {
    %c0_i32 = arith.constant 0 : i32
    %0 = arith.cmpi eq, %arg2, %c0_i32 : i32
    %1 = arith.extui %0 : i1 to i32
    %c0_i32_0 = arith.constant 0 : i32
    %2 = arith.cmpi ne, %1, %c0_i32_0 : i32
    scf.if %2 {
      %cst_10 = arith.constant 0.000000e+00 : f32
      %12 = vector.broadcast %cst_10 : f32 to vector<128x128xf32>
      %c0_11 = arith.constant 0 : index
      %c0_12 = arith.constant 0 : index
      %13 = vector.load %arg9[%c0_11, %c0_12] : memref<128x128xf32, #tpu.memory_space<vmem>>, vector<128x128xf32>
      tpu.vector_store %arg9[%c0_11, %c0_12], %12 {strides = array<i32>} : memref<128x128xf32, #tpu.memory_space<vmem>>, vector<128x128xf32>,
    } else {
    }
    %c0 = arith.constant 0 : index
    %c0_1 = arith.constant 0 : index
    %3 = vector.load %arg9[%c0, %c0_1] : memref<128x128xf32, #tpu.memory_space<vmem>>, vector<128x128xf32>
    %c0_2 = arith.constant 0 : index
    %c0_3 = arith.constant 0 : index
    %4 = vector.load %arg3[%c0_2, %c0_3] : memref<128x256xf32, #tpu.memory_space<vmem>>, vector<128x256xf32>
    %c0_4 = arith.constant 0 : index
    %c0_5 = arith.constant 0 : index
    %5 = vector.load %arg4[%c0_4, %c0_5] : memref<256x128xf32, #tpu.memory_space<vmem>>, vector<256x128xf32>
    %cst = arith.constant dense<0.000000e+00> : vector<128x128xf32>
    %6 = tpu.matmul %4, %5, %cst {dimension_numbers = #tpu.dot_dimension_numbers<[1], [0], [0], [1], [0, 0, 1, 1], [], []>} : vector<128x256xf32>, vector<256x128xf32>, vector<128x128xf32> -> vector<128x128xf32>
    %7 = arith.addf %3, %6 : vector<128x128xf32>
    %c0_6 = arith.constant 0 : index
    %c0_7 = arith.constant 0 : index
    %8 = vector.load %arg9[%c0_6, %c0_7] : memref<128x128xf32, #tpu.memory_space<vmem>>, vector<128x128xf32>
    tpu.vector_store %arg9[%c0_6, %c0_7], %7 {strides = array<i32>} : memref<128x128xf32, #tpu.memory_space<vmem>>, vector<128x128xf32>,
    %c0_i32_8 = arith.constant 0 : i32
    %9 = arith.cmpi eq, %arg2, %c0_i32_8 : i32
    %10 = arith.extui %9 : i1 to i32
    %c0_i32_9 = arith.constant 0 : i32
    %11 = arith.cmpi ne, %10, %c0_i32_9 : i32
    scf.if %11 {
      %c0_10 = arith.constant 0 : index
      %c0_11 = arith.constant 0 : index
      %12 = vector.load %arg9[%c0_10, %c0_11] : memref<128x128xf32, #tpu.memory_space<vmem>>, vector<128x128xf32>
      %c0_12 = arith.constant 0 : index
      %c0_13 = arith.constant 0 : index
      %13 = vector.load %arg5[%c0_12, %c0_13] : memref<1x128xf32, #tpu.memory_space<vmem>>, vector<1x128xf32>
      %14 = vector.broadcast %13 : vector<1x128xf32> to vector<128x128xf32>
      %15 = arith.addf %12, %14 : vector<128x128xf32>
      %c0_14 = arith.constant 0 : index
      %c0_15 = arith.constant 0 : index
      %16 = vector.load %arg6[%c0_14, %c0_15] : memref<1x128xf32, #tpu.memory_space<vmem>>, vector<1x128xf32>
      %17 = vector.broadcast %16 : vector<1x128xf32> to vector<128x128xf32>
      %18 = arith.mulf %15, %17 : vector<128x128xf32>
      %c0_16 = arith.constant 0 : index
      %c0_17 = arith.constant 0 : index
      %19 = vector.load %arg7[%c0_16, %c0_17] : memref<1x128xf32, #tpu.memory_space<vmem>>, vector<1x128xf32>
      %20 = vector.broadcast %19 : vector<1x128xf32> to vector<128x128xf32>
      %21 = arith.addf %18, %20 : vector<128x128xf32>
      %c0_18 = arith.constant 0 : index
      %c0_19 = arith.constant 0 : index
      %22 = vector.load %arg8[%c0_18, %c0_19] : memref<128x128xf32, #tpu.memory_space<vmem>>, vector<128x128xf32>
      tpu.vector_store %arg8[%c0_18, %c0_19], %21 {strides = array<i32>} : memref<128x128xf32, #tpu.memory_space<vmem>>, vector<128x128xf32>,
    } else {
    }
    return
  }
  func.func @transform_0(%arg0: i32, %arg1: i32, %arg2: i32) -> (i32, i32) {
    %c0_i32 = arith.constant 0 : i32
    return %arg0, %arg2 : i32, i32
  }
  func.func @transform_1(%arg0: i32, %arg1: i32, %arg2: i32) -> (i32, i32) {
    %c0_i32 = arith.constant 0 : i32
    return %arg2, %arg1 : i32, i32
  }
  func.func @transform_2(%arg0: i32, %arg1: i32, %arg2: i32) -> (i32, i32) {
    %c0_i32 = arith.constant 0 : i32
    %c0_i32_0 = arith.constant 0 : i32
    return %c0_i32, %arg1 : i32, i32
  }
  func.func @transform_3(%arg0: i32, %arg1: i32, %arg2: i32) -> (i32, i32) {
    %c0_i32 = arith.constant 0 : i32
    %c0_i32_0 = arith.constant 0 : i32
    return %c0_i32, %arg1 : i32, i32
  }
  func.func @transform_4(%arg0: i32, %arg1: i32, %arg2: i32) -> (i32, i32) {
    %c0_i32 = arith.constant 0 : i32
    %c0_i32_0 = arith.constant 0 : i32
    return %c0_i32, %arg1 : i32, i32
  }
  func.func @transform_5(%arg0: i32, %arg1: i32, %arg2: i32) -> (i32, i32) {
    %c0_i32 = arith.constant 0 : i32
    return %arg0, %arg1 : i32, i32
  }
}

</mosaic_0001>

<bundles_post_ra>
// kernel: _lambda_.36
= control target key start
LH: loop header
LB: loop body
LE: loop exit
PB: predicated region body
PF: predicated region fallthrough
CT: control target
= control target key end

     0   :  { %s263_s6 = smov 0   ;;  %s280_s0 = inlined_call_operand.vmem [shape: f32[2,32,16], index: 0, kind: input, shape index: {}]   ;;  %s281_s1 = inlined_call_operand.vmem [shape: bf16[2,32,16], index: 1, kind: output, shape index: {}]  }
   0x1 LB: > { %s216_s7 = sadd.s32 4294967295, %s251_s6   ;;  %p220_p0 = scmp.ge.s32.totalorder %s251_s6, 1  ;;  %s251_s6 = sphi %s263_s6, %s11_s6  }
   0x2   : > { %p87_p1 = scmp.lt.s32.totalorder %s251_s6, 3 }
   0x4   : > { %p88_p2 = pnand %p220_p0, %p87_p1 }
   0x5   : > { %p107_p3 = scmp.lt.s32.totalorder (!%p88_p2), %s216_s7, 1  ;;  %vm121_vm0 = vcmask (!%p88_p2), 130048   ;;  %vm156_vm1 = vcmask (!%p88_p2), 125952  }
   0x6   : > { %91 = sbr.rel (%p88_p2) target bundleno = 44 (0x2c), region = 24 }
   0xd   : > { %s283_s7 = smov (!%p107_p3, %s216_s7), 1 }
   0xe   : > { %s231_s8 = sshll.u32 %s283_s7, 5  ;;  %s232_s12 = sshll.u32 %s283_s7, 4 }
   0xf   : > { %s111_s11 = scalar_lea.vmem %s280_s0, %s231_s8  ;;  %s116_s15 = scalar_lea.vmem %s281_s1, %s232_s12 }
  0x10   : > { %v117_v0 = vld [vmem:[%s111_s11] sm:$0xff]  ;;  %v118_v1 = vld [vmem:[%s111_s11 + $0x8] sm:$0xff]  ;;  %v119_v2 = vld [vmem:[%s111_s11 + $0x10] sm:$0xff] }
  0x11   : > { %v120_v3 = vld [vmem:[%s111_s11 + $0x18] sm:$0xff]  ;;  %v122_v4 = vsel %vm121_vm0, %v117_v0, 0.0  ;;  %v123_v5 = vsel %vm121_vm0, %v118_v1, 0.0  ;;  %v125_v6 = vsel %vm121_vm0, %v119_v2, 0.0 }
  0x12   : > { %v124_v7 = vadd.f32 %v123_v5, %v122_v4  ;;  %v127_v8 = vsel %vm121_vm0, %v120_v3, 0.0 }
  0x14   : > { %v126_v9 = vadd.f32 %v125_v6, %v124_v7 }
  0x16   : > { %v128_v10 = vadd.f32 %v127_v8, %v126_v9 }
  0x18   : > { %v129_v11 = vrot.slane %v128_v10, 4 }
  0x1a   : > { %v130_v12 = vadd.f32 %v129_v11, %v128_v10 }
  0x1c   : > { %v131_v13 = vrot.slane %v130_v12, 2 }
  0x1e   : > { %v132_v14 = vadd.f32 %v131_v13, %v130_v12 }
  0x20   : > { %v133_v15 = vrot.slane %v132_v14, 1 }
  0x22   : > { %v134_v16 = vadd.f32 %v133_v15, %v132_v14 }
  0x24   : > { %v135_v17 = vmul.f32 0.03125, %v134_v16 }
  0x26   : > { %v136_v18 = vsub.f32 %v117_v0, %v135_v17  ;;  %v137_v19 = vsub.f32 %v118_v1, %v135_v17  ;;  %v138_v20 = vsub.f32 %v119_v2, %v135_v17  ;;  %v139_v21 = vsub.f32 %v120_v3, %v135_v17 }
  0x28   : > { %v233_v22 = vpack.c.bf16 %v136_v18, %v136_v18  ;;  %v234_v23 = vpack.c.bf16 %v137_v19, %v137_v19  ;;  %v235_v24 = vpack.c.bf16 %v138_v20, %v138_v20  ;;  %v236_v25 = vpack.c.bf16 %v139_v21, %v139_v21 }
  0x2a   : > { %157 = vst.msk [vmem:[%s116_s15] sm:$0xf] %vm156_vm1, %v233_v22  ;;  %158 = vst.msk [vmem:[%s116_s15 + $0x4] sm:$0xf] %vm156_vm1, %v234_v23 }
  0x2b   : > { %159 = vst.msk [vmem:[%s116_s15 + $0x8] sm:$0xf] %vm156_vm1, %v235_v24  ;;  %160 = vst.msk [vmem:[%s116_s15 + $0xc] sm:$0xf] %vm156_vm1, %v236_v25 }
  0x2c PF: > { %s11_s6 = sadd.s32 1, %s251_s6  }
  0x2d   : > { %p8_p4 = scmp.ge.s32.totalorder %s11_s6, 4  }
  0x2f   :  { %10 = sbr.rel (!%p8_p4) target bundleno = 1 (0x1), region = 54 }

// kernel: _lambda_.37
= control target key start
LH: loop header
LB: loop body
LE: loop exit
PB: predicated region body
PF: predicated region fallthrough
CT: control target
= control target key end

     0   :  { %s1178_s21 = smov 0   ;;  %s1180_s22 = smov 0   ;;  %s1259_s0 = inlined_call_operand.vmem [shape: bf16[2,36,16], index: 0, kind: input, shape index: {}]   ;;  %s1260_s1 = inlined_call_operand.vmem [shape: bf16[5,16,128], index: 1, kind: input, shape index: {}]   ;;  %s1261_s2 = inlined_call_operand.vmem [shape: f32[1,128], index: 2, kind: input, shape index: {}]   ;;  %s1262_s3 = inlined_call_operand.vmem [shape: f32[2,1,128], index: 3, kind: input, shape index: {}]   ;;  %s1263_s4 = inlined_call_operand.vmem [shape: f32[1,128], index: 4, kind: input, shape index: {}]   ;;  %s1264_s5 = inlined_call_operand.vmem [shape: f32[1,128], index: 5, kind: input, shape index: {}]   ;;  %s1265_s6 = inlined_call_operand.vmem [shape: bf16[2,32,128], index: 6, kind: output, shape index: {}]  }
   0x1   :  { %s1182_s23 = smov 0  }
   0x2 LB: > { %s28_s24 = sadd.s32 1, %s1137_s22  ;;  %p969_p0 = scmp.ge.s32.totalorder %s1141_s23, 1  ;;  %s1141_s23 = sphi %s1182_s23, %s16_s23   ;;  %s1137_s22 = sphi %s1180_s22, %s1267_s22   ;;  %s1133_s21 = sphi %s1178_s21, %s1266_s21  }
   0x3   : > { %p30_p1 = scmp.ge.s32.totalorder %s28_s24, 2  ;;  %p272_p2 = scmp.lt.s32.totalorder %s1141_s23, 3 }
   0x5   : > { %s1269_s24 = smov (%p30_p1, %s28_s24), 0  ;;  %p273_p3 = pnand %p969_p0, %p272_p2 }
   0x6   : > { %v1111_v0 = vld [vmem:[%s1260_s1 + $0x10] sm:$0xff] (!%p273_p3)   ;;  %p324_p4 = scmp.lt.s32.totalorder (!%p273_p3), %s1133_s21, 1  ;;  %v1114_v1 = vld [vmem:[%s1260_s1 + $0x18] sm:$0xff] (!%p273_p3)   ;;  %v1115_v2 = vld [vmem:[%s1260_s1 + $0x8] sm:$0xff] (!%p273_p3)   ;;  %vm407_vm0 = vcmask (!%p273_p3), 130048   ;;  %vm525_vm2 = vcmask (!%p273_p3), 1046528  }
   0x7   : > { %276 = sbr.rel (%p273_p3) target bundleno = 277 (0x115), region = 44  ;;  %1052 = vmatprep.subr.bf16.mxu0 (!%p273_p3), %v1111_v0  ;;  %v1117_v3 = vld [vmem:[%s1260_s1] sm:$0xff] (!%p273_p3)   ;;  %1040 = vmatprep.subr.bf16.mxu1 (!%p273_p3), %v1115_v2  ;;  %vm380_vm1 = vsmask.f32 (!%p273_p3), 7424  ;;  %vm599_vm3 = vsmask.f32 (!%p273_p3), 6400 }
   0x8   : > { %1053 = vmatpush3.bf16.msra.mxu0 (!%p273_p3), %v1111_v0  ;;  %1041 = vmatpush3.bf16.msra.mxu1 (!%p273_p3), %v1115_v2  ;;  %v1118_v19 = vld [vmem:[%s1260_s1 + $0x20] sm:$0xff] (!%p273_p3)   ;;  %vm681_vm4 = vcmask (!%p273_p3), 1045504  }
   0x9   : > { %1058 = vmatprep.subr.bf16.mxu0 (!%p273_p3), %v1114_v1  ;;  %1046 = vmatprep.subr.bf16.mxu1 (!%p273_p3), %v1117_v3  ;;  %v999_v47 = vld [vmem:[%s1261_s2] ss:$0 sm:$0xff] (!%p273_p3) }
   0xa   : > { %v1001_v60 = vld [vmem:[%s1263_s4] ss:$0 sm:$0xff] (!%p273_p3) }
   0xe   : > { %s1271_s21 = smov (!%p324_p4, %s1133_s21), 1 }
   0xf   : > { %s1086_s9 = smul.u32 20, %s1271_s21  ;;  %s341_s17 = scalar_lea.vmem %s1262_s3, %s1271_s21 }
  0x10   : > { %v1000_v50 = vld [vmem:[%s341_s17] ss:$0 sm:$0xff]  ;;  %s1009_s28 = sshll.u32 %s1271_s21, 4 }
  0x11   : > { %s328_s12 = scalar_lea.vmem %s1259_s0, %s1086_s9  ;;  %s355_s7 = scalar_lea.vmem %s1265_s6, %s1009_s28 }
  0x12   : > { %v1112_v4 = vld [vmem:[%s328_s12] sm:$0xff]   ;;  %v1113_v5 = vld [vmem:[%s328_s12 + $0x8] sm:$0xff]   ;;  %v1116_v6 = vld [vmem:[%s328_s12 + $0x10] ss:$0 sps:$4 sm:$0x33]  }
  0x13   : > { %v526_v7 = vrot.slane %v1112_v4, 1  ;;  %v527_v8 = vrot.slane %v1113_v5, 1  ;;  %v382_v9 = vshrl.u32 %v1112_v4, 16  ;;  %v384_v10 = vshll.u32 %v1112_v4, 16 }
  0x14   : > { %v529_v11 = vrot.slane %v1116_v6, 1  ;;  %v389_v12 = vshll.u32 %v1113_v5, 16  ;;  %v393_v13 = vshrl.u32 %v1113_v5, 16  ;;  %v397_v14 = vshll.u32 %v1116_v6, 16 }
  0x15   : > { %v528_v15 = vsel %vm525_vm2, %v526_v7, %v527_v8  ;;  %v386_v16 = vrot.slane %v384_v10, 1  ;;  %v600_v17 = vrot.slane %v382_v9, 1  ;;  %v601_v18 = vrot.slane %v384_v10, 2 }
  0x16   : > { %1054 = vmatprep.mubr.msk.bf16.mxu0 %vm407_vm0, %v528_v15  ;;  %v530_v20 = vsel %vm525_vm2, %v527_v8, %v529_v11  ;;  %v391_v21 = vrot.slane %v389_v12, 1  ;;  %v604_v22 = vrot.slane %v389_v12, 2  ;;  %v399_v23 = vrot.slane %v397_v14, 1 }
  0x17   : > { %1055 = vmatmul.mubr.msk.bf16.vlgmr.msra.gmra.mrb[0].mxu0 %vm407_vm0, %v530_v20  ;;  %v387_v24 = vor.u32 %v386_v16, %v382_v9  ;;  %v602_v25 = vor.u32 %v601_v18, %v600_v17  ;;  %v603_v26 = vrot.slane %v393_v13, 1  ;;  %v610_v28 = vrot.slane %v397_v14, 2 }
  0x18   : > { %1059 = vmatpush3.bf16.msra.mxu0 %v1114_v1  ;;  %v395_v27 = vor.u32 %v393_v13, %v391_v21  ;;  %v607_v29 = vshrl.u32 %v1116_v6, 16  ;;  %v682_v36 = vrot.slane %v1112_v4, 2  ;;  %v683_v37 = vrot.slane %v1113_v5, 2 }
  0x19   : > { %v392_v30 = vsel %vm380_vm1, %v387_v24, %v391_v21  ;;  %v605_v31 = vor.u32 %v604_v22, %v603_v26  ;;  %1064 = vmatprep.subr.bf16.mxu0 %v1118_v19  ;;  %v685_v40 = vrot.slane %v1116_v6, 2 }
  0x1a   : > { %1042 = vmatprep.mubr.msk.bf16.mxu1 %vm407_vm0, %v392_v30  ;;  %v400_v32 = vsel %vm380_vm1, %v395_v27, %v399_v23  ;;  %v609_v33 = vrot.slane %v607_v29, 1  ;;  %v684_v39 = vsel %vm681_vm4, %v682_v36, %v683_v37 }
  0x1b   : > { %1043 = vmatmul.mubr.msk.bf16.vlgmr.msra.gmra.mrb[0].mxu1 %vm407_vm0, %v400_v32  ;;  %v606_v34 = vsel %vm599_vm3, %v602_v25, %v605_v31  ;;  %v686_v41 = vsel %vm681_vm4, %v683_v37, %v685_v40 }
  0x1c   : > { %1060 = vmatprep.mubr.msk.bf16.mxu0 %vm407_vm0, %v606_v34  ;;  %1047 = vmatpush3.bf16.msra.mxu1 %v1117_v3  ;;  %v611_v35 = vor.u32 %v610_v28, %v609_v33 }
  0x1d   : > { %1048 = vmatprep.mubr.msk.bf16.mxu1 %vm407_vm0, %v1112_v4 }
  0x1e   : > { %v612_v38 = vsel %vm599_vm3, %v605_v31, %v611_v35 }
  0x23   : > { %1061 = vmatmul.mubr.msk.bf16.vlgmr.msra.gmra.mrb[0].mxu0 %vm407_vm0, %v612_v38 }
  0x24   : > { %1065 = vmatpush3.bf16.msra.mxu0 %v1118_v19  ;;  %1066 = vmatprep.mubr.msk.bf16.mxu0 %vm407_vm0, %v684_v39 }
  0x27   : > { %1049 = vmatmul.mubr.msk.bf16.vlgmr.msra.gmra.mrb[0].mxu1 %vm407_vm0, %v1113_v5  ;;  %v1002_v5 = vld [vmem:[%s1264_s5] ss:$0 sm:$0xff] }
  0x2f   : > { %1067 = vmatmul.mubr.msk.bf16.vlgmr.msra.gmra.mrb[0].mxu0 %vm407_vm0, %v686_v41 }
  0xfa   : > { %v1050_v42 = vpop.f32.mrb[0].mxu1 }
  0xfb   : > { %v507_v43 = vpop.f32.mrb[1].mxu1 }
  0xfc   : > { %v1051_v44 = vpop.f32.mrb[2].mxu1 }
  0xfd   : > { %v510_v45 = vpop.f32.mrb[3].mxu1 }
 0x102   : > { %v1068_v46 = vpop.f32.mrb[0].mxu0 }
 0x103   : > { %v1070_v48 = vadd.f32 %v1068_v46, %v1050_v42  ;;  %v733_v49 = vpop.f32.mrb[1].mxu0 }
 0x104   : > { %v1071_v51 = vadd.f32 %v733_v49, %v507_v43  ;;  %v1069_v52 = vpop.f32.mrb[2].mxu0 }
 0x105   : > { %v761_v53 = vadd.f32 %v1070_v48, %v999_v47  ;;  %v1072_v54 = vadd.f32 %v1069_v52, %v1051_v44  ;;  %v736_v55 = vpop.f32.mrb[3].mxu0 }
 0x106   : > { %v759_v56 = vadd.f32 %v1071_v51, %v999_v47  ;;  %v1073_v57 = vadd.f32 %v736_v55, %v510_v45 }
 0x107   : > { %v772_v58 = vadd.f32 %v1000_v50, %v761_v53  ;;  %v762_v59 = vadd.f32 %v1072_v54, %v999_v47 }
 0x108   : > { %v770_v61 = vadd.f32 %v1000_v50, %v759_v56  ;;  %v760_v62 = vadd.f32 %v1073_v57, %v999_v47 }
 0x109   : > { %v776_v63 = vmax.f32 %v772_v58, 0.0  ;;  %v773_v0 = vadd.f32 %v1000_v50, %v762_v59 }
 0x10a   : > { %v774_v1 = vmax.f32 %v770_v61, 0.0  ;;  %v771_v2 = vadd.f32 %v1000_v50, %v760_v62 }
 0x10b   : > { %v787_v3 = vmul.f32 %v1001_v60, %v776_v63  ;;  %v777_v4 = vmax.f32 %v773_v0, 0.0 }
 0x10c   : > { %v785_v6 = vmul.f32 %v1001_v60, %v774_v1  ;;  %v775_v7 = vmax.f32 %v771_v2, 0.0 }
 0x10d   : > { %v788_v8 = vmul.f32 %v1001_v60, %v777_v4  ;;  %v798_v10 = vadd.f32 %v1002_v5, %v787_v3 }
 0x10e   : > { %v786_v9 = vmul.f32 %v1001_v60, %v775_v7  ;;  %v796_v12 = vadd.f32 %v1002_v5, %v785_v6 }
 0x10f   : > { %v799_v11 = vadd.f32 %v1002_v5, %v788_v8 }
 0x110   : > { %v797_v13 = vadd.f32 %v1002_v5, %v786_v9 }
 0x111   : > { %v1022_v14 = vpack.c.bf16 %v799_v11, %v798_v10 }
 0x112   : > { %v1017_v15 = vpack.c.bf16 %v797_v13, %v796_v12 }
 0x113   : > { %1024 = vst [vmem:[%s355_s7 + $0x8] sm:$0xff] %v1022_v14  }
 0x114   : > { %1018 = vst [vmem:[%s355_s7] sm:$0xff] %v1017_v15  }
 0x115 PF: > { %s16_s23 = sadd.s32 1, %s1141_s23   ;;  %s1266_s21 = smov %s1137_s22 }
 0x116   : > { %p13_p5 = scmp.ge.s32.totalorder %s16_s23, 4   ;;  %s1267_s22 = smov %s1269_s24 }
 0x118   :  { %15 = sbr.rel (!%p13_p5) target bundleno = 2 (0x2), region = 93 }

// kernel: _lambda_.38
= control target key start
LH: loop header
LB: loop body
LE: loop exit
PB: predicated region body
PF: predicated region fallthrough
CT: control target
= control target key end

     0   :  { %s845_s1 = inlined_call_operand.vmem [shape: bf16[128,128], index: 1, kind: input, shape index: {}]   ;;  %s846_s0 = inlined_call_operand.vmem [shape: bf16[128,128], index: 0, kind: input, shape index: {}]   ;;  %s847_s2 = inlined_call_operand.vmem [shape: f32[1,128], index: 2, kind: input, shape index: {}]   ;;  %s848_s3 = inlined_call_operand.vmem [shape: f32[1,128], index: 3, kind: input, shape index: {}]   ;;  %s849_s4 = inlined_call_operand.vmem [shape: f32[1,128], index: 4, kind: input, shape index: {}]   ;;  %s850_s5 = inlined_call_operand.vmem [shape: bf16[128,128], index: 5, kind: output, shape index: {}]  }
   0x1   :  { %v664_v0 = vld [vmem:[%s845_s1] sm:$0xff]   ;;  %v665_v1 = vld [vmem:[%s845_s1 + $0x8] sm:$0xff]   ;;  %v666_v2 = vld [vmem:[%s845_s1 + $0x10] sm:$0xff]  }
   0x2   :  { %616 = vmatprep.subr.bf16.mxu0 %v664_v0  ;;  %648 = vmatprep.subr.bf16.mxu1 %v664_v0  ;;  %v667_v3 = vld [vmem:[%s845_s1 + $0x18] sm:$0xff]   ;;  %v672_v4 = vld [vmem:[%s846_s0] sm:$0xff]   ;;  %v669_v7 = vld [vmem:[%s845_s1 + $0x28] sm:$0xff]  }
   0x3   :  { %617 = vmatpush3.bf16.msra.mxu0 %v664_v0  ;;  %656 = vmatpush3.bf16.msra.mxu1 %v664_v0  ;;  %v673_v5 = vld [vmem:[%s846_s0 + $0x20] sm:$0xff]   ;;  %v670_v8 = vld [vmem:[%s845_s1 + $0x30] sm:$0xff]   ;;  %v671_v9 = vld [vmem:[%s845_s1 + $0x38] sm:$0xff]  }
   0x4   :  { %618 = vmatprep.subr.bf16.mxu0 %v665_v1  ;;  %649 = vmatprep.subr.bf16.mxu1 %v665_v1  ;;  %v668_v6 = vld [vmem:[%s845_s1 + $0x20] sm:$0xff]   ;;  %v674_v10 = vld [vmem:[%s846_s0 + $0x8] sm:$0xff]   ;;  %v676_v12 = vld [vmem:[%s846_s0 + $0x10] sm:$0xff]  }
   0x5   :  { %632 = vmatprep.mubr.bf16.mxu0 %v672_v4  ;;  %640 = vmatprep.mubr.bf16.mxu1 %v673_v5  ;;  %v675_v11 = vld [vmem:[%s846_s0 + $0x28] sm:$0xff]   ;;  %v677_v13 = vld [vmem:[%s846_s0 + $0x30] sm:$0xff]   ;;  %v678_v14 = vld [vmem:[%s846_s0 + $0x18] sm:$0xff]  }
   0x6   :  { %v679_v15 = vld [vmem:[%s846_s0 + $0x38] sm:$0xff]   ;;  %v761_v16 = vld [vmem:[%s847_s2] ss:$0 sm:$0xff] }
   0x7   :  { %619 = vmatpush3.bf16.msra.mxu0 %v665_v1  ;;  %657 = vmatpush3.bf16.msra.mxu1 %v665_v1  ;;  %v768_v23 = vld [vmem:[%s848_s3] ss:$0 sm:$0xff] }
   0x8   :  { %620 = vmatprep.subr.bf16.mxu0 %v666_v2  ;;  %650 = vmatprep.subr.bf16.mxu1 %v666_v2  ;;  %v777_v34 = vld [vmem:[%s849_s4] ss:$0 sm:$0xff] }
   0xb   :  { %621 = vmatpush3.bf16.msra.mxu0 %v666_v2  ;;  %658 = vmatpush3.bf16.msra.mxu1 %v666_v2 }
   0xc   :  { %622 = vmatprep.subr.bf16.mxu0 %v667_v3  ;;  %651 = vmatprep.subr.bf16.mxu1 %v667_v3 }
   0xf   :  { %623 = vmatpush3.bf16.msra.mxu0 %v667_v3  ;;  %659 = vmatpush3.bf16.msra.mxu1 %v667_v3 }
  0x10   :  { %624 = vmatprep.subr.bf16.mxu0 %v668_v6  ;;  %652 = vmatprep.subr.bf16.mxu1 %v668_v6 }
  0x13   :  { %625 = vmatpush3.bf16.msra.mxu0 %v668_v6  ;;  %660 = vmatpush3.bf16.msra.mxu1 %v668_v6 }
  0x14   :  { %626 = vmatprep.subr.bf16.mxu0 %v669_v7  ;;  %653 = vmatprep.subr.bf16.mxu1 %v669_v7 }
  0x17   :  { %627 = vmatpush3.bf16.msra.mxu0 %v669_v7  ;;  %661 = vmatpush3.bf16.msra.mxu1 %v669_v7 }
  0x18   :  { %628 = vmatprep.subr.bf16.mxu0 %v670_v8  ;;  %654 = vmatprep.subr.bf16.mxu1 %v670_v8 }
  0x1b   :  { %629 = vmatpush3.bf16.msra.mxu0 %v670_v8  ;;  %662 = vmatpush3.bf16.msra.mxu1 %v670_v8 }
  0x1c   :  { %630 = vmatprep.subr.bf16.mxu0 %v671_v9  ;;  %655 = vmatprep.subr.bf16.mxu1 %v671_v9 }
  0x1f   :  { %631 = vmatpush3.bf16.msra.mxu0 %v671_v9  ;;  %663 = vmatpush3.bf16.msra.mxu1 %v671_v9 }
  0x22   :  { %633 = vmatmul.mubr.bf16.vlgmr.msra.gmra.mrb[0].mxu0 %v674_v10  ;;  %641 = vmatmul.mubr.bf16.vlgmr.msra.gmra.mrb[0].mxu1 %v675_v11 }
  0x23   :  { %636 = vmatprep.mubr.bf16.mxu0 %v676_v12  ;;  %644 = vmatprep.mubr.bf16.mxu1 %v677_v13 }
  0x2a   :  { %637 = vmatmul.mubr.bf16.gmra.mrb[4].mxu0 %v678_v14  ;;  %645 = vmatmul.mubr.bf16.gmra.mrb[4].mxu1 %v679_v15 }
  0xf5   :  { %v634_v17 = vpop.f32.mrb[0].mxu0  ;;  %v642_v18 = vpop.f32.mrb[0].mxu1 }
  0xf6   :  { %v342_v19 = vadd.f32 %v634_v17, %v761_v16  ;;  %v350_v20 = vadd.f32 %v642_v18, %v761_v16  ;;  %v219_v21 = vpop.f32.mrb[1].mxu0  ;;  %v251_v22 = vpop.f32.mrb[1].mxu1 }
  0xf7   :  { %v340_v24 = vadd.f32 %v761_v16, %v219_v21  ;;  %v348_v25 = vadd.f32 %v761_v16, %v251_v22  ;;  %v635_v26 = vpop.f32.mrb[2].mxu0  ;;  %v643_v27 = vpop.f32.mrb[2].mxu1 }
  0xf8   :  { %v358_v28 = vmax.f32 %v342_v19, 0.0  ;;  %v366_v29 = vmax.f32 %v350_v20, 0.0  ;;  %v343_v30 = vadd.f32 %v635_v26, %v761_v16  ;;  %v351_v31 = vadd.f32 %v643_v27, %v761_v16  ;;  %v222_v32 = vpop.f32.mrb[3].mxu0  ;;  %v254_v33 = vpop.f32.mrb[3].mxu1 }
  0xf9   :  { %v356_v35 = vmax.f32 %v340_v24, 0.0  ;;  %v364_v36 = vmax.f32 %v348_v25, 0.0  ;;  %v341_v37 = vadd.f32 %v761_v16, %v222_v32  ;;  %v349_v38 = vadd.f32 %v761_v16, %v254_v33 }
  0xfa   :  { %v381_v39 = vmul.f32 %v768_v23, %v358_v28  ;;  %v389_v40 = vmul.f32 %v768_v23, %v366_v29  ;;  %v359_v41 = vmax.f32 %v343_v30, 0.0  ;;  %v367_v42 = vmax.f32 %v351_v31, 0.0 }
  0xfb   :  { %v379_v43 = vmul.f32 %v768_v23, %v356_v35  ;;  %v387_v44 = vmul.f32 %v768_v23, %v364_v36  ;;  %v357_v45 = vmax.f32 %v341_v37, 0.0  ;;  %v365_v46 = vmax.f32 %v349_v38, 0.0 }
  0xfc   :  { %v404_v47 = vadd.f32 %v777_v34, %v381_v39  ;;  %v412_v48 = vadd.f32 %v777_v34, %v389_v40  ;;  %v382_v49 = vmul.f32 %v768_v23, %v359_v41  ;;  %v390_v50 = vmul.f32 %v768_v23, %v367_v42 }
  0xfd   :  { %v402_v51 = vadd.f32 %v777_v34, %v379_v43  ;;  %v410_v52 = vadd.f32 %v777_v34, %v387_v44  ;;  %v380_v53 = vmul.f32 %v768_v23, %v357_v45  ;;  %v388_v54 = vmul.f32 %v768_v23, %v365_v46  ;;  %v638_v55 = vpop.f32.mrb[4].mxu0  ;;  %v646_v56 = vpop.f32.mrb[4].mxu1 }
  0xfe   :  { %v405_v57 = vadd.f32 %v777_v34, %v382_v49  ;;  %v413_v58 = vadd.f32 %v777_v34, %v390_v50  ;;  %v346_v59 = vadd.f32 %v638_v55, %v761_v16  ;;  %v354_v60 = vadd.f32 %v646_v56, %v761_v16  ;;  %v235_v61 = vpop.f32.mrb[5].mxu0  ;;  %v267_v62 = vpop.f32.mrb[5].mxu1 }
  0xff   :  { %v403_v63 = vadd.f32 %v777_v34, %v380_v53  ;;  %v411_v0 = vadd.f32 %v777_v34, %v388_v54  ;;  %v344_v1 = vadd.f32 %v761_v16, %v235_v61  ;;  %v352_v2 = vadd.f32 %v761_v16, %v267_v62  ;;  %v639_v3 = vpop.f32.mrb[6].mxu0  ;;  %v647_v4 = vpop.f32.mrb[6].mxu1 }
 0x100   :  { %v561_v5 = vpack.c.bf16 %v405_v57, %v404_v47  ;;  %v581_v6 = vpack.c.bf16 %v413_v58, %v412_v48  ;;  %v362_v7 = vmax.f32 %v346_v59, 0.0  ;;  %v370_v8 = vmax.f32 %v354_v60, 0.0  ;;  %v238_v9 = vpop.f32.mrb[7].mxu0  ;;  %v270_v10 = vpop.f32.mrb[7].mxu1 }
 0x101   :  { %v556_v11 = vpack.c.bf16 %v403_v63, %v402_v51  ;;  %v576_v12 = vpack.c.bf16 %v411_v0, %v410_v52  ;;  %v360_v13 = vmax.f32 %v344_v1, 0.0  ;;  %v368_v14 = vmax.f32 %v352_v2, 0.0 }
 0x102   :  { %593 = vst [vmem:[%s850_s5 + $0x8] sm:$0xff] %v561_v5   ;;  %597 = vst [vmem:[%s850_s5 + $0x28] sm:$0xff] %v581_v6   ;;  %v347_v15 = vadd.f32 %v639_v3, %v761_v16  ;;  %v355_v17 = vadd.f32 %v647_v4, %v761_v16  ;;  %v345_v18 = vadd.f32 %v761_v16, %v238_v9 }
 0x103   :  { %557 = vst [vmem:[%s850_s5] sm:$0xff] %v556_v11   ;;  %596 = vst [vmem:[%s850_s5 + $0x20] sm:$0xff] %v576_v12   ;;  %v353_v19 = vadd.f32 %v761_v16, %v270_v10  ;;  %v385_v20 = vmul.f32 %v768_v23, %v362_v7  ;;  %v393_v21 = vmul.f32 %v768_v23, %v370_v8 }
 0x104   :  { %v363_v22 = vmax.f32 %v347_v15, 0.0  ;;  %v371_v24 = vmax.f32 %v355_v17, 0.0  ;;  %v383_v25 = vmul.f32 %v768_v23, %v360_v13  ;;  %v391_v26 = vmul.f32 %v768_v23, %v368_v14 }
 0x105   :  { %v361_v27 = vmax.f32 %v345_v18, 0.0  ;;  %v369_v28 = vmax.f32 %v353_v19, 0.0  ;;  %v408_v32 = vadd.f32 %v777_v34, %v385_v20  ;;  %v416_v33 = vadd.f32 %v777_v34, %v393_v21 }
 0x106   :  { %v386_v29 = vmul.f32 %v768_v23, %v363_v22  ;;  %v394_v30 = vmul.f32 %v768_v23, %v371_v24  ;;  %v406_v37 = vadd.f32 %v777_v34, %v383_v25  ;;  %v414_v38 = vadd.f32 %v777_v34, %v391_v26 }
 0x107   :  { %v384_v31 = vmul.f32 %v768_v23, %v361_v27  ;;  %v392_v16 = vmul.f32 %v768_v23, %v369_v28 }
 0x108   :  { %v409_v35 = vadd.f32 %v777_v34, %v386_v29  ;;  %v417_v36 = vadd.f32 %v777_v34, %v394_v30 }
 0x109   :  { %v407_v39 = vadd.f32 %v777_v34, %v384_v31  ;;  %v415_v40 = vadd.f32 %v777_v34, %v392_v16 }
 0x10a   :  { %v571_v41 = vpack.c.bf16 %v409_v35, %v408_v32  ;;  %v591_v42 = vpack.c.bf16 %v417_v36, %v416_v33 }
 0x10b   :  { %v566_v43 = vpack.c.bf16 %v407_v39, %v406_v37  ;;  %v586_v23 = vpack.c.bf16 %v415_v40, %v414_v38 }
 0x10c   :  { %595 = vst [vmem:[%s850_s5 + $0x18] sm:$0xff] %v571_v41   ;;  %599 = vst [vmem:[%s850_s5 + $0x38] sm:$0xff] %v591_v42  }
 0x10d   :  { %594 = vst [vmem:[%s850_s5 + $0x10] sm:$0xff] %v566_v43   ;;  %598 = vst [vmem:[%s850_s5 + $0x30] sm:$0xff] %v586_v23  }

// kernel: _lambda_.39
= control target key start
LH: loop header
LB: loop body
LE: loop exit
PB: predicated region body
PF: predicated region fallthrough
CT: control target
= control target key end

     0   :  { %s955_s21 = smov 0   ;;  %s957_s22 = smov 0   ;;  %s1030_s0 = inlined_call_operand.vmem [shape: bf16[2,36,8], index: 0, kind: input, shape index: {}]   ;;  %s1031_s1 = inlined_call_operand.vmem [shape: bf16[3,8,128], index: 1, kind: input, shape index: {}]   ;;  %s1032_s2 = inlined_call_operand.vmem [shape: f32[1,128], index: 2, kind: input, shape index: {}]   ;;  %s1033_s3 = inlined_call_operand.vmem [shape: f32[2,1,128], index: 3, kind: input, shape index: {}]   ;;  %s1034_s4 = inlined_call_operand.vmem [shape: f32[1,128], index: 4, kind: input, shape index: {}]   ;;  %s1035_s5 = inlined_call_operand.vmem [shape: f32[1,128], index: 5, kind: input, shape index: {}]   ;;  %s1036_s6 = inlined_call_operand.vmem [shape: bf16[2,32,128], index: 6, kind: output, shape index: {}]  }
   0x1   :  { %s959_s23 = smov 0  }
   0x2 LB: > { %s28_s24 = sadd.s32 1, %s914_s22  ;;  %p789_p0 = scmp.ge.s32.totalorder %s918_s23, 1  ;;  %s918_s23 = sphi %s959_s23, %s16_s23   ;;  %s914_s22 = sphi %s957_s22, %s1038_s22   ;;  %s910_s21 = sphi %s955_s21, %s1037_s21  }
   0x3   : > { %p30_p1 = scmp.ge.s32.totalorder %s28_s24, 2  ;;  %p272_p2 = scmp.lt.s32.totalorder %s918_s23, 3 }
   0x5   : > { %s1040_s24 = smov (%p30_p1, %s28_s24), 0  ;;  %p273_p3 = pnand %p789_p0, %p272_p2 }
   0x6   : > { %v362_v0 = vld [vmem:[%s1031_s1] sm:$0xf] (!%p273_p3)  ;;  %vm391_vm0 = vcmask (!%p273_p3), 1043456   ;;  %p324_p4 = scmp.lt.s32.totalorder (!%p273_p3), %s910_s21, 1  ;;  %v801_v2 = vld [vmem:[%s1031_s1 + $0x8] sm:$0xf] (!%p273_p3) }
   0x7   : > { %276 = sbr.rel (%p273_p3) target bundleno = 262 (0x106), region = 44  ;;  %866 = vmatprep.subr.msk.bf16.mxu0 (!%p273_p3), %vm391_vm0, %v362_v0  ;;  %v451_v1 = vsel (!%p273_p3), %vm391_vm0, %v362_v0, 0  ;;  %v793_v3 = vld [vmem:[%s1031_s1 + $0x4] sm:$0xf] (!%p273_p3)  ;;  %vm384_vm1 = vcmask (!%p273_p3), 64512   ;;  %vm378_vm2 = vcmask (!%p273_p3), 1046528  }
   0x8   : > { %846 = vmatpush3.bf16.msra.mxu0 (!%p273_p3), %v451_v1  ;;  %865 = vmatprep.subr.msk.bf16.mxu1 (!%p273_p3), %vm391_vm0, %v793_v3  ;;  %v393_v4 = vsel (!%p273_p3), %vm391_vm0, %v793_v3, 0  ;;  %vm504_vm3 = vcmask (!%p273_p3), 1045504   ;;  %v517_v7 = vsel (!%p273_p3), %vm391_vm0, %v801_v2, 0  ;;  %v804_v24 = vld [vmem:[%s1032_s2] ss:$0 sm:$0xff] (!%p273_p3) }
   0x9   : > { %867 = vmatprep.subr.msk.bf16.mxu0 (!%p273_p3), %vm391_vm0, %v801_v2  ;;  %840 = vmatpush3.bf16.msra.mxu1 (!%p273_p3), %v393_v4  ;;  %v806_v37 = vld [vmem:[%s1034_s4] ss:$0 sm:$0xff] (!%p273_p3) }
   0xa   : > { %v807_v46 = vld [vmem:[%s1035_s5] ss:$0 sm:$0xff] (!%p273_p3) }
   0xe   : > { %s1042_s21 = smov (!%p324_p4, %s910_s21), 1 }
   0xf   : > { %s868_s7 = smul.u32 20, %s1042_s21  ;;  %s341_s13 = scalar_lea.vmem %s1033_s3, %s1042_s21 }
  0x10   : > { %v805_v27 = vld [vmem:[%s341_s13] ss:$0 sm:$0xff]  ;;  %s814_s20 = sshll.u32 %s1042_s21, 4 }
  0x11   : > { %s328_s10 = scalar_lea.vmem %s1030_s0, %s868_s7  ;;  %s355_s27 = scalar_lea.vmem %s1036_s6, %s814_s20 }
  0x12   : > { %v893_v5 = vld [vmem:[%s328_s10] sm:$0xff]   ;;  %v894_v6 = vld [vmem:[%s328_s10 + $0x8] sm:$0xff]   ;;  %v895_v9 = vld [vmem:[%s328_s10 + $0x10] ss:$0 sps:$4 sm:$0x33]  }
  0x13   : > { %847 = vmatprep.mubr.msk.bf16.mxu0 %vm384_vm1, %v893_v5  ;;  %v379_v8 = vrot.slane %v893_v5, 1  ;;  %v380_v10 = vrot.slane %v894_v6, 1  ;;  %v505_v11 = vrot.slane %v893_v5, 2  ;;  %v506_v12 = vrot.slane %v894_v6, 2 }
  0x14   : > { %848 = vmatmul.mubr.msk.bf16.vlgmr.msra.gmra.mrb[0].mxu0 %vm384_vm1, %v894_v6  ;;  %v382_v13 = vrot.slane %v895_v9, 1  ;;  %v508_v17 = vrot.slane %v895_v9, 2 }
  0x15   : > { %852 = vmatpush3.bf16.msra.mxu0 %v517_v7  ;;  %v381_v14 = vsel %vm378_vm2, %v379_v8, %v380_v10  ;;  %v507_v15 = vsel %vm504_vm3, %v505_v11, %v506_v12 }
  0x16   : > { %841 = vmatprep.mubr.msk.bf16.mxu1 %vm384_vm1, %v381_v14  ;;  %v383_v16 = vsel %vm378_vm2, %v380_v10, %v382_v13  ;;  %853 = vmatprep.mubr.msk.bf16.mxu0 %vm384_vm1, %v507_v15  ;;  %v509_v18 = vsel %vm504_vm3, %v506_v12, %v508_v17 }
  0x17   : > { %842 = vmatmul.mubr.msk.bf16.vlgmr.msra.gmra.mrb[0].mxu1 %vm384_vm1, %v383_v16 }
  0x20   : > { %854 = vmatmul.mubr.msk.bf16.vlgmr.msra.gmra.mrb[0].mxu0 %vm384_vm1, %v509_v18 }
  0xea   : > { %v843_v19 = vpop.f32.mrb[0].mxu1 }
  0xeb   : > { %v429_v20 = vpop.f32.mrb[1].mxu1 }
  0xec   : > { %v844_v21 = vpop.f32.mrb[2].mxu1 }
  0xed   : > { %v432_v22 = vpop.f32.mrb[3].mxu1 }
  0xf3   : > { %v855_v23 = vpop.f32.mrb[0].mxu0 }
  0xf4   : > { %v857_v25 = vadd.f32 %v855_v23, %v843_v19  ;;  %v553_v26 = vpop.f32.mrb[1].mxu0 }
  0xf5   : > { %v858_v28 = vadd.f32 %v553_v26, %v429_v20  ;;  %v856_v29 = vpop.f32.mrb[2].mxu0 }
  0xf6   : > { %v581_v30 = vadd.f32 %v857_v25, %v804_v24  ;;  %v859_v31 = vadd.f32 %v856_v29, %v844_v21  ;;  %v556_v32 = vpop.f32.mrb[3].mxu0 }
  0xf7   : > { %v579_v33 = vadd.f32 %v858_v28, %v804_v24  ;;  %v860_v34 = vadd.f32 %v556_v32, %v432_v22 }
  0xf8   : > { %v592_v35 = vadd.f32 %v805_v27, %v581_v30  ;;  %v582_v36 = vadd.f32 %v859_v31, %v804_v24 }
  0xf9   : > { %v590_v38 = vadd.f32 %v805_v27, %v579_v33  ;;  %v580_v39 = vadd.f32 %v860_v34, %v804_v24 }
  0xfa   : > { %v596_v40 = vmax.f32 %v592_v35, 0.0  ;;  %v593_v41 = vadd.f32 %v805_v27, %v582_v36 }
  0xfb   : > { %v594_v42 = vmax.f32 %v590_v38, 0.0  ;;  %v591_v43 = vadd.f32 %v805_v27, %v580_v39 }
  0xfc   : > { %v607_v44 = vmul.f32 %v806_v37, %v596_v40  ;;  %v597_v45 = vmax.f32 %v593_v41, 0.0 }
  0xfd   : > { %v605_v47 = vmul.f32 %v806_v37, %v594_v42  ;;  %v595_v48 = vmax.f32 %v591_v43, 0.0 }
  0xfe   : > { %v608_v49 = vmul.f32 %v806_v37, %v597_v45  ;;  %v618_v51 = vadd.f32 %v807_v46, %v607_v44 }
  0xff   : > { %v606_v50 = vmul.f32 %v806_v37, %v595_v48  ;;  %v616_v53 = vadd.f32 %v807_v46, %v605_v47 }
 0x100   : > { %v619_v52 = vadd.f32 %v807_v46, %v608_v49 }
 0x101   : > { %v617_v54 = vadd.f32 %v807_v46, %v606_v50 }
 0x102   : > { %v827_v55 = vpack.c.bf16 %v619_v52, %v618_v51 }
 0x103   : > { %v822_v56 = vpack.c.bf16 %v617_v54, %v616_v53 }
 0x104   : > { %829 = vst [vmem:[%s355_s27 + $0x8] sm:$0xff] %v827_v55  }
 0x105   : > { %823 = vst [vmem:[%s355_s27] sm:$0xff] %v822_v56  }
 0x106 PF: > { %s16_s23 = sadd.s32 1, %s918_s23   ;;  %s1037_s21 = smov %s914_s22 }
 0x107   : > { %p13_p5 = scmp.ge.s32.totalorder %s16_s23, 4   ;;  %s1038_s22 = smov %s1040_s24 }
 0x109   :  { %15 = sbr.rel (!%p13_p5) target bundleno = 2 (0x2), region = 91 }

// kernel: _lambda_.43
= control target key start
LH: loop header
LB: loop body
LE: loop exit
PB: predicated region body
PF: predicated region fallthrough
CT: control target
= control target key end

     0   :  { %8 = vsyncpa [#allocation3], 0  ;;  %s556_s0 = inlined_call_operand.vmem [shape: bf16[2,32,32], index: 0, kind: input, shape index: {}]   ;;  %s557_s1 = inlined_call_operand.vmem [shape: f32[2,1,32], index: 1, kind: output, shape index: {0}]   ;;  %s558_s2 = inlined_call_operand.hbm [shape: f32[2,1,32], index: 2, kind: output, shape index: {1}]  }
   0x1   :  { %10 = vsyncpa [#allocation3 + $0x1], 0  ;;  %s439_s9 = smov 0   ;;  %s441_s10 = smov 0  }
   0x2   :  { %s443_s11 = smov 0   ;;  %s445_s12 = smov 0  }
   0x3 LB: > { %s460_s13 = sadd.s32 4294967295, %s421_s12   ;;  %s299_s14 = sadd.s32 4294967294, %s421_s12   ;;  %s421_s12 = sphi %s445_s12, %s564_s12   ;;  %s417_s11 = sphi %s443_s11, %s563_s11   ;;  %s413_s10 = sphi %s441_s10, %s562_s10   ;;  %s409_s9 = sphi %s439_s9, %s561_s9  }
   0x4   : > { %s464_s15 = sadd.s32 1, %s421_s12   ;;  %s75_s16 = sadd.s32 1, %s417_s11 }
   0x5   : > { %s72_s17 = ssub.s32 %s421_s12, %s464_s15  ;;  %p85_p0 = scmp.ne.s32.totalorder %s417_s11, %s413_s10 }
   0x6   : > { %p73_p1 = scmp.eq.s32.totalorder %s72_s17, 0  ;;  %p86_p2 = scmp.eq.s32.totalorder %s460_s13, 1 }
   0x7   : > { %p91_p3 = scmp.ne.s32.totalorder %s413_s10, %s409_s9  ;;  %p92_p4 = scmp.eq.s32.totalorder %s299_s14, 1 }
   0x8   : > { %s475_s18 = scalar_select %p73_p1, %s417_s11, %s75_s16  }
   0x9   : > { %p477_p5 = por %p86_p2, %p85_p0  ;;  %p481_p6 = por %p92_p4, %p91_p3 }
   0xa   : > { %p302_p7 = scmp.ge.s32.totalorder %s421_s12, 1  ;;  %p118_p8 = scmp.lt.s32.totalorder %s421_s12, 3 }
   0xc   : > { %p119_p9 = pnand %p302_p7, %p118_p8 }
   0xd   : > { %p142_p10 = scmp.lt.s32.totalorder (!%p119_p9), %s460_s13, 1  ;;  %vm158_vm0 = vcmask (!%p119_p9), 261120   ;;  %vm195_vm1 = vcmask (!%p119_p9), 253952   ;;  %s140_s29 = sand.u32 (!%p119_p9), 1, %s413_s10  }
   0xe   : > { %122 = sbr.rel (%p119_p9) target bundleno = 105 (0x69), region = 24  ;;  %s141_s30 = scalar_lea.vmem (!%p119_p9), [#allocation2], %s140_s29 }
   0xf   : > { %s225_s3 = sshll.u32 (!%p119_p9), %s141_s30, 4  ;;  %s305_s4 = sshll.u32 (!%p119_p9), %s460_s13, 4  ;;  %s510_s3 = int_to_ptr.vmem [resolvable:$true] %s225_s3 }
  0x10   : > { %s515_s7 = scalar_lea.hbm (!%p119_p9), %s558_s2, %s305_s4  ;;  %s210_s8 = scalar_lea.sflag (!%p119_p9), [#allocation3], %s140_s29 }
  0x11   : > { %s359_s14 = scalar_lea.vmem (!%p119_p9), %s510_s3, 16 }
  0x12   : > { %p360_p11 = scmp.ne.s32.totalorder (!%p119_p9), %s510_s3, %s359_s14 }
  0x14   : > { %p361_p12 = pnand (!%p119_p9), %p360_p11, %p477_p5 }
  0x15   : > { %s489_s21 = scalar_select %p142_p10, %s460_s13, 1 }
  0x16   : > { %p362_p13 = pneg %p361_p12  ;;  %s423_s13 = smov [#allocation2]  }
  0x17   : > { %s308_s22 = sshll.u32 %s489_s21, 4  ;;  %s149_s28 = scalar_lea.vmem %s557_s1, %s489_s21 }
  0x18   : > { %s146_s25 = scalar_lea.vmem %s556_s0, %s308_s22  ;;  %s363_s16 = sshll.u32 %s423_s13, 4  ;;  %s364_s16 = int_to_ptr.vmem [resolvable:$false] %s363_s16 }
  0x19   : > { %v310_v0 = vld [vmem:[%s146_s25] sm:$0xff]   ;;  %v317_v1 = vld [vmem:[%s146_s25 + $0x8] sm:$0xff]   ;;  %s365_s17 = scalar_lea.vmem %s364_s16, 32  ;;  %p366_p0 = scmp.lt.s32.totalorder %s510_s3, %s364_s16 }
  0x1a   : > { %v311_v2 = vunpack.c.l.bf16 %v310_v0  ;;  %v312_v3 = vunpack.c.h.bf16 %v310_v0  ;;  %v315_v4 = vunpack.c.l.bf16 %v317_v1  ;;  %v316_v5 = vunpack.c.h.bf16 %v317_v1  ;;  %p367_p1 = scmp.lt.s32.totalorder %s365_s17, %s359_s14 }
  0x1c   : > { %v159_v6 = vsel %vm158_vm0, %v311_v2, 0.0  ;;  %v160_v7 = vsel %vm158_vm0, %v312_v3, 0.0  ;;  %v162_v8 = vsel %vm158_vm0, %v315_v4, 0.0  ;;  %v164_v10 = vsel %vm158_vm0, %v316_v5, 0.0  ;;  %p368_p2 = por %p367_p1, %p366_p0 }
  0x1d   : > { %v161_v9 = vadd.f32 %v160_v7, %v159_v6 }
  0x1e   : > { %p369_p3 = pnand %p368_p2, %p362_p13 }
  0x1f   : > { %v163_v11 = vadd.f32 %v162_v8, %v161_v9 }
  0x21   : > { %v165_v12 = vadd.f32 %v164_v10, %v163_v11 }
  0x23   : > { %v166_v13 = vrot.slane %v165_v12, 4 }
  0x25   : > { %v167_v14 = vadd.f32 %v166_v13, %v165_v12 }
  0x27   : > { %v168_v15 = vrot.slane %v167_v14, 2 }
  0x29   : > { %v169_v16 = vadd.f32 %v168_v15, %v167_v14 }
  0x2b   : > { %v170_v17 = vrot.slane %v169_v16, 1 }
  0x2d   : > { %v171_v18 = vadd.f32 %v170_v17, %v169_v16 }
  0x2f   : > { %v172_v19 = vmul.f32 0.03125, %v171_v18 }
  0x31   : > { %v173_v20 = vsub.f32 %v311_v2, %v172_v19  ;;  %v174_v21 = vsub.f32 %v312_v3, %v172_v19  ;;  %v175_v22 = vsub.f32 %v315_v4, %v172_v19  ;;  %v176_v23 = vsub.f32 %v316_v5, %v172_v19  ;;  %196 = vst.msk [vmem:[%s149_s28] sm:$0x1] %vm195_vm1, %v172_v19 }
  0x33   : > { %v177_v24 = vmul.f32 %v173_v20, %v173_v20  ;;  %v178_v25 = vmul.f32 %v174_v21, %v174_v21  ;;  %v179_v26 = vmul.f32 %v175_v22, %v175_v22  ;;  %v180_v27 = vmul.f32 %v176_v23, %v176_v23 }
  0x35   : > { %v181_v28 = vsel %vm158_vm0, %v177_v24, 0.0  ;;  %v182_v29 = vsel %vm158_vm0, %v178_v25, 0.0  ;;  %v184_v30 = vsel %vm158_vm0, %v179_v26, 0.0  ;;  %v186_v32 = vsel %vm158_vm0, %v180_v27, 0.0 }
  0x36   : > { %v183_v31 = vadd.f32 %v182_v29, %v181_v28 }
  0x38   : > { %v185_v33 = vadd.f32 %v184_v30, %v183_v31 }
  0x3a   : > { %v187_v34 = vadd.f32 %v186_v32, %v185_v33 }
  0x3c   : > { %v188_v35 = vrot.slane %v187_v34, 4 }
  0x3e   : > { %v189_v36 = vadd.f32 %v188_v35, %v187_v34 }
  0x40   : > { %v190_v37 = vrot.slane %v189_v36, 2 }
  0x42   : > { %v191_v38 = vadd.f32 %v190_v37, %v189_v36 }
  0x44   : > { %v192_v39 = vrot.slane %v191_v38, 1 }
  0x46   : > { %v193_v40 = vadd.f32 %v192_v39, %v191_v38 }
  0x48   : > { %v194_v41 = vmul.f32 0.03125, %v193_v40 }
  0x4a   : > { %v197_v42 = vmax.f32 %v194_v41, 1e-12 }
  0x4c   : > { %357 = vrsqrt.f32 %v197_v42  ;;  %vm200_vm2 = vcmp.eq.f32.partialorder %v197_v42, inf  ;;  %v203_v44 = vand.u32 2147483648, %v197_v42  ;;  %vm202_vm3 = vcmp.eq.f32.partialorder %v197_v42, 0.0 }
  0x56   : > { %v358_v43 = vpop.eup %357 }
  0x57   : > { %v199_v45 = vmul.f32 %v358_v43, %v197_v42 }
  0x59   : > { %v201_v46 = vsel %vm200_vm2, %v197_v42, %v199_v45 }
  0x5a   : > { %v204_v47 = vsel %vm202_vm3, %v203_v44, %v201_v46 }
  0x5b   : > { %205 = vst.msk [vmem:[%s141_s30] sm:$0x1] %vm195_vm1, %v204_v47 }
  0x5c   : > { %372 = shalt.err (!%p369_p3)
}
  0x5d   : > { %s373_s21 = scalar_lea.hbm %s515_s7, 16  ;;  %s377_s24 = scalar_lea.hbm %s558_s2, 32 }
  0x5e   : > { %p374_p4 = scmp.ne.s32.totalorder %s515_s7, %s373_s21  ;;  %p378_p9 = scmp.lt.u32.totalorder %s515_s7, %s558_s2 }
  0x5f   : > { %p379_p10 = scmp.lt.u32.totalorder %s377_s24, %s373_s21  ;;  %p381_p12 = scmp.lt.u32.totalorder %s373_s21, %s515_s7 }
  0x60   : > { %p375_p7 = pnand %p374_p4, %p477_p5 }
  0x61   : > { %p380_p11 = por %p379_p10, %p378_p9 }
  0x62   : > { %p376_p8 = pneg %p375_p7 }
  0x63   : > { %p382_p13 = por %p381_p12, %p380_p11 }
  0x65   : > { %p383_p0 = pnand %p382_p13, %p376_p8 }
  0x67   : > { %386 = shalt.err (!%p383_p0)
}
  0x68   : > { %318 = dma.vmem_to_hbm [thread:$0]  (%p477_p5), %s510_s3, 16, %s515_s7, %s210_s8  }
  0x69 PF: > { %p324_p1 = scmp.ge.s32.totalorder %s421_s12, 2  ;;  %s243_s27 = sand.u32 1, %s409_s9  }
  0x6a   : > { %s244_s28 = scalar_lea.sflag [#allocation3], %s243_s27 }
  0x6b   : > { %p321_p2 = pnand %p324_p1, %p481_p6 }
  0x6d   : > { %404 = dma.done.wait (!%p321_p2), %s244_s28, 16  }
  0x6e   : > { %406 = vsyncadd (!%p321_p2), %s244_s28, 4294967280  ;;  %p13_p3 = scmp.ge.s32.totalorder %s464_s15, 4   ;;  %s561_s9 = smov %s413_s10 }
  0x6f   : > { %s562_s10 = smov %s417_s11  ;;  %s563_s11 = smov %s475_s18 }
  0x70   : > { %s564_s12 = smov %s464_s15  ;;  %15 = sbr.rel (!%p13_p3) target bundleno = 3 (0x3), region = 71 }
  0x77   :  { %248 = vsyncpa [#allocation3], 1 }
  0x78   :  { %250 = vsyncpa [#allocation3 + $0x1], 1 }

// kernel: _lambda_.44
= control target key start
LH: loop header
LB: loop body
LE: loop exit
PB: predicated region body
PF: predicated region fallthrough
CT: control target
= control target key end

     0   :  { %s726_s1 = inlined_call_operand.vmem [shape: bf16[128,128], index: 1, kind: input, shape index: {}]   ;;  %s727_s0 = inlined_call_operand.vmem [shape: bf16[128,128], index: 0, kind: input, shape index: {}]   ;;  %s728_s2 = inlined_call_operand.vmem [shape: f32[1,128], index: 2, kind: input, shape index: {}]   ;;  %s729_s3 = inlined_call_operand.vmem [shape: f32[1,128], index: 3, kind: input, shape index: {}]   ;;  %s730_s4 = inlined_call_operand.vmem [shape: f32[1,128], index: 4, kind: input, shape index: {}]   ;;  %s731_s5 = inlined_call_operand.vmem [shape: f32[128,128], index: 5, kind: output, shape index: {}]  }
   0x1   :  { %v521_v0 = vld [vmem:[%s726_s1] sm:$0xff]   ;;  %v522_v1 = vld [vmem:[%s726_s1 + $0x8] sm:$0xff]   ;;  %v523_v2 = vld [vmem:[%s726_s1 + $0x10] sm:$0xff]  }
   0x2   :  { %473 = vmatprep.subr.bf16.mxu0 %v521_v0  ;;  %505 = vmatprep.subr.bf16.mxu1 %v521_v0  ;;  %v524_v3 = vld [vmem:[%s726_s1 + $0x18] sm:$0xff]   ;;  %v529_v4 = vld [vmem:[%s727_s0] sm:$0xff]   ;;  %v526_v7 = vld [vmem:[%s726_s1 + $0x28] sm:$0xff]  }
   0x3   :  { %474 = vmatpush3.bf16.msra.mxu0 %v521_v0  ;;  %513 = vmatpush3.bf16.msra.mxu1 %v521_v0  ;;  %v530_v5 = vld [vmem:[%s727_s0 + $0x20] sm:$0xff]   ;;  %v527_v8 = vld [vmem:[%s726_s1 + $0x30] sm:$0xff]   ;;  %v528_v9 = vld [vmem:[%s726_s1 + $0x38] sm:$0xff]  }
   0x4   :  { %475 = vmatprep.subr.bf16.mxu0 %v522_v1  ;;  %506 = vmatprep.subr.bf16.mxu1 %v522_v1  ;;  %v525_v6 = vld [vmem:[%s726_s1 + $0x20] sm:$0xff]   ;;  %v531_v10 = vld [vmem:[%s727_s0 + $0x8] sm:$0xff]   ;;  %v533_v12 = vld [vmem:[%s727_s0 + $0x10] sm:$0xff]  }
   0x5   :  { %489 = vmatprep.mubr.bf16.mxu0 %v529_v4  ;;  %497 = vmatprep.mubr.bf16.mxu1 %v530_v5  ;;  %v532_v11 = vld [vmem:[%s727_s0 + $0x28] sm:$0xff]   ;;  %v534_v13 = vld [vmem:[%s727_s0 + $0x30] sm:$0xff]   ;;  %v535_v14 = vld [vmem:[%s727_s0 + $0x18] sm:$0xff]  }
   0x6   :  { %v536_v15 = vld [vmem:[%s727_s0 + $0x38] sm:$0xff]   ;;  %v618_v16 = vld [vmem:[%s728_s2] ss:$0 sm:$0xff] }
   0x7   :  { %476 = vmatpush3.bf16.msra.mxu0 %v522_v1  ;;  %514 = vmatpush3.bf16.msra.mxu1 %v522_v1  ;;  %v625_v23 = vld [vmem:[%s729_s3] ss:$0 sm:$0xff] }
   0x8   :  { %477 = vmatprep.subr.bf16.mxu0 %v523_v2  ;;  %507 = vmatprep.subr.bf16.mxu1 %v523_v2  ;;  %v634_v34 = vld [vmem:[%s730_s4] ss:$0 sm:$0xff] }
   0xb   :  { %478 = vmatpush3.bf16.msra.mxu0 %v523_v2  ;;  %515 = vmatpush3.bf16.msra.mxu1 %v523_v2 }
   0xc   :  { %479 = vmatprep.subr.bf16.mxu0 %v524_v3  ;;  %508 = vmatprep.subr.bf16.mxu1 %v524_v3 }
   0xf   :  { %480 = vmatpush3.bf16.msra.mxu0 %v524_v3  ;;  %516 = vmatpush3.bf16.msra.mxu1 %v524_v3 }
  0x10   :  { %481 = vmatprep.subr.bf16.mxu0 %v525_v6  ;;  %509 = vmatprep.subr.bf16.mxu1 %v525_v6 }
  0x13   :  { %482 = vmatpush3.bf16.msra.mxu0 %v525_v6  ;;  %517 = vmatpush3.bf16.msra.mxu1 %v525_v6 }
  0x14   :  { %483 = vmatprep.subr.bf16.mxu0 %v526_v7  ;;  %510 = vmatprep.subr.bf16.mxu1 %v526_v7 }
  0x17   :  { %484 = vmatpush3.bf16.msra.mxu0 %v526_v7  ;;  %518 = vmatpush3.bf16.msra.mxu1 %v526_v7 }
  0x18   :  { %485 = vmatprep.subr.bf16.mxu0 %v527_v8  ;;  %511 = vmatprep.subr.bf16.mxu1 %v527_v8 }
  0x1b   :  { %486 = vmatpush3.bf16.msra.mxu0 %v527_v8  ;;  %519 = vmatpush3.bf16.msra.mxu1 %v527_v8 }
  0x1c   :  { %487 = vmatprep.subr.bf16.mxu0 %v528_v9  ;;  %512 = vmatprep.subr.bf16.mxu1 %v528_v9 }
  0x1f   :  { %488 = vmatpush3.bf16.msra.mxu0 %v528_v9  ;;  %520 = vmatpush3.bf16.msra.mxu1 %v528_v9 }
  0x22   :  { %490 = vmatmul.mubr.bf16.vlgmr.msra.gmra.mrb[0].mxu0 %v531_v10  ;;  %498 = vmatmul.mubr.bf16.vlgmr.msra.gmra.mrb[0].mxu1 %v532_v11 }
  0x23   :  { %493 = vmatprep.mubr.bf16.mxu0 %v533_v12  ;;  %501 = vmatprep.mubr.bf16.mxu1 %v534_v13 }
  0x2a   :  { %494 = vmatmul.mubr.bf16.gmra.mrb[4].mxu0 %v535_v14  ;;  %502 = vmatmul.mubr.bf16.gmra.mrb[4].mxu1 %v536_v15 }
  0xf5   :  { %v491_v17 = vpop.f32.mrb[0].mxu0  ;;  %v499_v18 = vpop.f32.mrb[0].mxu1 }
  0xf6   :  { %v342_v19 = vadd.f32 %v491_v17, %v618_v16  ;;  %v350_v20 = vadd.f32 %v499_v18, %v618_v16  ;;  %v219_v21 = vpop.f32.mrb[1].mxu0  ;;  %v251_v22 = vpop.f32.mrb[1].mxu1 }
  0xf7   :  { %v340_v24 = vadd.f32 %v618_v16, %v219_v21  ;;  %v348_v25 = vadd.f32 %v618_v16, %v251_v22  ;;  %v492_v26 = vpop.f32.mrb[2].mxu0  ;;  %v500_v27 = vpop.f32.mrb[2].mxu1 }
  0xf8   :  { %v358_v28 = vmax.f32 %v342_v19, 0.0  ;;  %v366_v29 = vmax.f32 %v350_v20, 0.0  ;;  %v343_v30 = vadd.f32 %v492_v26, %v618_v16  ;;  %v351_v31 = vadd.f32 %v500_v27, %v618_v16  ;;  %v222_v32 = vpop.f32.mrb[3].mxu0  ;;  %v254_v33 = vpop.f32.mrb[3].mxu1 }
  0xf9   :  { %v356_v35 = vmax.f32 %v340_v24, 0.0  ;;  %v364_v36 = vmax.f32 %v348_v25, 0.0  ;;  %v341_v37 = vadd.f32 %v618_v16, %v222_v32  ;;  %v349_v38 = vadd.f32 %v618_v16, %v254_v33 }
  0xfa   :  { %v381_v39 = vmul.f32 %v625_v23, %v358_v28  ;;  %v389_v40 = vmul.f32 %v625_v23, %v366_v29  ;;  %v359_v41 = vmax.f32 %v343_v30, 0.0  ;;  %v367_v42 = vmax.f32 %v351_v31, 0.0 }
  0xfb   :  { %v379_v43 = vmul.f32 %v625_v23, %v356_v35  ;;  %v387_v44 = vmul.f32 %v625_v23, %v364_v36  ;;  %v357_v45 = vmax.f32 %v341_v37, 0.0  ;;  %v365_v46 = vmax.f32 %v349_v38, 0.0 }
  0xfc   :  { %v404_v47 = vadd.f32 %v634_v34, %v381_v39  ;;  %v412_v48 = vadd.f32 %v634_v34, %v389_v40  ;;  %v382_v49 = vmul.f32 %v625_v23, %v359_v41  ;;  %v390_v50 = vmul.f32 %v625_v23, %v367_v42 }
  0xfd   :  { %v402_v51 = vadd.f32 %v634_v34, %v379_v43  ;;  %v410_v52 = vadd.f32 %v634_v34, %v387_v44  ;;  %v380_v53 = vmul.f32 %v625_v23, %v357_v45  ;;  %v388_v54 = vmul.f32 %v625_v23, %v365_v46  ;;  %v495_v55 = vpop.f32.mrb[4].mxu0  ;;  %v503_v56 = vpop.f32.mrb[4].mxu1 }
  0xfe   :  { %420 = vst [vmem:[%s731_s5 + $0x10] sm:$0xff] %v404_v47  ;;  %428 = vst [vmem:[%s731_s5 + $0x50] sm:$0xff] %v412_v48  ;;  %v405_v57 = vadd.f32 %v634_v34, %v382_v49  ;;  %v413_v58 = vadd.f32 %v634_v34, %v390_v50  ;;  %v346_v59 = vadd.f32 %v495_v55, %v618_v16  ;;  %v235_v61 = vpop.f32.mrb[5].mxu0  ;;  %v267_v62 = vpop.f32.mrb[5].mxu1 }
  0xff   :  { %v354_v60 = vadd.f32 %v503_v56, %v618_v16  ;;  %418 = vst [vmem:[%s731_s5] sm:$0xff] %v402_v51  ;;  %426 = vst [vmem:[%s731_s5 + $0x40] sm:$0xff] %v410_v52  ;;  %v403_v63 = vadd.f32 %v634_v34, %v380_v53  ;;  %v411_v0 = vadd.f32 %v634_v34, %v388_v54  ;;  %v496_v3 = vpop.f32.mrb[6].mxu0  ;;  %v504_v4 = vpop.f32.mrb[6].mxu1 }
 0x100   :  { %v344_v1 = vadd.f32 %v618_v16, %v235_v61  ;;  %v352_v2 = vadd.f32 %v618_v16, %v267_v62  ;;  %421 = vst [vmem:[%s731_s5 + $0x18] sm:$0xff] %v405_v57  ;;  %429 = vst [vmem:[%s731_s5 + $0x58] sm:$0xff] %v413_v58  ;;  %v362_v5 = vmax.f32 %v346_v59, 0.0  ;;  %v347_v7 = vadd.f32 %v496_v3, %v618_v16  ;;  %v238_v9 = vpop.f32.mrb[7].mxu0  ;;  %v270_v10 = vpop.f32.mrb[7].mxu1 }
 0x101   :  { %v370_v6 = vmax.f32 %v354_v60, 0.0  ;;  %v355_v8 = vadd.f32 %v504_v4, %v618_v16  ;;  %419 = vst [vmem:[%s731_s5 + $0x8] sm:$0xff] %v403_v63  ;;  %427 = vst [vmem:[%s731_s5 + $0x48] sm:$0xff] %v411_v0  ;;  %v345_v13 = vadd.f32 %v618_v16, %v238_v9  ;;  %v353_v14 = vadd.f32 %v618_v16, %v270_v10 }
 0x102   :  { %v360_v11 = vmax.f32 %v344_v1, 0.0  ;;  %v368_v12 = vmax.f32 %v352_v2, 0.0  ;;  %v385_v15 = vmul.f32 %v625_v23, %v362_v5  ;;  %v363_v18 = vmax.f32 %v347_v7, 0.0 }
 0x103   :  { %v393_v17 = vmul.f32 %v625_v23, %v370_v6  ;;  %v371_v19 = vmax.f32 %v355_v8, 0.0  ;;  %v361_v22 = vmax.f32 %v345_v13, 0.0  ;;  %v369_v24 = vmax.f32 %v353_v14, 0.0 }
 0x104   :  { %v383_v20 = vmul.f32 %v625_v23, %v360_v11  ;;  %v391_v21 = vmul.f32 %v625_v23, %v368_v12  ;;  %v408_v25 = vadd.f32 %v634_v34, %v385_v15  ;;  %v386_v27 = vmul.f32 %v625_v23, %v363_v18 }
 0x105   :  { %v416_v26 = vadd.f32 %v634_v34, %v393_v17  ;;  %v394_v16 = vmul.f32 %v625_v23, %v371_v19  ;;  %v384_v30 = vmul.f32 %v625_v23, %v361_v22  ;;  %v392_v31 = vmul.f32 %v625_v23, %v369_v24 }
 0x106   :  { %v406_v28 = vadd.f32 %v634_v34, %v383_v20  ;;  %v414_v29 = vadd.f32 %v634_v34, %v391_v21  ;;  %424 = vst [vmem:[%s731_s5 + $0x30] sm:$0xff] %v408_v25  ;;  %v409_v32 = vadd.f32 %v634_v34, %v386_v27 }
 0x107   :  { %432 = vst [vmem:[%s731_s5 + $0x70] sm:$0xff] %v416_v26  ;;  %v417_v33 = vadd.f32 %v634_v34, %v394_v16  ;;  %v407_v23 = vadd.f32 %v634_v34, %v384_v30  ;;  %v415_v35 = vadd.f32 %v634_v34, %v392_v31 }
 0x108   :  { %422 = vst [vmem:[%s731_s5 + $0x20] sm:$0xff] %v406_v28  ;;  %430 = vst [vmem:[%s731_s5 + $0x60] sm:$0xff] %v414_v29 }
 0x109   :  { %425 = vst [vmem:[%s731_s5 + $0x38] sm:$0xff] %v409_v32  ;;  %433 = vst [vmem:[%s731_s5 + $0x78] sm:$0xff] %v417_v33 }
 0x10a   :  { %423 = vst [vmem:[%s731_s5 + $0x28] sm:$0xff] %v407_v23  ;;  %431 = vst [vmem:[%s731_s5 + $0x68] sm:$0xff] %v415_v35 }

// kernel: _lambda_.46
= control target key start
LH: loop header
LB: loop body
LE: loop exit
PB: predicated region body
PF: predicated region fallthrough
CT: control target
= control target key end

     0   :  { %s536_s12 = smov 0   ;;  %s538_s13 = smov 0   ;;  %s593_s0 = inlined_call_operand.vmem [shape: bf16[2,32,32], index: 0, kind: input, shape index: {}]   ;;  %s594_s1 = inlined_call_operand.vmem [shape: f32[2,1,32], index: 1, kind: input, shape index: {}]   ;;  %s595_s2 = inlined_call_operand.vmem [shape: bf16[2,32,32], index: 2, kind: input, shape index: {}]   ;;  %s596_s3 = inlined_call_operand.vmem [shape: bf16[2,32,32], index: 3, kind: output, shape index: {}]  }
   0x1   :  { %s540_s14 = smov 0   ;;  %s542_s15 = smov 0  }
   0x2   :  { %s544_s16 = smov 0  }
   0x3 LB: > { %s22_s17 = sadd.s32 1, %s506_s14  ;;  %s25_s18 = sadd.s32 1, %s510_s15  ;;  %s514_s16 = sphi %s544_s16, %s13_s16   ;;  %s510_s15 = sphi %s542_s15, %s600_s15   ;;  %s506_s14 = sphi %s540_s14, %s599_s14   ;;  %s502_s13 = sphi %s538_s13, %s598_s13   ;;  %s498_s12 = sphi %s536_s12, %s597_s12  }
   0x4   : > { %p23_p0 = scmp.ge.s32.totalorder %s22_s17, 2  ;;  %p411_p1 = scmp.ge.s32.totalorder %s514_s16, 1 }
   0x5   : > { %p183_p2 = scmp.lt.s32.totalorder %s514_s16, 5 }
   0x6   : > { %s602_s17 = smov (%p23_p0, %s22_s17), 0  ;;  %s604_s18 = smov (!%p23_p0, %s25_s18), %s510_s15 }
   0x7   : > { %p184_p3 = pnand %p411_p1, %p183_p2  ;;  %p27_p4 = scmp.ge.s32.totalorder %s604_s18, 2 }
   0x8   : > { %s412_s19 = sshll.u32 (!%p184_p3), %s498_s12, 1  ;;  %p228_p5 = scmp.lt.s32.totalorder (!%p184_p3), %s502_s13, 1  ;;  %vm287_vm0 = vcmask (!%p184_p3), 257024  }
   0x9   : > { %s606_s18 = smov (%p27_p4, %s604_s18), 0  ;;  %187 = sbr.rel (%p184_p3) target bundleno = 31 (0x1f), region = 32 }
   0xa   : > { %p230_p6 = scmp.lt.s32.totalorder (!%p184_p3), %s412_s19, 3 }
  0x10   : > { %s608_s13 = smov (!%p228_p5, %s502_s13), 1  ;;  %s610_s19 = smov (!%p230_p6, %s412_s19), 3 }
  0x11   : > { %s413_s20 = sshll.u32 %s608_s13, 2  ;;  %s239_s24 = scalar_lea.vmem %s594_s1, %s608_s13 }
  0x12   : > { %s233_s21 = sadd.s32 %s413_s20, %s610_s19  ;;  %v421_v1 = vld [vmem:[%s239_s24] ss:$0 sm:$0xff] }
  0x13   : > { %s414_s25 = sshll.u32 %s233_s21, 2 }
  0x14   : > { %s235_s28 = scalar_lea.vmem %s593_s0, %s414_s25  ;;  %s248_s4 = scalar_lea.vmem %s595_s2, %s414_s25 }
  0x15   : > { %v429_v0 = vld [vmem:[%s235_s28] sm:$0xff]   ;;  %s258_s7 = scalar_lea.vmem %s596_s3, %s414_s25 }
  0x16   : > { %v433_v2 = vld [vmem:[%s248_s4] sm:$0xff]   ;;  %v430_v3 = vunpack.c.l.bf16 %v429_v0  ;;  %v431_v4 = vunpack.c.h.bf16 %v429_v0 }
  0x17   : > { %v434_v5 = vunpack.c.l.bf16 %v433_v2  ;;  %v435_v6 = vunpack.c.h.bf16 %v433_v2 }
  0x18   : > { %v271_v7 = vmul.f32 %v430_v3, %v421_v1  ;;  %v272_v8 = vmul.f32 %v431_v4, %v421_v1 }
  0x1a   : > { %v277_v9 = vadd.f32 %v434_v5, %v271_v7  ;;  %v278_v10 = vadd.f32 %v435_v6, %v272_v8 }
  0x1c   : > { %v426_v11 = vpack.c.bf16 %v277_v9, %v277_v9  ;;  %v427_v12 = vpack.c.bf16 %v278_v10, %v278_v10 }
  0x1e   : > { %288 = vst.msk [vmem:[%s258_s7] sm:$0xf] %vm287_vm0, %v426_v11  ;;  %289 = vst.msk [vmem:[%s258_s7 + $0x4] sm:$0xf] %vm287_vm0, %v427_v12 }
  0x1f PF: > { %s13_s16 = sadd.s32 1, %s514_s16   ;;  %s597_s12 = smov %s506_s14 }
  0x20   : > { %p10_p7 = scmp.ge.s32.totalorder %s13_s16, 6   ;;  %s598_s13 = smov %s510_s15 }
  0x21   : > { %s599_s14 = smov %s602_s17  ;;  %s600_s15 = smov %s606_s18 }
  0x22   :  { %12 = sbr.rel (!%p10_p7) target bundleno = 3 (0x3), region = 68 }

// kernel: _lambda_.45
= control target key start
LH: loop header
LB: loop body
LE: loop exit
PB: predicated region body
PF: predicated region fallthrough
CT: control target
= control target key end

     0   :  { %s886_s1 = inlined_call_operand.vmem [shape: bf16[128,128], index: 1, kind: input, shape index: {}]   ;;  %s887_s0 = inlined_call_operand.vmem [shape: bf16[128,128], index: 0, kind: input, shape index: {}]   ;;  %s888_s2 = inlined_call_operand.vmem [shape: f32[1,128], index: 2, kind: input, shape index: {}]   ;;  %s889_s3 = inlined_call_operand.vmem [shape: f32[1,128], index: 3, kind: input, shape index: {}]   ;;  %s890_s4 = inlined_call_operand.vmem [shape: f32[1,128], index: 4, kind: input, shape index: {}]   ;;  %s891_s5 = inlined_call_operand.vmem [shape: f32[128,128], index: 5, kind: output, shape index: {}]  }
   0x1   :  { %v617_v0 = vld [vmem:[%s886_s1] sm:$0xff]   ;;  %v618_v1 = vld [vmem:[%s886_s1 + $0x8] sm:$0xff]   ;;  %v619_v2 = vld [vmem:[%s886_s1 + $0x10] sm:$0xff]  }
   0x2   :  { %569 = vmatprep.subr.bf16.mxu0 %v617_v0  ;;  %601 = vmatprep.subr.bf16.mxu1 %v617_v0  ;;  %v620_v3 = vld [vmem:[%s886_s1 + $0x18] sm:$0xff]   ;;  %v625_v4 = vld [vmem:[%s887_s0] sm:$0xff]   ;;  %v622_v7 = vld [vmem:[%s886_s1 + $0x28] sm:$0xff]  }
   0x3   :  { %570 = vmatpush3.bf16.msra.mxu0 %v617_v0  ;;  %609 = vmatpush3.bf16.msra.mxu1 %v617_v0  ;;  %v626_v5 = vld [vmem:[%s887_s0 + $0x20] sm:$0xff]   ;;  %v623_v8 = vld [vmem:[%s886_s1 + $0x30] sm:$0xff]   ;;  %v624_v9 = vld [vmem:[%s886_s1 + $0x38] sm:$0xff]  }
   0x4   :  { %571 = vmatprep.subr.bf16.mxu0 %v618_v1  ;;  %602 = vmatprep.subr.bf16.mxu1 %v618_v1  ;;  %v621_v6 = vld [vmem:[%s886_s1 + $0x20] sm:$0xff]   ;;  %v627_v10 = vld [vmem:[%s887_s0 + $0x8] sm:$0xff]   ;;  %v629_v12 = vld [vmem:[%s887_s0 + $0x10] sm:$0xff]  }
   0x5   :  { %585 = vmatprep.mubr.bf16.mxu0 %v625_v4  ;;  %593 = vmatprep.mubr.bf16.mxu1 %v626_v5  ;;  %v628_v11 = vld [vmem:[%s887_s0 + $0x28] sm:$0xff]   ;;  %v630_v13 = vld [vmem:[%s887_s0 + $0x30] sm:$0xff]   ;;  %v631_v14 = vld [vmem:[%s887_s0 + $0x18] sm:$0xff]  }
   0x6   :  { %v632_v15 = vld [vmem:[%s887_s0 + $0x38] sm:$0xff]   ;;  %v778_v16 = vld [vmem:[%s888_s2] ss:$0 sm:$0xff] }
   0x7   :  { %572 = vmatpush3.bf16.msra.mxu0 %v618_v1  ;;  %610 = vmatpush3.bf16.msra.mxu1 %v618_v1 }
   0x8   :  { %573 = vmatprep.subr.bf16.mxu0 %v619_v2  ;;  %603 = vmatprep.subr.bf16.mxu1 %v619_v2 }
   0xb   :  { %574 = vmatpush3.bf16.msra.mxu0 %v619_v2  ;;  %611 = vmatpush3.bf16.msra.mxu1 %v619_v2 }
   0xc   :  { %575 = vmatprep.subr.bf16.mxu0 %v620_v3  ;;  %604 = vmatprep.subr.bf16.mxu1 %v620_v3 }
   0xf   :  { %576 = vmatpush3.bf16.msra.mxu0 %v620_v3  ;;  %612 = vmatpush3.bf16.msra.mxu1 %v620_v3 }
  0x10   :  { %577 = vmatprep.subr.bf16.mxu0 %v621_v6  ;;  %605 = vmatprep.subr.bf16.mxu1 %v621_v6 }
  0x13   :  { %578 = vmatpush3.bf16.msra.mxu0 %v621_v6  ;;  %613 = vmatpush3.bf16.msra.mxu1 %v621_v6 }
  0x14   :  { %579 = vmatprep.subr.bf16.mxu0 %v622_v7  ;;  %606 = vmatprep.subr.bf16.mxu1 %v622_v7 }
  0x17   :  { %580 = vmatpush3.bf16.msra.mxu0 %v622_v7  ;;  %614 = vmatpush3.bf16.msra.mxu1 %v622_v7 }
  0x18   :  { %581 = vmatprep.subr.bf16.mxu0 %v623_v8  ;;  %607 = vmatprep.subr.bf16.mxu1 %v623_v8 }
  0x1b   :  { %582 = vmatpush3.bf16.msra.mxu0 %v623_v8  ;;  %615 = vmatpush3.bf16.msra.mxu1 %v623_v8 }
  0x1c   :  { %583 = vmatprep.subr.bf16.mxu0 %v624_v9  ;;  %608 = vmatprep.subr.bf16.mxu1 %v624_v9 }
  0x1f   :  { %584 = vmatpush3.bf16.msra.mxu0 %v624_v9  ;;  %616 = vmatpush3.bf16.msra.mxu1 %v624_v9 }
  0x22   :  { %586 = vmatmul.mubr.bf16.vlgmr.msra.gmra.mrb[0].mxu0 %v627_v10  ;;  %594 = vmatmul.mubr.bf16.vlgmr.msra.gmra.mrb[0].mxu1 %v628_v11 }
  0x23   :  { %589 = vmatprep.mubr.bf16.mxu0 %v629_v12  ;;  %597 = vmatprep.mubr.bf16.mxu1 %v630_v13 }
  0x2a   :  { %590 = vmatmul.mubr.bf16.gmra.mrb[4].mxu0 %v631_v14  ;;  %598 = vmatmul.mubr.bf16.gmra.mrb[4].mxu1 %v632_v15 }
  0xf5   :  { %v587_v17 = vpop.f32.mrb[0].mxu0  ;;  %v595_v18 = vpop.f32.mrb[0].mxu1 }
  0xf6   :  { %v342_v19 = vadd.f32 %v587_v17, %v778_v16  ;;  %v350_v20 = vadd.f32 %v595_v18, %v778_v16  ;;  %v219_v21 = vpop.f32.mrb[1].mxu0  ;;  %v251_v22 = vpop.f32.mrb[1].mxu1 }
  0xf7   :  { %v340_v23 = vadd.f32 %v778_v16, %v219_v21  ;;  %v348_v24 = vadd.f32 %v778_v16, %v251_v22  ;;  %v588_v25 = vpop.f32.mrb[2].mxu0  ;;  %v596_v26 = vpop.f32.mrb[2].mxu1  ;;  %v799_v21 = vld [vmem:[%s889_s3] ss:$0 sm:$0xff] }
  0xf8   :  { %v537_v27 = vmul.f32 -1.442695, %v342_v19  ;;  %v545_v28 = vmul.f32 -1.442695, %v350_v20  ;;  %v343_v29 = vadd.f32 %v588_v25, %v778_v16  ;;  %v351_v30 = vadd.f32 %v596_v26, %v778_v16  ;;  %v222_v31 = vpop.f32.mrb[3].mxu0  ;;  %v254_v32 = vpop.f32.mrb[3].mxu1 }
  0xf9   :  { %v535_v33 = vmul.f32 -1.442695, %v340_v23  ;;  %v543_v34 = vmul.f32 -1.442695, %v348_v24  ;;  %v341_v35 = vadd.f32 %v778_v16, %v222_v31  ;;  %v349_v36 = vadd.f32 %v778_v16, %v254_v32 }
  0xfa   :  { %633 = vpow2.f32 %v537_v27  ;;  %v538_v37 = vmul.f32 -1.442695, %v343_v29  ;;  %v546_v38 = vmul.f32 -1.442695, %v351_v30  ;;  %v804_v27 = vld [vmem:[%s890_s4] ss:$0 sm:$0xff] }
  0xfb   :  { %635 = vpow2.f32 %v545_v28  ;;  %v536_v39 = vmul.f32 -1.442695, %v341_v35  ;;  %v544_v40 = vmul.f32 -1.442695, %v349_v36 }
  0xfc   :  { %637 = vpow2.f32 %v535_v33 }
  0xfd   :  { %639 = vpow2.f32 %v543_v34  ;;  %v591_v41 = vpop.f32.mrb[4].mxu0  ;;  %v599_v42 = vpop.f32.mrb[4].mxu1 }
  0xfe   :  { %641 = vpow2.f32 %v538_v37  ;;  %v346_v43 = vadd.f32 %v591_v41, %v778_v16  ;;  %v354_v44 = vadd.f32 %v599_v42, %v778_v16  ;;  %v235_v45 = vpop.f32.mrb[5].mxu0  ;;  %v267_v46 = vpop.f32.mrb[5].mxu1 }
  0xff   :  { %643 = vpow2.f32 %v546_v38  ;;  %v344_v47 = vadd.f32 %v778_v16, %v235_v45  ;;  %v352_v48 = vadd.f32 %v778_v16, %v267_v46  ;;  %v592_v49 = vpop.f32.mrb[6].mxu0  ;;  %v600_v50 = vpop.f32.mrb[6].mxu1 }
 0x100   :  { %645 = vpow2.f32 %v536_v39  ;;  %v541_v51 = vmul.f32 -1.442695, %v346_v43  ;;  %v549_v52 = vmul.f32 -1.442695, %v354_v44  ;;  %v347_v53 = vadd.f32 %v592_v49, %v778_v16  ;;  %v238_v54 = vpop.f32.mrb[7].mxu0  ;;  %v270_v55 = vpop.f32.mrb[7].mxu1 }
 0x101   :  { %647 = vpow2.f32 %v544_v40  ;;  %v539_v56 = vmul.f32 -1.442695, %v344_v47  ;;  %v547_v57 = vmul.f32 -1.442695, %v352_v48  ;;  %v355_v12 = vadd.f32 %v600_v50, %v778_v16 }
 0x102   :  { %649 = vpow2.f32 %v541_v51  ;;  %v542_v58 = vmul.f32 -1.442695, %v347_v53  ;;  %v345_v15 = vadd.f32 %v778_v16, %v238_v54  ;;  %v353_v19 = vadd.f32 %v778_v16, %v270_v55 }
 0x103   :  { %651 = vpow2.f32 %v549_v52  ;;  %v550_v25 = vmul.f32 -1.442695, %v355_v12 }
 0x104   :  { %v634_v59 = vpop.eup %633  ;;  %653 = vpow2.f32 %v539_v56  ;;  %v540_v28 = vmul.f32 -1.442695, %v345_v15  ;;  %v548_v31 = vmul.f32 -1.442695, %v353_v19 }
 0x105   :  { %v636_v60 = vpop.eup %635  ;;  %v406_v61 = vadd.f32 1.0, %v634_v59  ;;  %655 = vpow2.f32 %v547_v57 }
 0x106   :  { %v638_v62 = vpop.eup %637  ;;  %v414_v63 = vadd.f32 1.0, %v636_v60  ;;  %657 = vpow2.f32 %v542_v58 }
 0x107   :  { %v640_v0 = vpop.eup %639  ;;  %659 = vrcp.f32 %v406_v61  ;;  %v404_v1 = vadd.f32 1.0, %v638_v62 }
 0x108   :  { %v642_v2 = vpop.eup %641  ;;  %661 = vrcp.f32 %v414_v63  ;;  %v412_v3 = vadd.f32 1.0, %v640_v0 }
 0x109   :  { %v644_v4 = vpop.eup %643  ;;  %663 = vrcp.f32 %v404_v1  ;;  %v407_v5 = vadd.f32 1.0, %v642_v2 }
 0x10a   :  { %v646_v6 = vpop.eup %645  ;;  %665 = vrcp.f32 %v412_v3  ;;  %v415_v7 = vadd.f32 1.0, %v644_v4 }
 0x10b   :  { %v648_v8 = vpop.eup %647  ;;  %667 = vrcp.f32 %v407_v5  ;;  %v405_v9 = vadd.f32 1.0, %v646_v6 }
 0x10c   :  { %v650_v10 = vpop.eup %649  ;;  %669 = vrcp.f32 %v415_v7  ;;  %v413_v11 = vadd.f32 1.0, %v648_v8 }
 0x10d   :  { %v652_v13 = vpop.eup %651  ;;  %671 = vrcp.f32 %v405_v9  ;;  %v410_v14 = vadd.f32 1.0, %v650_v10 }
 0x10e   :  { %v654_v17 = vpop.eup %653  ;;  %673 = vrcp.f32 %v413_v11  ;;  %v418_v18 = vadd.f32 1.0, %v652_v13 }
 0x10f   :  { %v656_v20 = vpop.eup %655  ;;  %675 = vrcp.f32 %v410_v14  ;;  %v408_v22 = vadd.f32 1.0, %v654_v17 }
 0x110   :  { %v658_v23 = vpop.eup %657  ;;  %677 = vrcp.f32 %v418_v18  ;;  %v416_v24 = vadd.f32 1.0, %v656_v20 }
 0x111   :  { %v660_v26 = vpop.eup %659  ;;  %679 = vrcp.f32 %v408_v22  ;;  %v411_v16 = vadd.f32 1.0, %v658_v23 }
 0x112   :  { %v662_v29 = vpop.eup %661  ;;  %v461_v30 = vmul.f32 %v660_v26, %v799_v21  ;;  %681 = vrcp.f32 %v416_v24 }
 0x113   :  { %v664_v32 = vpop.eup %663  ;;  %v469_v33 = vmul.f32 %v662_v29, %v799_v21  ;;  %683 = vrcp.f32 %v411_v16 }
 0x114   :  { %v666_v34 = vpop.eup %665  ;;  %v484_v35 = vadd.f32 %v804_v27, %v461_v30  ;;  %v459_v36 = vmul.f32 %v664_v32, %v799_v21  ;;  %685 = vpow2.f32 %v550_v25 }
 0x115   :  { %v668_v37 = vpop.eup %667  ;;  %v492_v38 = vadd.f32 %v804_v27, %v469_v33  ;;  %v467_v39 = vmul.f32 %v666_v34, %v799_v21  ;;  %687 = vpow2.f32 %v540_v28 }
 0x116   :  { %v670_v40 = vpop.eup %669  ;;  %500 = vst [vmem:[%s891_s5 + $0x10] sm:$0xff] %v484_v35  ;;  %v482_v41 = vadd.f32 %v804_v27, %v459_v36  ;;  %v462_v42 = vmul.f32 %v668_v37, %v799_v21  ;;  %689 = vpow2.f32 %v548_v31 }
 0x117   :  { %v672_v43 = vpop.eup %671  ;;  %508 = vst [vmem:[%s891_s5 + $0x50] sm:$0xff] %v492_v38  ;;  %v490_v44 = vadd.f32 %v804_v27, %v467_v39  ;;  %v470_v45 = vmul.f32 %v670_v40, %v799_v21 }
 0x118   :  { %v674_v46 = vpop.eup %673  ;;  %498 = vst [vmem:[%s891_s5] sm:$0xff] %v482_v41  ;;  %v485_v47 = vadd.f32 %v804_v27, %v462_v42  ;;  %v460_v48 = vmul.f32 %v672_v43, %v799_v21 }
 0x119   :  { %v676_v49 = vpop.eup %675  ;;  %506 = vst [vmem:[%s891_s5 + $0x40] sm:$0xff] %v490_v44  ;;  %v493_v50 = vadd.f32 %v804_v27, %v470_v45  ;;  %v468_v51 = vmul.f32 %v674_v46, %v799_v21 }
 0x11a   :  { %v678_v52 = vpop.eup %677  ;;  %501 = vst [vmem:[%s891_s5 + $0x18] sm:$0xff] %v485_v47  ;;  %v483_v53 = vadd.f32 %v804_v27, %v460_v48  ;;  %v465_v54 = vmul.f32 %v676_v49, %v799_v21 }
 0x11b   :  { %v680_v55 = vpop.eup %679  ;;  %509 = vst [vmem:[%s891_s5 + $0x58] sm:$0xff] %v493_v50  ;;  %v491_v56 = vadd.f32 %v804_v27, %v468_v51  ;;  %v473_v57 = vmul.f32 %v678_v52, %v799_v21 }
 0x11c   :  { %v682_v58 = vpop.eup %681  ;;  %499 = vst [vmem:[%s891_s5 + $0x8] sm:$0xff] %v483_v53  ;;  %v488_v59 = vadd.f32 %v804_v27, %v465_v54  ;;  %v463_v60 = vmul.f32 %v680_v55, %v799_v21 }
 0x11d   :  { %v684_v61 = vpop.eup %683  ;;  %507 = vst [vmem:[%s891_s5 + $0x48] sm:$0xff] %v491_v56  ;;  %v496_v62 = vadd.f32 %v804_v27, %v473_v57  ;;  %v471_v63 = vmul.f32 %v682_v58, %v799_v21 }
 0x11e   :  { %v686_v0 = vpop.eup %685  ;;  %504 = vst [vmem:[%s891_s5 + $0x30] sm:$0xff] %v488_v59  ;;  %v486_v1 = vadd.f32 %v804_v27, %v463_v60  ;;  %v466_v2 = vmul.f32 %v684_v61, %v799_v21 }
 0x11f   :  { %v688_v3 = vpop.eup %687  ;;  %512 = vst [vmem:[%s891_s5 + $0x70] sm:$0xff] %v496_v62  ;;  %v494_v4 = vadd.f32 %v804_v27, %v471_v63  ;;  %v419_v5 = vadd.f32 1.0, %v686_v0 }
 0x120   :  { %v690_v6 = vpop.eup %689  ;;  %502 = vst [vmem:[%s891_s5 + $0x20] sm:$0xff] %v486_v1  ;;  %v489_v7 = vadd.f32 %v804_v27, %v466_v2  ;;  %v409_v8 = vadd.f32 1.0, %v688_v3 }
 0x121   :  { %510 = vst [vmem:[%s891_s5 + $0x60] sm:$0xff] %v494_v4  ;;  %691 = vrcp.f32 %v419_v5  ;;  %v417_v9 = vadd.f32 1.0, %v690_v6 }
 0x122   :  { %505 = vst [vmem:[%s891_s5 + $0x38] sm:$0xff] %v489_v7  ;;  %693 = vrcp.f32 %v409_v8 }
 0x123   :  { %695 = vrcp.f32 %v417_v9 }
 0x12b   :  { %v692_v10 = vpop.eup %691 }
 0x12c   :  { %v694_v11 = vpop.eup %693  ;;  %v474_v12 = vmul.f32 %v692_v10, %v799_v21 }
 0x12d   :  { %v696_v13 = vpop.eup %695  ;;  %v464_v14 = vmul.f32 %v694_v11, %v799_v21 }
 0x12e   :  { %v497_v15 = vadd.f32 %v804_v27, %v474_v12  ;;  %v472_v17 = vmul.f32 %v696_v13, %v799_v21 }
 0x12f   :  { %v487_v18 = vadd.f32 %v804_v27, %v464_v14 }
 0x130   :  { %513 = vst [vmem:[%s891_s5 + $0x78] sm:$0xff] %v497_v15  ;;  %v495_v19 = vadd.f32 %v804_v27, %v472_v17 }
 0x131   :  { %503 = vst [vmem:[%s891_s5 + $0x28] sm:$0xff] %v487_v18 }
 0x132   :  { %511 = vst [vmem:[%s891_s5 + $0x68] sm:$0xff] %v495_v19 }

// kernel: _lambda_.48
= control target key start
LH: loop header
LB: loop body
LE: loop exit
PB: predicated region body
PF: predicated region fallthrough
CT: control target
= control target key end

     0   :  { %s974_s21 = smov 0   ;;  %s976_s22 = smov 0   ;;  %s1047_s0 = inlined_call_operand.vmem [shape: bf16[2,38,8], index: 0, kind: input, shape index: {}]   ;;  %s1048_s1 = inlined_call_operand.vmem [shape: bf16[3,8,128], index: 1, kind: input, shape index: {}]   ;;  %s1049_s2 = inlined_call_operand.vmem [shape: f32[1,128], index: 2, kind: input, shape index: {}]   ;;  %s1050_s3 = inlined_call_operand.vmem [shape: f32[2,1,128], index: 3, kind: input, shape index: {}]   ;;  %s1051_s4 = inlined_call_operand.vmem [shape: f32[1,128], index: 4, kind: input, shape index: {}]   ;;  %s1052_s5 = inlined_call_operand.vmem [shape: f32[1,128], index: 5, kind: input, shape index: {}]   ;;  %s1053_s6 = inlined_call_operand.vmem [shape: bf16[2,32,128], index: 6, kind: output, shape index: {}]  }
   0x1   :  { %s978_s23 = smov 0  }
   0x2 LB: > { %s28_s24 = sadd.s32 1, %s933_s22  ;;  %p808_p0 = scmp.ge.s32.totalorder %s937_s23, 1  ;;  %s937_s23 = sphi %s978_s23, %s16_s23   ;;  %s933_s22 = sphi %s976_s22, %s1055_s22   ;;  %s929_s21 = sphi %s974_s21, %s1054_s21  }
   0x3   : > { %p30_p1 = scmp.ge.s32.totalorder %s28_s24, 2  ;;  %p272_p2 = scmp.lt.s32.totalorder %s937_s23, 3 }
   0x5   : > { %s1057_s24 = smov (%p30_p1, %s28_s24), 0  ;;  %p273_p3 = pnand %p808_p0, %p272_p2 }
   0x6   : > { %v362_v0 = vld [vmem:[%s1048_s1] sm:$0xf] (!%p273_p3)  ;;  %vm412_vm0 = vcmask (!%p273_p3), 1043456   ;;  %p324_p4 = scmp.lt.s32.totalorder (!%p273_p3), %s929_s21, 1  ;;  %v820_v2 = vld [vmem:[%s1048_s1 + $0x8] sm:$0xf] (!%p273_p3) }
   0x7   : > { %276 = sbr.rel (%p273_p3) target bundleno = 262 (0x106), region = 44  ;;  %885 = vmatprep.subr.msk.bf16.mxu0 (!%p273_p3), %vm412_vm0, %v362_v0  ;;  %v470_v1 = vsel (!%p273_p3), %vm412_vm0, %v362_v0, 0  ;;  %v812_v3 = vld [vmem:[%s1048_s1 + $0x4] sm:$0xf] (!%p273_p3)  ;;  %vm405_vm1 = vcmask (!%p273_p3), 64512   ;;  %v536_v7 = vsel (!%p273_p3), %vm412_vm0, %v820_v2, 0 }
   0x8   : > { %865 = vmatpush3.bf16.msra.mxu0 (!%p273_p3), %v470_v1  ;;  %884 = vmatprep.subr.msk.bf16.mxu1 (!%p273_p3), %vm412_vm0, %v812_v3  ;;  %v414_v4 = vsel (!%p273_p3), %vm412_vm0, %v812_v3, 0  ;;  %vm523_vm2 = vcmask (!%p273_p3), 1044480   ;;  %vm378_vm3 = vsmask.f32 (!%p273_p3), 6400  ;;  %v823_v36 = vld [vmem:[%s1049_s2] ss:$0 sm:$0xff] (!%p273_p3) }
   0x9   : > { %886 = vmatprep.subr.msk.bf16.mxu0 (!%p273_p3), %vm412_vm0, %v820_v2  ;;  %859 = vmatpush3.bf16.msra.mxu1 (!%p273_p3), %v414_v4  ;;  %v825_v49 = vld [vmem:[%s1051_s4] ss:$0 sm:$0xff] (!%p273_p3) }
   0xa   : > { %v826_v58 = vld [vmem:[%s1052_s5] ss:$0 sm:$0xff] (!%p273_p3) }
   0xe   : > { %s1059_s21 = smov (!%p324_p4, %s929_s21), 1 }
   0xf   : > { %s887_s7 = smul.u32 20, %s1059_s21  ;;  %s341_s13 = scalar_lea.vmem %s1050_s3, %s1059_s21 }
  0x10   : > { %v824_v39 = vld [vmem:[%s341_s13] ss:$0 sm:$0xff]  ;;  %s833_s20 = sshll.u32 %s1059_s21, 4 }
  0x11   : > { %s328_s10 = scalar_lea.vmem %s1047_s0, %s887_s7  ;;  %s355_s27 = scalar_lea.vmem %s1053_s6, %s833_s20 }
  0x12   : > { %v912_v5 = vld [vmem:[%s328_s10] sm:$0xff]   ;;  %v913_v6 = vld [vmem:[%s328_s10 + $0x8] sm:$0xff]   ;;  %v914_v13 = vld [vmem:[%s328_s10 + $0x10] ss:$0 sps:$4 sm:$0x77]  }
  0x13   : > { %866 = vmatprep.mubr.msk.bf16.mxu0 %vm405_vm1, %v912_v5  ;;  %v380_v8 = vshrl.u32 %v912_v5, 16  ;;  %v383_v9 = vshll.u32 %v912_v5, 16  ;;  %v524_v10 = vrot.slane %v912_v5, 3  ;;  %v388_v11 = vshrl.u32 %v913_v6, 16 }
  0x14   : > { %867 = vmatmul.mubr.msk.bf16.vlgmr.msra.gmra.mrb[0].mxu0 %vm405_vm1, %v913_v6  ;;  %v391_v12 = vshll.u32 %v913_v6, 16  ;;  %v525_v14 = vrot.slane %v913_v6, 3  ;;  %v397_v19 = vshrl.u32 %v914_v13, 16  ;;  %v400_v20 = vshll.u32 %v914_v13, 16 }
  0x15   : > { %871 = vmatpush3.bf16.msra.mxu0 %v536_v7  ;;  %v382_v15 = vrot.slane %v380_v8, 1  ;;  %v385_v16 = vrot.slane %v383_v9, 2  ;;  %v390_v17 = vrot.slane %v388_v11, 1  ;;  %v527_v26 = vrot.slane %v914_v13, 3 }
  0x16   : > { %v393_v18 = vrot.slane %v391_v12, 2  ;;  %v526_v22 = vsel %vm523_vm2, %v524_v10, %v525_v14  ;;  %v399_v24 = vrot.slane %v397_v19, 1  ;;  %v402_v25 = vrot.slane %v400_v20, 2 }
  0x17   : > { %v386_v21 = vor.u32 %v385_v16, %v382_v15  ;;  %872 = vmatprep.mubr.msk.bf16.mxu0 %vm405_vm1, %v526_v22  ;;  %v528_v30 = vsel %vm523_vm2, %v525_v14, %v527_v26 }
  0x18   : > { %v394_v23 = vor.u32 %v393_v18, %v390_v17  ;;  %v403_v28 = vor.u32 %v402_v25, %v399_v24 }
  0x1a   : > { %v395_v27 = vsel %vm378_vm3, %v386_v21, %v394_v23  ;;  %v404_v29 = vsel %vm378_vm3, %v394_v23, %v403_v28 }
  0x1b   : > { %860 = vmatprep.mubr.msk.bf16.mxu1 %vm405_vm1, %v395_v27 }
  0x1c   : > { %861 = vmatmul.mubr.msk.bf16.vlgmr.msra.gmra.mrb[0].mxu1 %vm405_vm1, %v404_v29 }
  0x20   : > { %873 = vmatmul.mubr.msk.bf16.vlgmr.msra.gmra.mrb[0].mxu0 %vm405_vm1, %v528_v30 }
  0xef   : > { %v862_v31 = vpop.f32.mrb[0].mxu1 }
  0xf0   : > { %v450_v32 = vpop.f32.mrb[1].mxu1 }
  0xf1   : > { %v863_v33 = vpop.f32.mrb[2].mxu1 }
  0xf2   : > { %v453_v34 = vpop.f32.mrb[3].mxu1 }
  0xf3   : > { %v874_v35 = vpop.f32.mrb[0].mxu0 }
  0xf4   : > { %v876_v37 = vadd.f32 %v874_v35, %v862_v31  ;;  %v572_v38 = vpop.f32.mrb[1].mxu0 }
  0xf5   : > { %v877_v40 = vadd.f32 %v572_v38, %v450_v32  ;;  %v875_v41 = vpop.f32.mrb[2].mxu0 }
  0xf6   : > { %v600_v42 = vadd.f32 %v876_v37, %v823_v36  ;;  %v878_v43 = vadd.f32 %v875_v41, %v863_v33  ;;  %v575_v44 = vpop.f32.mrb[3].mxu0 }
  0xf7   : > { %v598_v45 = vadd.f32 %v877_v40, %v823_v36  ;;  %v879_v46 = vadd.f32 %v575_v44, %v453_v34 }
  0xf8   : > { %v611_v47 = vadd.f32 %v824_v39, %v600_v42  ;;  %v601_v48 = vadd.f32 %v878_v43, %v823_v36 }
  0xf9   : > { %v609_v50 = vadd.f32 %v824_v39, %v598_v45  ;;  %v599_v51 = vadd.f32 %v879_v46, %v823_v36 }
  0xfa   : > { %v615_v52 = vmax.f32 %v611_v47, 0.0  ;;  %v612_v53 = vadd.f32 %v824_v39, %v601_v48 }
  0xfb   : > { %v613_v54 = vmax.f32 %v609_v50, 0.0  ;;  %v610_v55 = vadd.f32 %v824_v39, %v599_v51 }
  0xfc   : > { %v626_v56 = vmul.f32 %v825_v49, %v615_v52  ;;  %v616_v57 = vmax.f32 %v612_v53, 0.0 }
  0xfd   : > { %v624_v59 = vmul.f32 %v825_v49, %v613_v54  ;;  %v614_v60 = vmax.f32 %v610_v55, 0.0 }
  0xfe   : > { %v627_v61 = vmul.f32 %v825_v49, %v616_v57  ;;  %v637_v63 = vadd.f32 %v826_v58, %v626_v56 }
  0xff   : > { %v625_v62 = vmul.f32 %v825_v49, %v614_v60  ;;  %v635_v1 = vadd.f32 %v826_v58, %v624_v59 }
 0x100   : > { %v638_v0 = vadd.f32 %v826_v58, %v627_v61 }
 0x101   : > { %v636_v2 = vadd.f32 %v826_v58, %v625_v62 }
 0x102   : > { %v846_v3 = vpack.c.bf16 %v638_v0, %v637_v63 }
 0x103   : > { %v841_v4 = vpack.c.bf16 %v636_v2, %v635_v1 }
 0x104   : > { %848 = vst [vmem:[%s355_s27 + $0x8] sm:$0xff] %v846_v3  }
 0x105   : > { %842 = vst [vmem:[%s355_s27] sm:$0xff] %v841_v4  }
 0x106 PF: > { %s16_s23 = sadd.s32 1, %s937_s23   ;;  %s1054_s21 = smov %s933_s22 }
 0x107   : > { %p13_p5 = scmp.ge.s32.totalorder %s16_s23, 4   ;;  %s1055_s22 = smov %s1057_s24 }
 0x109   :  { %15 = sbr.rel (!%p13_p5) target bundleno = 2 (0x2), region = 91 }

// kernel: _lambda_.57
= control target key start
LH: loop header
LB: loop body
LE: loop exit
PB: predicated region body
PF: predicated region fallthrough
CT: control target
= control target key end

     0   :  { %s955_s21 = smov 0   ;;  %s957_s22 = smov 0   ;;  %s1026_s0 = inlined_call_operand.vmem [shape: bf16[2,40,8], index: 0, kind: input, shape index: {}]   ;;  %s1027_s1 = inlined_call_operand.vmem [shape: bf16[3,8,128], index: 1, kind: input, shape index: {}]   ;;  %s1028_s2 = inlined_call_operand.vmem [shape: f32[1,128], index: 2, kind: input, shape index: {}]   ;;  %s1029_s3 = inlined_call_operand.vmem [shape: f32[2,1,128], index: 3, kind: input, shape index: {}]   ;;  %s1030_s4 = inlined_call_operand.vmem [shape: f32[1,128], index: 4, kind: input, shape index: {}]   ;;  %s1031_s5 = inlined_call_operand.vmem [shape: f32[1,128], index: 5, kind: input, shape index: {}]   ;;  %s1032_s6 = inlined_call_operand.vmem [shape: bf16[2,32,128], index: 6, kind: output, shape index: {}]  }
   0x1   :  { %s959_s23 = smov 0  }
   0x2 LB: > { %s28_s24 = sadd.s32 1, %s914_s22  ;;  %p785_p0 = scmp.ge.s32.totalorder %s918_s23, 1  ;;  %s918_s23 = sphi %s959_s23, %s16_s23   ;;  %s914_s22 = sphi %s957_s22, %s1034_s22   ;;  %s910_s21 = sphi %s955_s21, %s1033_s21  }
   0x3   : > { %p30_p1 = scmp.ge.s32.totalorder %s28_s24, 2  ;;  %p272_p2 = scmp.lt.s32.totalorder %s918_s23, 3 }
   0x5   : > { %s1036_s24 = smov (%p30_p1, %s28_s24), 0  ;;  %p273_p3 = pnand %p785_p0, %p272_p2 }
   0x6   : > { %v362_v0 = vld [vmem:[%s1027_s1] sm:$0xf] (!%p273_p3)  ;;  %vm391_vm0 = vcmask (!%p273_p3), 1043456   ;;  %p324_p4 = scmp.lt.s32.totalorder (!%p273_p3), %s910_s21, 1  ;;  %v797_v2 = vld [vmem:[%s1027_s1 + $0x8] sm:$0xf] (!%p273_p3) }
   0x7   : > { %276 = sbr.rel (%p273_p3) target bundleno = 264 (0x108), region = 44  ;;  %864 = vmatprep.subr.msk.bf16.mxu0 (!%p273_p3), %vm391_vm0, %v362_v0  ;;  %v451_v1 = vsel (!%p273_p3), %vm391_vm0, %v362_v0, 0  ;;  %v789_v3 = vld [vmem:[%s1027_s1 + $0x4] sm:$0xf] (!%p273_p3)  ;;  %vm384_vm1 = vcmask (!%p273_p3), 64512   ;;  %v513_v13 = vsel (!%p273_p3), %vm391_vm0, %v797_v2, 0 }
   0x8   : > { %844 = vmatpush3.bf16.msra.mxu0 (!%p273_p3), %v451_v1  ;;  %863 = vmatprep.subr.msk.bf16.mxu1 (!%p273_p3), %vm391_vm0, %v789_v3  ;;  %v393_v4 = vsel (!%p273_p3), %vm391_vm0, %v789_v3, 0  ;;  %vm378_vm2 = vcmask (!%p273_p3), 1045504   ;;  %v802_v26 = vld [vmem:[%s1028_s2] ss:$0 sm:$0xff] (!%p273_p3) }
   0x9   : > { %865 = vmatprep.subr.msk.bf16.mxu0 (!%p273_p3), %vm391_vm0, %v797_v2  ;;  %838 = vmatpush3.bf16.msra.mxu1 (!%p273_p3), %v393_v4  ;;  %v804_v39 = vld [vmem:[%s1030_s4] ss:$0 sm:$0xff] (!%p273_p3) }
   0xa   : > { %v805_v48 = vld [vmem:[%s1031_s5] ss:$0 sm:$0xff] (!%p273_p3) }
   0xe   : > { %s1038_s21 = smov (!%p324_p4, %s910_s21), 1 }
   0xf   : > { %s866_s7 = smul.u32 20, %s1038_s21  ;;  %s341_s13 = scalar_lea.vmem %s1029_s3, %s1038_s21 }
  0x10   : > { %v803_v29 = vld [vmem:[%s341_s13] ss:$0 sm:$0xff]  ;;  %s812_s20 = sshll.u32 %s1038_s21, 4 }
  0x11   : > { %s328_s10 = scalar_lea.vmem %s1026_s0, %s866_s7  ;;  %s355_s27 = scalar_lea.vmem %s1032_s6, %s812_s20 }
  0x12   : > { %v357_v5 = vld [vmem:[%s328_s10] sm:$0xf]  ;;  %v358_v6 = vld [vmem:[%s328_s10 + $0x4] sm:$0xf]  ;;  %v359_v7 = vld [vmem:[%s328_s10 + $0x8] sm:$0xf] }
  0x13   : > { %v360_v8 = vld [vmem:[%s328_s10 + $0xc] sm:$0xf]  ;;  %v361_v9 = vld [vmem:[%s328_s10 + $0x10] sm:$0xf]  ;;  %v790_v10 = vcombine.low %v357_v5, %v358_v6  ;;  %v798_v11 = vcombine.low %v358_v6, %v359_v7 }
  0x14   : > { %v791_v12 = vcombine.low %v359_v7, %v360_v8  ;;  %v792_v14 = vcombine.low %v361_v9, %v361_v9  ;;  %v799_v20 = vcombine.low %v360_v8, %v361_v9 }
  0x15   : > { %v379_v15 = vrot.slane %v790_v10, 2  ;;  %845 = vmatprep.mubr.msk.bf16.mxu0 %vm384_vm1, %v790_v10 }
  0x16   : > { %846 = vmatmul.mubr.msk.bf16.vlgmr.msra.gmra.mrb[0].mxu0 %vm384_vm1, %v791_v12  ;;  %v380_v16 = vrot.slane %v791_v12, 2  ;;  %v382_v17 = vrot.slane %v792_v14, 2 }
  0x17   : > { %850 = vmatpush3.bf16.msra.mxu0 %v513_v13  ;;  %851 = vmatprep.mubr.msk.bf16.mxu0 %vm384_vm1, %v798_v11 }
  0x18   : > { %v381_v18 = vsel %vm378_vm2, %v379_v15, %v380_v16  ;;  %v383_v19 = vsel %vm378_vm2, %v380_v16, %v382_v17 }
  0x19   : > { %839 = vmatprep.mubr.msk.bf16.mxu1 %vm384_vm1, %v381_v18 }
  0x1a   : > { %840 = vmatmul.mubr.msk.bf16.vlgmr.msra.gmra.mrb[0].mxu1 %vm384_vm1, %v383_v19 }
  0x22   : > { %852 = vmatmul.mubr.msk.bf16.vlgmr.msra.gmra.mrb[0].mxu0 %vm384_vm1, %v799_v20 }
  0xed   : > { %v841_v21 = vpop.f32.mrb[0].mxu1 }
  0xee   : > { %v429_v22 = vpop.f32.mrb[1].mxu1 }
  0xef   : > { %v842_v23 = vpop.f32.mrb[2].mxu1 }
  0xf0   : > { %v432_v24 = vpop.f32.mrb[3].mxu1 }
  0xf5   : > { %v853_v25 = vpop.f32.mrb[0].mxu0 }
  0xf6   : > { %v855_v27 = vadd.f32 %v853_v25, %v841_v21  ;;  %v549_v28 = vpop.f32.mrb[1].mxu0 }
  0xf7   : > { %v856_v30 = vadd.f32 %v549_v28, %v429_v22  ;;  %v854_v31 = vpop.f32.mrb[2].mxu0 }
  0xf8   : > { %v577_v32 = vadd.f32 %v855_v27, %v802_v26  ;;  %v857_v33 = vadd.f32 %v854_v31, %v842_v23  ;;  %v552_v34 = vpop.f32.mrb[3].mxu0 }
  0xf9   : > { %v575_v35 = vadd.f32 %v856_v30, %v802_v26  ;;  %v858_v36 = vadd.f32 %v552_v34, %v432_v24 }
  0xfa   : > { %v588_v37 = vadd.f32 %v803_v29, %v577_v32  ;;  %v578_v38 = vadd.f32 %v857_v33, %v802_v26 }
  0xfb   : > { %v586_v40 = vadd.f32 %v803_v29, %v575_v35  ;;  %v576_v41 = vadd.f32 %v858_v36, %v802_v26 }
  0xfc   : > { %v592_v42 = vmax.f32 %v588_v37, 0.0  ;;  %v589_v43 = vadd.f32 %v803_v29, %v578_v38 }
  0xfd   : > { %v590_v44 = vmax.f32 %v586_v40, 0.0  ;;  %v587_v45 = vadd.f32 %v803_v29, %v576_v41 }
  0xfe   : > { %v603_v46 = vmul.f32 %v804_v39, %v592_v42  ;;  %v593_v47 = vmax.f32 %v589_v43, 0.0 }
  0xff   : > { %v601_v49 = vmul.f32 %v804_v39, %v590_v44  ;;  %v591_v50 = vmax.f32 %v587_v45, 0.0 }
 0x100   : > { %v604_v51 = vmul.f32 %v804_v39, %v593_v47  ;;  %v614_v53 = vadd.f32 %v805_v48, %v603_v46 }
 0x101   : > { %v602_v52 = vmul.f32 %v804_v39, %v591_v50  ;;  %v612_v55 = vadd.f32 %v805_v48, %v601_v49 }
 0x102   : > { %v615_v54 = vadd.f32 %v805_v48, %v604_v51 }
 0x103   : > { %v613_v56 = vadd.f32 %v805_v48, %v602_v52 }
 0x104   : > { %v825_v57 = vpack.c.bf16 %v615_v54, %v614_v53 }
 0x105   : > { %v820_v58 = vpack.c.bf16 %v613_v56, %v612_v55 }
 0x106   : > { %827 = vst [vmem:[%s355_s27 + $0x8] sm:$0xff] %v825_v57  }
 0x107   : > { %821 = vst [vmem:[%s355_s27] sm:$0xff] %v820_v58  }
 0x108 PF: > { %s16_s23 = sadd.s32 1, %s918_s23   ;;  %s1033_s21 = smov %s914_s22 }
 0x109   : > { %p13_p5 = scmp.ge.s32.totalorder %s16_s23, 4   ;;  %s1034_s22 = smov %s1036_s24 }
 0x10b   :  { %15 = sbr.rel (!%p13_p5) target bundleno = 2 (0x2), region = 91 }

// kernel: _lambda_.66
= control target key start
LH: loop header
LB: loop body
LE: loop exit
PB: predicated region body
PF: predicated region fallthrough
CT: control target
= control target key end

     0   :  { %s329_s9 = smov 0   ;;  %s364_s0 = inlined_call_operand.vmem [shape: bf16[2,32,96], index: 0, kind: input, shape index: {}]   ;;  %s365_s1 = inlined_call_operand.vmem [shape: f32[2,1,96], index: 1, kind: output, shape index: {0}]   ;;  %s366_s2 = inlined_call_operand.vmem [shape: f32[2,1,96], index: 2, kind: output, shape index: {1}]  }
   0x1 LB: > { %s277_s10 = sadd.s32 4294967295, %s312_s9   ;;  %p281_p0 = scmp.ge.s32.totalorder %s312_s9, 1  ;;  %s312_s9 = sphi %s329_s9, %s13_s9  }
   0x2   : > { %p115_p1 = scmp.lt.s32.totalorder %s312_s9, 3 }
   0x4   : > { %p116_p2 = pnand %p281_p0, %p115_p1 }
   0x5   : > { %p138_p3 = scmp.lt.s32.totalorder (!%p116_p2), %s277_s10, 1  ;;  %vm157_vm0 = vcmask (!%p116_p2), 785408   ;;  %vm194_vm1 = vcmask (!%p116_p2), 778240  }
   0x6   : > { %119 = sbr.rel (%p116_p2) target bundleno = 83 (0x53), region = 24 }
   0xd   : > { %s368_s10 = smov (!%p138_p3, %s277_s10), 1 }
   0xe   : > { %s286_s11 = sshll.u32 %s368_s10, 4  ;;  %s145_s17 = scalar_lea.vmem %s365_s1, %s368_s10 }
   0xf   : > { %s142_s14 = scalar_lea.vmem %s364_s0, %s286_s11  ;;  %s148_s20 = scalar_lea.vmem %s366_s2, %s368_s10 }
  0x10   : > { %v288_v0 = vld [vmem:[%s142_s14] sm:$0xff]   ;;  %v295_v1 = vld [vmem:[%s142_s14 + $0x8] sm:$0xff]  }
  0x11   : > { %v289_v2 = vunpack.c.l.bf16 %v288_v0  ;;  %v290_v3 = vunpack.c.h.bf16 %v288_v0  ;;  %v293_v4 = vunpack.c.l.bf16 %v295_v1  ;;  %v294_v5 = vunpack.c.h.bf16 %v295_v1 }
  0x13   : > { %v158_v6 = vsel %vm157_vm0, %v289_v2, 0.0  ;;  %v159_v7 = vsel %vm157_vm0, %v290_v3, 0.0  ;;  %v161_v8 = vsel %vm157_vm0, %v293_v4, 0.0  ;;  %v163_v10 = vsel %vm157_vm0, %v294_v5, 0.0 }
  0x14   : > { %v160_v9 = vadd.f32 %v159_v7, %v158_v6 }
  0x16   : > { %v162_v11 = vadd.f32 %v161_v8, %v160_v9 }
  0x18   : > { %v164_v12 = vadd.f32 %v163_v10, %v162_v11 }
  0x1a   : > { %v165_v13 = vrot.slane %v164_v12, 4 }
  0x1c   : > { %v166_v14 = vadd.f32 %v165_v13, %v164_v12 }
  0x1e   : > { %v167_v15 = vrot.slane %v166_v14, 2 }
  0x20   : > { %v168_v16 = vadd.f32 %v167_v15, %v166_v14 }
  0x22   : > { %v169_v17 = vrot.slane %v168_v16, 1 }
  0x24   : > { %v170_v18 = vadd.f32 %v169_v17, %v168_v16 }
  0x26   : > { %v171_v19 = vmul.f32 0.03125, %v170_v18 }
  0x28   : > { %v172_v20 = vsub.f32 %v289_v2, %v171_v19  ;;  %v173_v21 = vsub.f32 %v290_v3, %v171_v19  ;;  %v174_v22 = vsub.f32 %v293_v4, %v171_v19  ;;  %v175_v23 = vsub.f32 %v294_v5, %v171_v19  ;;  %195 = vst.msk [vmem:[%s145_s17] sm:$0x1] %vm194_vm1, %v171_v19 }
  0x2a   : > { %v176_v24 = vmul.f32 %v172_v20, %v172_v20  ;;  %v177_v25 = vmul.f32 %v173_v21, %v173_v21  ;;  %v178_v26 = vmul.f32 %v174_v22, %v174_v22  ;;  %v179_v27 = vmul.f32 %v175_v23, %v175_v23 }
  0x2c   : > { %v180_v28 = vsel %vm157_vm0, %v176_v24, 0.0  ;;  %v181_v29 = vsel %vm157_vm0, %v177_v25, 0.0  ;;  %v183_v30 = vsel %vm157_vm0, %v178_v26, 0.0  ;;  %v185_v32 = vsel %vm157_vm0, %v179_v27, 0.0 }
  0x2d   : > { %v182_v31 = vadd.f32 %v181_v29, %v180_v28 }
  0x2f   : > { %v184_v33 = vadd.f32 %v183_v30, %v182_v31 }
  0x31   : > { %v186_v34 = vadd.f32 %v185_v32, %v184_v33 }
  0x33   : > { %v187_v35 = vrot.slane %v186_v34, 4 }
  0x35   : > { %v188_v36 = vadd.f32 %v187_v35, %v186_v34 }
  0x37   : > { %v189_v37 = vrot.slane %v188_v36, 2 }
  0x39   : > { %v190_v38 = vadd.f32 %v189_v37, %v188_v36 }
  0x3b   : > { %v191_v39 = vrot.slane %v190_v38, 1 }
  0x3d   : > { %v192_v40 = vadd.f32 %v191_v39, %v190_v38 }
  0x3f   : > { %v193_v41 = vmul.f32 0.03125, %v192_v40 }
  0x41   : > { %v196_v42 = vmax.f32 %v193_v41, 1e-12 }
  0x43   : > { %304 = vrsqrt.f32 %v196_v42  ;;  %vm199_vm2 = vcmp.eq.f32.partialorder %v196_v42, inf  ;;  %v202_v44 = vand.u32 2147483648, %v196_v42  ;;  %vm201_vm3 = vcmp.eq.f32.partialorder %v196_v42, 0.0 }
  0x4d   : > { %v305_v43 = vpop.eup %304 }
  0x4e   : > { %v198_v45 = vmul.f32 %v305_v43, %v196_v42 }
  0x50   : > { %v200_v46 = vsel %vm199_vm2, %v196_v42, %v198_v45 }
  0x51   : > { %v203_v47 = vsel %vm201_vm3, %v202_v44, %v200_v46 }
  0x52   : > { %204 = vst.msk [vmem:[%s148_s20] sm:$0x1] %vm194_vm1, %v203_v47 }
  0x53 PF: > { %s13_s9 = sadd.s32 1, %s312_s9  }
  0x54   : > { %p10_p4 = scmp.ge.s32.totalorder %s13_s9, 4  }
  0x56   :  { %12 = sbr.rel (!%p10_p4) target bundleno = 1 (0x1), region = 66 }

// kernel: _lambda_.67
= control target key start
LH: loop header
LB: loop body
LE: loop exit
PB: predicated region body
PF: predicated region fallthrough
CT: control target
= control target key end

     0   :  { %s910_s1 = inlined_call_operand.vmem [shape: bf16[256,128], index: 1, kind: input, shape index: {}]   ;;  %s911_s0 = inlined_call_operand.vmem [shape: bf16[128,256], index: 0, kind: input, shape index: {}]   ;;  %s912_s2 = inlined_call_operand.vmem [shape: f32[1,128], index: 2, kind: input, shape index: {}, may-alias: {2,4}]   ;;  %s913_s3 = inlined_call_operand.vmem [shape: f32[1,128], index: 3, kind: input, shape index: {}]   ;;  %s914_s4 = inlined_call_operand.vmem [shape: f32[1,128], index: 4, kind: input, shape index: {}, may-alias: {2,4}]   ;;  %s915_s5 = inlined_call_operand.vmem [shape: f32[128,128], index: 5, kind: output, shape index: {}]  }
   0x1   :  { %v633_v0 = vld [vmem:[%s910_s1 + $0x40] sm:$0xff]   ;;  %v635_v2 = vld [vmem:[%s910_s1 + $0x48] sm:$0xff]   ;;  %v637_v4 = vld [vmem:[%s910_s1 + $0x50] sm:$0xff]  }
   0x2   :  { %v634_v1 = vld [vmem:[%s910_s1] sm:$0xff]   ;;  %553 = vmatprep.subr.bf16.mxu0 %v633_v0  ;;  %617 = vmatprep.subr.bf16.mxu1 %v633_v0  ;;  %v636_v3 = vld [vmem:[%s910_s1 + $0x8] sm:$0xff]   ;;  %v638_v5 = vld [vmem:[%s910_s1 + $0x10] sm:$0xff]  }
   0x3   :  { %554 = vmatpush3.bf16.msra.mxu0 %v634_v1  ;;  %625 = vmatpush3.bf16.msra.mxu1 %v634_v1  ;;  %v639_v6 = vld [vmem:[%s910_s1 + $0x58] sm:$0xff]   ;;  %v641_v8 = vld [vmem:[%s910_s1 + $0x60] sm:$0xff]   ;;  %v643_v10 = vld [vmem:[%s910_s1 + $0x68] sm:$0xff]  }
   0x4   :  { %555 = vmatprep.subr.bf16.mxu0 %v635_v2  ;;  %618 = vmatprep.subr.bf16.mxu1 %v635_v2  ;;  %v640_v7 = vld [vmem:[%s910_s1 + $0x18] sm:$0xff]   ;;  %v642_v9 = vld [vmem:[%s910_s1 + $0x20] sm:$0xff]   ;;  %v644_v13 = vld [vmem:[%s910_s1 + $0x28] sm:$0xff]  }
   0x5   :  { %v651_v11 = vld [vmem:[%s911_s0 + $0x4] ss:$8 sps:$4 sm:$0xff]   ;;  %v645_v14 = vld [vmem:[%s910_s1 + $0x70] sm:$0xff]   ;;  %v647_v16 = vld [vmem:[%s910_s1 + $0x78] sm:$0xff]  }
   0x6   :  { %v654_v12 = vld [vmem:[%s911_s0 + $0x44] ss:$8 sps:$4 sm:$0xff]   ;;  %313 = vmatprep.mubr.bf16.mxu0 %v651_v11  ;;  %v646_v15 = vld [vmem:[%s910_s1 + $0x30] sm:$0xff]   ;;  %v648_v17 = vld [vmem:[%s910_s1 + $0x38] sm:$0xff]  }
   0x7   :  { %556 = vmatpush3.bf16.msra.mxu0 %v636_v3  ;;  %626 = vmatpush3.bf16.msra.mxu1 %v636_v3  ;;  %v649_v18 = vld [vmem:[%s911_s0] ss:$8 sps:$4 sm:$0xff]   ;;  %v655_v20 = vld [vmem:[%s911_s0 + $0x14] ss:$8 sps:$4 sm:$0xff]   ;;  %v659_v22 = vld [vmem:[%s911_s0 + $0x10] ss:$8 sps:$4 sm:$0xff]  }
   0x8   :  { %557 = vmatprep.subr.bf16.mxu0 %v637_v4  ;;  %619 = vmatprep.subr.bf16.mxu1 %v637_v4  ;;  %v652_v19 = vld [vmem:[%s911_s0 + $0x40] ss:$8 sps:$4 sm:$0xff]   ;;  %v657_v21 = vld [vmem:[%s911_s0 + $0x54] ss:$8 sps:$4 sm:$0xff]   ;;  %v660_v23 = vld [vmem:[%s911_s0 + $0x50] ss:$8 sps:$4 sm:$0xff]  }
   0x9   :  { %345 = vmatprep.mubr.bf16.mxu1 %v654_v12  ;;  %v661_v24 = vld [vmem:[%s911_s0 + $0x24] ss:$8 sps:$4 sm:$0xff]   ;;  %v665_v26 = vld [vmem:[%s911_s0 + $0x20] ss:$8 sps:$4 sm:$0xff]   ;;  %v667_v28 = vld [vmem:[%s911_s0 + $0x34] ss:$8 sps:$4 sm:$0xff]  }
   0xa   :  { %v663_v25 = vld [vmem:[%s911_s0 + $0x64] ss:$8 sps:$4 sm:$0xff]   ;;  %v666_v27 = vld [vmem:[%s911_s0 + $0x60] ss:$8 sps:$4 sm:$0xff]   ;;  %v669_v29 = vld [vmem:[%s911_s0 + $0x74] ss:$8 sps:$4 sm:$0xff]  }
   0xb   :  { %558 = vmatpush3.bf16.msra.mxu0 %v638_v5  ;;  %627 = vmatpush3.bf16.msra.mxu1 %v638_v5  ;;  %v671_v30 = vld [vmem:[%s911_s0 + $0x30] ss:$8 sps:$4 sm:$0xff]   ;;  %v802_v35 = vld [vmem:[%s912_s2] ss:$0 sm:$0xff] }
   0xc   :  { %559 = vmatprep.subr.bf16.mxu0 %v639_v6  ;;  %620 = vmatprep.subr.bf16.mxu1 %v639_v6  ;;  %v672_v31 = vld [vmem:[%s911_s0 + $0x70] ss:$8 sps:$4 sm:$0xff]   ;;  %v807_v41 = vld [vmem:[%s913_s3] ss:$0 sm:$0xff] }
   0xd   :  { %v814_v48 = vld [vmem:[%s914_s4] ss:$0 sm:$0xff] }
   0xf   :  { %560 = vmatpush3.bf16.msra.mxu0 %v640_v7  ;;  %628 = vmatpush3.bf16.msra.mxu1 %v640_v7 }
  0x10   :  { %561 = vmatprep.subr.bf16.mxu0 %v641_v8  ;;  %621 = vmatprep.subr.bf16.mxu1 %v641_v8 }
  0x13   :  { %562 = vmatpush3.bf16.msra.mxu0 %v642_v9  ;;  %629 = vmatpush3.bf16.msra.mxu1 %v642_v9 }
  0x14   :  { %563 = vmatprep.subr.bf16.mxu0 %v643_v10  ;;  %622 = vmatprep.subr.bf16.mxu1 %v643_v10 }
  0x17   :  { %564 = vmatpush3.bf16.msra.mxu0 %v644_v13  ;;  %630 = vmatpush3.bf16.msra.mxu1 %v644_v13 }
  0x18   :  { %565 = vmatprep.subr.bf16.mxu0 %v645_v14  ;;  %623 = vmatprep.subr.bf16.mxu1 %v645_v14 }
  0x1b   :  { %566 = vmatpush3.bf16.msra.mxu0 %v646_v15  ;;  %631 = vmatpush3.bf16.msra.mxu1 %v646_v15 }
  0x1c   :  { %567 = vmatprep.subr.bf16.mxu0 %v647_v16  ;;  %624 = vmatprep.subr.bf16.mxu1 %v647_v16 }
  0x1f   :  { %568 = vmatpush3.bf16.msra.mxu0 %v648_v17  ;;  %632 = vmatpush3.bf16.msra.mxu1 %v648_v17 }
  0x22   :  { %314 = vmatmul.mubr.bf16.vlgmr.msra.gmra.mrb[0].mxu0 %v649_v18  ;;  %346 = vmatmul.mubr.bf16.vlgmr.msra.gmra.mrb[0].mxu1 %v652_v19 }
  0x23   :  { %321 = vmatprep.mubr.bf16.mxu0 %v655_v20  ;;  %353 = vmatprep.mubr.bf16.mxu1 %v657_v21 }
  0x2a   :  { %322 = vmatmul.mubr.bf16.gmra.mrb[4].mxu0 %v659_v22  ;;  %354 = vmatmul.mubr.bf16.gmra.mrb[4].mxu1 %v660_v23 }
  0x2b   :  { %329 = vmatprep.mubr.bf16.mxu0 %v661_v24  ;;  %361 = vmatprep.mubr.bf16.mxu1 %v663_v25 }
  0x32   :  { %330 = vmatmul.mubr.bf16.gmra.mrb[8].mxu0 %v665_v26  ;;  %362 = vmatmul.mubr.bf16.gmra.mrb[8].mxu1 %v666_v27 }
  0x33   :  { %337 = vmatprep.mubr.bf16.mxu0 %v667_v28  ;;  %369 = vmatprep.mubr.bf16.mxu1 %v669_v29 }
  0x3a   :  { %338 = vmatmul.mubr.bf16.gmra.mrb[12].mxu0 %v671_v30  ;;  %370 = vmatmul.mubr.bf16.gmra.mrb[12].mxu1 %v672_v31 }
  0xf5   :  { %v569_v32 = vpop.f32.mrb[0].mxu0  ;;  %v593_v33 = vpop.f32.mrb[0].mxu1 }
  0xf6   :  { %v570_v34 = vpop.f32.mrb[1].mxu0  ;;  %v594_v36 = vpop.f32.mrb[1].mxu1 }
  0xf7   :  { %v571_v37 = vadd.f32 %v570_v34, %v569_v32  ;;  %v595_v38 = vadd.f32 %v594_v36, %v593_v33  ;;  %v572_v39 = vpop.f32.mrb[2].mxu0  ;;  %v596_v40 = vpop.f32.mrb[2].mxu1 }
  0xf8   :  { %v573_v42 = vpop.f32.mrb[3].mxu0  ;;  %v597_v43 = vpop.f32.mrb[3].mxu1 }
  0xf9   :  { %v436_v44 = vadd.f32 %v571_v37, %v802_v35  ;;  %v444_v45 = vadd.f32 %v595_v38, %v802_v35  ;;  %v574_v46 = vadd.f32 %v573_v42, %v572_v39  ;;  %v598_v47 = vadd.f32 %v597_v43, %v596_v40 }
  0xfb   :  { %v459_v49 = vmul.f32 %v807_v41, %v436_v44  ;;  %v467_v50 = vmul.f32 %v807_v41, %v444_v45  ;;  %v437_v51 = vadd.f32 %v574_v46, %v802_v35  ;;  %v445_v52 = vadd.f32 %v598_v47, %v802_v35 }
  0xfd   :  { %v482_v53 = vadd.f32 %v814_v48, %v459_v49  ;;  %v490_v54 = vadd.f32 %v814_v48, %v467_v50  ;;  %v460_v55 = vmul.f32 %v807_v41, %v437_v51  ;;  %v468_v56 = vmul.f32 %v807_v41, %v445_v52  ;;  %v575_v57 = vpop.f32.mrb[4].mxu0  ;;  %v599_v58 = vpop.f32.mrb[4].mxu1 }
  0xfe   :  { %v576_v59 = vpop.f32.mrb[5].mxu0  ;;  %v600_v60 = vpop.f32.mrb[5].mxu1 }
  0xff   :  { %498 = vst [vmem:[%s915_s5] sm:$0xff] %v482_v53  ;;  %506 = vst [vmem:[%s915_s5 + $0x40] sm:$0xff] %v490_v54  ;;  %v483_v61 = vadd.f32 %v814_v48, %v460_v55  ;;  %v491_v62 = vadd.f32 %v814_v48, %v468_v56  ;;  %v577_v63 = vadd.f32 %v576_v59, %v575_v57  ;;  %v578_v1 = vpop.f32.mrb[6].mxu0  ;;  %v602_v2 = vpop.f32.mrb[6].mxu1 }
 0x100   :  { %v601_v0 = vadd.f32 %v600_v60, %v599_v58  ;;  %v579_v3 = vpop.f32.mrb[7].mxu0  ;;  %v603_v4 = vpop.f32.mrb[7].mxu1 }
 0x101   :  { %499 = vst [vmem:[%s915_s5 + $0x8] sm:$0xff] %v483_v61  ;;  %507 = vst [vmem:[%s915_s5 + $0x48] sm:$0xff] %v491_v62  ;;  %v438_v5 = vadd.f32 %v577_v63, %v802_v35  ;;  %v580_v7 = vadd.f32 %v579_v3, %v578_v1  ;;  %v604_v8 = vadd.f32 %v603_v4, %v602_v2 }
 0x102   :  { %v446_v6 = vadd.f32 %v601_v0, %v802_v35 }
 0x103   :  { %v461_v9 = vmul.f32 %v807_v41, %v438_v5  ;;  %v439_v11 = vadd.f32 %v580_v7, %v802_v35  ;;  %v447_v12 = vadd.f32 %v604_v8, %v802_v35 }
 0x104   :  { %v469_v10 = vmul.f32 %v807_v41, %v446_v6 }
 0x105   :  { %v484_v13 = vadd.f32 %v814_v48, %v461_v9  ;;  %v462_v15 = vmul.f32 %v807_v41, %v439_v11  ;;  %v470_v16 = vmul.f32 %v807_v41, %v447_v12  ;;  %v581_v17 = vpop.f32.mrb[8].mxu0  ;;  %v605_v18 = vpop.f32.mrb[8].mxu1 }
 0x106   :  { %v492_v14 = vadd.f32 %v814_v48, %v469_v10  ;;  %v582_v19 = vpop.f32.mrb[9].mxu0  ;;  %v606_v20 = vpop.f32.mrb[9].mxu1 }
 0x107   :  { %500 = vst [vmem:[%s915_s5 + $0x10] sm:$0xff] %v484_v13  ;;  %v485_v21 = vadd.f32 %v814_v48, %v462_v15  ;;  %v493_v22 = vadd.f32 %v814_v48, %v470_v16  ;;  %v583_v23 = vadd.f32 %v582_v19, %v581_v17  ;;  %v607_v24 = vadd.f32 %v606_v20, %v605_v18  ;;  %v584_v25 = vpop.f32.mrb[10].mxu0  ;;  %v608_v26 = vpop.f32.mrb[10].mxu1 }
 0x108   :  { %508 = vst [vmem:[%s915_s5 + $0x50] sm:$0xff] %v492_v14  ;;  %v585_v27 = vpop.f32.mrb[11].mxu0  ;;  %v609_v28 = vpop.f32.mrb[11].mxu1 }
 0x109   :  { %501 = vst [vmem:[%s915_s5 + $0x18] sm:$0xff] %v485_v21  ;;  %509 = vst [vmem:[%s915_s5 + $0x58] sm:$0xff] %v493_v22  ;;  %v440_v29 = vadd.f32 %v583_v23, %v802_v35  ;;  %v448_v30 = vadd.f32 %v607_v24, %v802_v35  ;;  %v586_v31 = vadd.f32 %v585_v27, %v584_v25 }
 0x10a   :  { %v610_v32 = vadd.f32 %v609_v28, %v608_v26 }
 0x10b   :  { %v463_v33 = vmul.f32 %v807_v41, %v440_v29  ;;  %v471_v34 = vmul.f32 %v807_v41, %v448_v30  ;;  %v441_v36 = vadd.f32 %v586_v31, %v802_v35 }
 0x10c   :  { %v449_v37 = vadd.f32 %v610_v32, %v802_v35 }
 0x10d   :  { %v486_v38 = vadd.f32 %v814_v48, %v463_v33  ;;  %v494_v39 = vadd.f32 %v814_v48, %v471_v34  ;;  %v464_v40 = vmul.f32 %v807_v41, %v441_v36  ;;  %v587_v43 = vpop.f32.mrb[12].mxu0  ;;  %v611_v44 = vpop.f32.mrb[12].mxu1 }
 0x10e   :  { %v472_v42 = vmul.f32 %v807_v41, %v449_v37  ;;  %v588_v45 = vpop.f32.mrb[13].mxu0  ;;  %v612_v46 = vpop.f32.mrb[13].mxu1 }
 0x10f   :  { %502 = vst [vmem:[%s915_s5 + $0x20] sm:$0xff] %v486_v38  ;;  %510 = vst [vmem:[%s915_s5 + $0x60] sm:$0xff] %v494_v39  ;;  %v487_v47 = vadd.f32 %v814_v48, %v464_v40  ;;  %v589_v50 = vadd.f32 %v588_v45, %v587_v43  ;;  %v613_v51 = vadd.f32 %v612_v46, %v611_v44  ;;  %v590_v52 = vpop.f32.mrb[14].mxu0  ;;  %v614_v53 = vpop.f32.mrb[14].mxu1 }
 0x110   :  { %v495_v49 = vadd.f32 %v814_v48, %v472_v42  ;;  %v591_v54 = vpop.f32.mrb[15].mxu0  ;;  %v615_v55 = vpop.f32.mrb[15].mxu1 }
 0x111   :  { %503 = vst [vmem:[%s915_s5 + $0x28] sm:$0xff] %v487_v47  ;;  %v442_v56 = vadd.f32 %v589_v50, %v802_v35  ;;  %v450_v57 = vadd.f32 %v613_v51, %v802_v35  ;;  %v592_v58 = vadd.f32 %v591_v54, %v590_v52  ;;  %v616_v59 = vadd.f32 %v615_v55, %v614_v53 }
 0x112   :  { %511 = vst [vmem:[%s915_s5 + $0x68] sm:$0xff] %v495_v49 }
 0x113   :  { %v465_v60 = vmul.f32 %v807_v41, %v442_v56  ;;  %v473_v61 = vmul.f32 %v807_v41, %v450_v57  ;;  %v443_v62 = vadd.f32 %v592_v58, %v802_v35  ;;  %v451_v63 = vadd.f32 %v616_v59, %v802_v35 }
 0x115   :  { %v488_v0 = vadd.f32 %v814_v48, %v465_v60  ;;  %v496_v1 = vadd.f32 %v814_v48, %v473_v61  ;;  %v466_v2 = vmul.f32 %v807_v41, %v443_v62  ;;  %v474_v3 = vmul.f32 %v807_v41, %v451_v63 }
 0x117   :  { %504 = vst [vmem:[%s915_s5 + $0x30] sm:$0xff] %v488_v0  ;;  %512 = vst [vmem:[%s915_s5 + $0x70] sm:$0xff] %v496_v1  ;;  %v489_v4 = vadd.f32 %v814_v48, %v466_v2  ;;  %v497_v35 = vadd.f32 %v814_v48, %v474_v3 }
 0x119   :  { %505 = vst [vmem:[%s915_s5 + $0x38] sm:$0xff] %v489_v4  ;;  %513 = vst [vmem:[%s915_s5 + $0x78] sm:$0xff] %v497_v35 }

// kernel: _lambda_.70
= control target key start
LH: loop header
LB: loop body
LE: loop exit
PB: predicated region body
PF: predicated region fallthrough
CT: control target
= control target key end

     0   :  { %s472_s12 = smov 0   ;;  %s522_s0 = inlined_call_operand.vmem [shape: bf16[2,32,96], index: 0, kind: input, shape index: {}]   ;;  %s523_s1 = inlined_call_operand.vmem [shape: bf16[2,32,96], index: 1, kind: input, shape index: {}]   ;;  %s524_s2 = inlined_call_operand.vmem [shape: f32[2,1,96], index: 2, kind: output, shape index: {0}]   ;;  %s525_s3 = inlined_call_operand.vmem [shape: f32[2,1,96], index: 3, kind: output, shape index: {1}]  }
   0x1 LB: > { %s393_s13 = sadd.s32 4294967295, %s450_s12   ;;  %p397_p0 = scmp.ge.s32.totalorder %s450_s12, 1  ;;  %s450_s12 = sphi %s472_s12, %s14_s12  }
   0x2   : > { %p150_p1 = scmp.lt.s32.totalorder %s450_s12, 3 }
   0x4   : > { %p151_p2 = pnand %p397_p0, %p150_p1 }
   0x5   : > { %p180_p3 = scmp.lt.s32.totalorder (!%p151_p2), %s393_s13, 1  ;;  %vm212_vm0 = vcmask (!%p151_p2), 785408   ;;  %vm298_vm1 = vcmask (!%p151_p2), 778240  }
   0x6   : > { %154 = sbr.rel (%p151_p2) target bundleno = 148 (0x94), region = 28 }
   0xd   : > { %s527_s13 = smov (!%p180_p3, %s393_s13), 1 }
   0xe   : > { %s404_s14 = sshll.u32 %s527_s13, 4  ;;  %s192_s23 = scalar_lea.vmem %s524_s2, %s527_s13 }
   0xf   : > { %s184_s17 = scalar_lea.vmem %s522_s0, %s404_s14  ;;  %s189_s20 = scalar_lea.vmem %s523_s1, %s404_s14 }
  0x10   : > { %v407_v0 = vld [vmem:[%s184_s17] sm:$0xff]   ;;  %v422_v1 = vld [vmem:[%s184_s17 + $0x8] sm:$0xff]   ;;  %s195_s26 = scalar_lea.vmem %s525_s3, %s527_s13 }
  0x11   : > { %v408_v2 = vunpack.c.l.bf16 %v407_v0  ;;  %v409_v3 = vunpack.c.h.bf16 %v407_v0  ;;  %v412_v4 = vunpack.c.l.bf16 %v422_v1  ;;  %v413_v5 = vunpack.c.h.bf16 %v422_v1  ;;  %v415_v44 = vld [vmem:[%s189_s20] sm:$0xff]   ;;  %v423_v45 = vld [vmem:[%s189_s20 + $0x8] sm:$0xff]  }
  0x12   : > { %v416_v46 = vunpack.c.l.bf16 %v415_v44  ;;  %v417_v47 = vunpack.c.h.bf16 %v415_v44  ;;  %v420_v48 = vunpack.c.l.bf16 %v423_v45  ;;  %v421_v49 = vunpack.c.h.bf16 %v423_v45 }
  0x13   : > { %v213_v6 = vsel %vm212_vm0, %v408_v2, -inf  ;;  %v214_v7 = vsel %vm212_vm0, %v409_v3, -inf  ;;  %v215_v8 = vsel %vm212_vm0, %v412_v4, -inf  ;;  %v216_v9 = vsel %vm212_vm0, %v413_v5, -inf }
  0x14   : > { %v217_v10 = vmax.f32 %v213_v6, %v214_v7  ;;  %v218_v11 = vmax.f32 %v215_v8, %v216_v9 }
  0x16   : > { %v219_v12 = vmax.f32 %v217_v10, %v218_v11 }
  0x18   : > { %v220_v13 = vrot.slane %v219_v12, 4 }
  0x1a   : > { %v221_v14 = vmax.f32 %v219_v12, %v220_v13 }
  0x1c   : > { %v222_v15 = vrot.slane %v221_v14, 2 }
  0x1e   : > { %v223_v16 = vmax.f32 %v221_v14, %v222_v15 }
  0x20   : > { %v224_v17 = vrot.slane %v223_v16, 1 }
  0x22   : > { %v225_v18 = vmax.f32 %v223_v16, %v224_v17 }
  0x24   : > { %v226_v19 = vsub.f32 %v408_v2, %v225_v18  ;;  %v227_v20 = vsub.f32 %v409_v3, %v225_v18  ;;  %v228_v21 = vsub.f32 %v412_v4, %v225_v18  ;;  %v229_v22 = vsub.f32 %v413_v5, %v225_v18 }
  0x26   : > { %v230_v23 = vmul.f32 1.442695, %v226_v19  ;;  %v232_v24 = vmul.f32 1.442695, %v227_v20  ;;  %v234_v25 = vmul.f32 1.442695, %v228_v21 }
  0x27   : > { %v236_v26 = vmul.f32 1.442695, %v229_v22 }
  0x28   : > { %432 = vpow2.f32 %v230_v23 }
  0x29   : > { %434 = vpow2.f32 %v232_v24 }
  0x2a   : > { %436 = vpow2.f32 %v234_v25 }
  0x2b   : > { %438 = vpow2.f32 %v236_v26 }
  0x32   : > { %v433_v27 = vpop.eup %432 }
  0x33   : > { %v435_v28 = vpop.eup %434  ;;  %v238_v29 = vsel %vm212_vm0, %v433_v27, 0.0 }
  0x34   : > { %v437_v30 = vpop.eup %436  ;;  %v239_v31 = vsel %vm212_vm0, %v435_v28, 0.0 }
  0x35   : > { %v439_v32 = vpop.eup %438  ;;  %v240_v33 = vadd.f32 %v239_v31, %v238_v29  ;;  %v241_v34 = vsel %vm212_vm0, %v437_v30, 0.0 }
  0x36   : > { %v243_v35 = vsel %vm212_vm0, %v439_v32, 0.0 }
  0x37   : > { %v242_v36 = vadd.f32 %v241_v34, %v240_v33 }
  0x39   : > { %v244_v37 = vadd.f32 %v243_v35, %v242_v36 }
  0x3b   : > { %v245_v38 = vrot.slane %v244_v37, 4 }
  0x3d   : > { %v246_v39 = vadd.f32 %v245_v38, %v244_v37 }
  0x3f   : > { %v247_v40 = vrot.slane %v246_v39, 2 }
  0x41   : > { %v248_v41 = vadd.f32 %v247_v40, %v246_v39 }
  0x43   : > { %v249_v42 = vrot.slane %v248_v41, 1 }
  0x45   : > { %v250_v43 = vadd.f32 %v249_v42, %v248_v41 }
  0x47   : > { %440 = vrcp.f32 %v250_v43 }
  0x51   : > { %v441_v50 = vpop.eup %440 }
  0x52   : > { %v252_v51 = vmul.f32 %v441_v50, %v433_v27  ;;  %v253_v52 = vmul.f32 %v441_v50, %v435_v28  ;;  %v254_v53 = vmul.f32 %v441_v50, %v437_v30  ;;  %v255_v54 = vmul.f32 %v441_v50, %v439_v32 }
  0x54   : > { %v256_v55 = vmul.f32 %v416_v46, %v252_v51  ;;  %v257_v56 = vmul.f32 %v417_v47, %v253_v52  ;;  %v258_v57 = vmul.f32 %v420_v48, %v254_v53  ;;  %v259_v58 = vmul.f32 %v421_v49, %v255_v54 }
  0x56   : > { %v260_v59 = vsel %vm212_vm0, %v256_v55, 0.0  ;;  %v261_v60 = vsel %vm212_vm0, %v257_v56, 0.0  ;;  %v263_v61 = vsel %vm212_vm0, %v258_v57, 0.0  ;;  %v265_v63 = vsel %vm212_vm0, %v259_v58, 0.0 }
  0x57   : > { %v262_v62 = vadd.f32 %v261_v60, %v260_v59 }
  0x59   : > { %v264_v0 = vadd.f32 %v263_v61, %v262_v62 }
  0x5b   : > { %v266_v1 = vadd.f32 %v265_v63, %v264_v0 }
  0x5d   : > { %v267_v2 = vrot.slane %v266_v1, 4 }
  0x5f   : > { %v268_v3 = vadd.f32 %v267_v2, %v266_v1 }
  0x61   : > { %v269_v4 = vrot.slane %v268_v3, 2 }
  0x63   : > { %v270_v5 = vadd.f32 %v269_v4, %v268_v3 }
  0x65   : > { %v271_v6 = vrot.slane %v270_v5, 1 }
  0x67   : > { %v272_v7 = vadd.f32 %v271_v6, %v270_v5 }
  0x69   : > { %v273_v8 = vsub.f32 %v416_v46, %v272_v7  ;;  %v274_v9 = vsub.f32 %v417_v47, %v272_v7  ;;  %v275_v10 = vsub.f32 %v420_v48, %v272_v7  ;;  %v276_v11 = vsub.f32 %v421_v49, %v272_v7  ;;  %299 = vst.msk [vmem:[%s192_s23] sm:$0x1] %vm298_vm1, %v272_v7 }
  0x6b   : > { %v277_v12 = vmul.f32 %v273_v8, %v273_v8  ;;  %v278_v13 = vmul.f32 %v274_v9, %v274_v9  ;;  %v279_v14 = vmul.f32 %v275_v10, %v275_v10  ;;  %v280_v15 = vmul.f32 %v276_v11, %v276_v11 }
  0x6d   : > { %v281_v16 = vmul.f32 %v277_v12, %v252_v51  ;;  %v282_v17 = vmul.f32 %v278_v13, %v253_v52  ;;  %v283_v18 = vmul.f32 %v279_v14, %v254_v53  ;;  %v284_v19 = vmul.f32 %v280_v15, %v255_v54 }
  0x6f   : > { %v285_v20 = vsel %vm212_vm0, %v281_v16, 0.0  ;;  %v286_v21 = vsel %vm212_vm0, %v282_v17, 0.0  ;;  %v288_v22 = vsel %vm212_vm0, %v283_v18, 0.0  ;;  %v290_v24 = vsel %vm212_vm0, %v284_v19, 0.0 }
  0x70   : > { %v287_v23 = vadd.f32 %v286_v21, %v285_v20 }
  0x72   : > { %v289_v25 = vadd.f32 %v288_v22, %v287_v23 }
  0x74   : > { %v291_v26 = vadd.f32 %v290_v24, %v289_v25 }
  0x76   : > { %v292_v27 = vrot.slane %v291_v26, 4 }
  0x78   : > { %v293_v28 = vadd.f32 %v292_v27, %v291_v26 }
  0x7a   : > { %v294_v29 = vrot.slane %v293_v28, 2 }
  0x7c   : > { %v295_v30 = vadd.f32 %v294_v29, %v293_v28 }
  0x7e   : > { %v296_v31 = vrot.slane %v295_v30, 1 }
  0x80   : > { %v297_v32 = vadd.f32 %v296_v31, %v295_v30 }
  0x82   : > { %v300_v33 = vmax.f32 %v297_v32, 1e-12 }
  0x84   : > { %442 = vrsqrt.f32 %v300_v33  ;;  %vm303_vm2 = vcmp.eq.f32.partialorder %v300_v33, inf  ;;  %v306_v35 = vand.u32 2147483648, %v300_v33  ;;  %vm305_vm3 = vcmp.eq.f32.partialorder %v300_v33, 0.0 }
  0x8e   : > { %v443_v34 = vpop.eup %442 }
  0x8f   : > { %v302_v36 = vmul.f32 %v443_v34, %v300_v33 }
  0x91   : > { %v304_v37 = vsel %vm303_vm2, %v300_v33, %v302_v36 }
  0x92   : > { %v307_v38 = vsel %vm305_vm3, %v306_v35, %v304_v37 }
  0x93   : > { %308 = vst.msk [vmem:[%s195_s26] sm:$0x1] %vm298_vm1, %v307_v38 }
  0x94 PF: > { %s14_s12 = sadd.s32 1, %s450_s12  }
  0x95   : > { %p11_p4 = scmp.ge.s32.totalorder %s14_s12, 4  }
  0x97   :  { %13 = sbr.rel (!%p11_p4) target bundleno = 1 (0x1), region = 73 }

// kernel: _lambda_.68
= control target key start
LH: loop header
LB: loop body
LE: loop exit
PB: predicated region body
PF: predicated region fallthrough
CT: control target
= control target key end

     0   :  { %s857_s21 = smov 0   ;;  %s859_s22 = smov 0   ;;  %s930_s0 = inlined_call_operand.vmem [shape: bf16[2,32,96], index: 0, kind: input, shape index: {}]   ;;  %s931_s1 = inlined_call_operand.vmem [shape: bf16[1,96,128], index: 1, kind: input, shape index: {}]   ;;  %s932_s2 = inlined_call_operand.vmem [shape: f32[1,128], index: 2, kind: input, shape index: {}]   ;;  %s933_s3 = inlined_call_operand.vmem [shape: f32[2,1,128], index: 3, kind: input, shape index: {}]   ;;  %s934_s4 = inlined_call_operand.vmem [shape: f32[1,128], index: 4, kind: input, shape index: {}]   ;;  %s935_s5 = inlined_call_operand.vmem [shape: f32[1,128], index: 5, kind: input, shape index: {}]   ;;  %s936_s6 = inlined_call_operand.vmem [shape: bf16[2,32,128], index: 6, kind: output, shape index: {}]  }
   0x1   :  { %s861_s23 = smov 0  }
   0x2 LB: > { %s28_s24 = sadd.s32 1, %s816_s22  ;;  %p692_p0 = scmp.ge.s32.totalorder %s820_s23, 1  ;;  %s820_s23 = sphi %s861_s23, %s16_s23   ;;  %s816_s22 = sphi %s859_s22, %s938_s22   ;;  %s812_s21 = sphi %s857_s21, %s937_s21  }
   0x3   : > { %p30_p1 = scmp.ge.s32.totalorder %s28_s24, 2  ;;  %p272_p2 = scmp.lt.s32.totalorder %s820_s23, 3 }
   0x5   : > { %s940_s24 = smov (%p30_p1, %s28_s24), 0  ;;  %p273_p3 = pnand %p692_p0, %p272_p2 }
   0x6   : > { %v782_v0 = vld [vmem:[%s931_s1] sm:$0xff] (!%p273_p3)   ;;  %p324_p4 = scmp.lt.s32.totalorder (!%p273_p3), %s812_s21, 1  ;;  %v783_v1 = vld [vmem:[%s931_s1 + $0x8] sm:$0xff] (!%p273_p3)   ;;  %v784_v2 = vld [vmem:[%s931_s1 + $0x10] sm:$0xff] (!%p273_p3)   ;;  %vm426_vm0 = vcmask (!%p273_p3), 785408  }
   0x7   : > { %276 = sbr.rel (%p273_p3) target bundleno = 270 (0x10e), region = 44  ;;  %742 = vmatprep.subr.bf16.mxu0 (!%p273_p3), %v782_v0  ;;  %v785_v4 = vld [vmem:[%s931_s1 + $0x18] sm:$0xff] (!%p273_p3)   ;;  %v786_v5 = vld [vmem:[%s931_s1 + $0x20] sm:$0xff] (!%p273_p3)   ;;  %v787_v6 = vld [vmem:[%s931_s1 + $0x28] sm:$0xff] (!%p273_p3)  }
   0x8   : > { %743 = vmatpush3.bf16.msra.mxu0 (!%p273_p3), %v782_v0  ;;  %v697_v8 = vld [vmem:[%s932_s2] ss:$0 sm:$0xff] (!%p273_p3) }
   0x9   : > { %744 = vmatprep.subr.bf16.mxu0 (!%p273_p3), %v783_v1  ;;  %v709_v18 = vld [vmem:[%s934_s4] ss:$0 sm:$0xff] (!%p273_p3) }
   0xa   : > { %v710_v23 = vld [vmem:[%s935_s5] ss:$0 sm:$0xff] (!%p273_p3) }
   0xc   : > { %745 = vmatpush3.bf16.msra.mxu0 (!%p273_p3), %v783_v1 }
   0xd   : > { %746 = vmatprep.subr.bf16.mxu0 (!%p273_p3), %v784_v2 }
   0xe   : > { %s942_s21 = smov (!%p324_p4, %s812_s21), 1 }
   0xf   : > { %s717_s7 = sshll.u32 %s942_s21, 4  ;;  %s341_s19 = scalar_lea.vmem %s933_s3, %s942_s21 }
  0x10   : > { %s328_s10 = scalar_lea.vmem %s930_s0, %s717_s7  ;;  %747 = vmatpush3.bf16.msra.mxu0 %v784_v2  ;;  %v708_v10 = vld [vmem:[%s341_s19] ss:$0 sm:$0xff]  ;;  %s355_s9 = scalar_lea.vmem %s936_s6, %s717_s7 }
  0x11   : > { %v788_v3 = vld [vmem:[%s328_s10] sm:$0xff]   ;;  %748 = vmatprep.subr.bf16.mxu0 %v785_v4  ;;  %v789_v7 = vld [vmem:[%s328_s10 + $0x8] sm:$0xff]  }
  0x12   : > { %754 = vmatprep.mubr.msk.bf16.mxu0 %vm426_vm0, %v788_v3 }
  0x14   : > { %749 = vmatpush3.bf16.msra.mxu0 %v785_v4 }
  0x15   : > { %750 = vmatprep.subr.bf16.mxu0 %v786_v5 }
  0x18   : > { %751 = vmatpush3.bf16.msra.mxu0 %v786_v5 }
  0x19   : > { %752 = vmatprep.subr.bf16.mxu0 %v787_v6 }
  0x1c   : > { %753 = vmatpush3.bf16.msra.mxu0 %v787_v6 }
  0x1f   : > { %755 = vmatmul.mubr.msk.bf16.vlgmr.msra.gmra.mrb[0].mxu0 %vm426_vm0, %v789_v7 }
  0xf2   : > { %v756_v9 = vpop.f32.mrb[0].mxu0 }
  0xf3   : > { %v476_v11 = vadd.f32 %v756_v9, %v697_v8  ;;  %v467_v12 = vpop.f32.mrb[1].mxu0 }
  0xf4   : > { %v468_v13 = vadd.f32 %v697_v8, %v467_v12  ;;  %v757_v14 = vpop.f32.mrb[2].mxu0 }
  0xf5   : > { %v491_v15 = vadd.f32 %v708_v10, %v476_v11  ;;  %v479_v16 = vadd.f32 %v757_v14, %v697_v8  ;;  %v470_v17 = vpop.f32.mrb[3].mxu0 }
  0xf6   : > { %v489_v19 = vadd.f32 %v708_v10, %v468_v13  ;;  %v471_v20 = vadd.f32 %v697_v8, %v470_v17 }
  0xf7   : > { %v495_v21 = vmax.f32 %v491_v15, 0.0  ;;  %v492_v22 = vadd.f32 %v708_v10, %v479_v16 }
  0xf8   : > { %v493_v24 = vmax.f32 %v489_v19, 0.0  ;;  %v490_v25 = vadd.f32 %v708_v10, %v471_v20 }
  0xf9   : > { %v506_v26 = vmul.f32 %v709_v18, %v495_v21  ;;  %v496_v27 = vmax.f32 %v492_v22, 0.0 }
  0xfa   : > { %v504_v28 = vmul.f32 %v709_v18, %v493_v24  ;;  %v494_v29 = vmax.f32 %v490_v25, 0.0 }
  0xfb   : > { %v517_v30 = vadd.f32 %v710_v23, %v506_v26  ;;  %v507_v31 = vmul.f32 %v709_v18, %v496_v27 }
  0xfc   : > { %v515_v32 = vadd.f32 %v710_v23, %v504_v28  ;;  %v505_v33 = vmul.f32 %v709_v18, %v494_v29 }
  0xfd   : > { %790 = vtanh.f32 %v517_v30  ;;  %v518_v34 = vadd.f32 %v710_v23, %v507_v31 }
  0xfe   : > { %792 = vtanh.f32 %v515_v32  ;;  %v516_v35 = vadd.f32 %v710_v23, %v505_v33 }
  0xff   : > { %794 = vtanh.f32 %v518_v34 }
 0x100   : > { %796 = vtanh.f32 %v516_v35 }
 0x107   : > { %v791_v36 = vpop.eup %790 }
 0x108   : > { %v793_v37 = vpop.eup %792 }
 0x109   : > { %v795_v38 = vpop.eup %794 }
 0x10a   : > { %v797_v39 = vpop.eup %796  ;;  %v731_v40 = vpack.c.bf16 %v795_v38, %v791_v36 }
 0x10b   : > { %v726_v41 = vpack.c.bf16 %v797_v39, %v793_v37 }
 0x10c   : > { %733 = vst [vmem:[%s355_s9 + $0x8] sm:$0xff] %v731_v40  }
 0x10d   : > { %727 = vst [vmem:[%s355_s9] sm:$0xff] %v726_v41  }
 0x10e PF: > { %s16_s23 = sadd.s32 1, %s820_s23   ;;  %s937_s21 = smov %s816_s22 }
 0x10f   : > { %p13_p5 = scmp.ge.s32.totalorder %s16_s23, 4   ;;  %s938_s22 = smov %s940_s24 }
 0x111   :  { %15 = sbr.rel (!%p13_p5) target bundleno = 2 (0x2), region = 89 }

// kernel: _lambda_.69
= control target key start
LH: loop header
LB: loop body
LE: loop exit
PB: predicated region body
PF: predicated region fallthrough
CT: control target
= control target key end

     0   :  { %s811_s1 = inlined_call_operand.vmem [shape: bf16[128,128], index: 1, kind: input, shape index: {}]   ;;  %s812_s0 = inlined_call_operand.vmem [shape: bf16[128,128], index: 0, kind: input, shape index: {}]   ;;  %s813_s2 = inlined_call_operand.vmem [shape: f32[1,128], index: 2, kind: input, shape index: {}]   ;;  %s814_s3 = inlined_call_operand.vmem [shape: f32[1,128], index: 3, kind: input, shape index: {}]   ;;  %s815_s4 = inlined_call_operand.vmem [shape: f32[1,128], index: 4, kind: input, shape index: {}]   ;;  %s816_s5 = inlined_call_operand.vmem [shape: bf16[128,128], index: 5, kind: output, shape index: {}]  }
   0x1   :  { %v648_v0 = vld [vmem:[%s811_s1] sm:$0xff]   ;;  %v649_v1 = vld [vmem:[%s811_s1 + $0x8] sm:$0xff]   ;;  %v650_v2 = vld [vmem:[%s811_s1 + $0x10] sm:$0xff]  }
   0x2   :  { %600 = vmatprep.subr.bf16.mxu0 %v648_v0  ;;  %632 = vmatprep.subr.bf16.mxu1 %v648_v0  ;;  %v651_v3 = vld [vmem:[%s811_s1 + $0x18] sm:$0xff]   ;;  %v656_v4 = vld [vmem:[%s812_s0] sm:$0xff]   ;;  %v653_v7 = vld [vmem:[%s811_s1 + $0x28] sm:$0xff]  }
   0x3   :  { %601 = vmatpush3.bf16.msra.mxu0 %v648_v0  ;;  %640 = vmatpush3.bf16.msra.mxu1 %v648_v0  ;;  %v657_v5 = vld [vmem:[%s812_s0 + $0x20] sm:$0xff]   ;;  %v654_v8 = vld [vmem:[%s811_s1 + $0x30] sm:$0xff]   ;;  %v655_v9 = vld [vmem:[%s811_s1 + $0x38] sm:$0xff]  }
   0x4   :  { %602 = vmatprep.subr.bf16.mxu0 %v649_v1  ;;  %633 = vmatprep.subr.bf16.mxu1 %v649_v1  ;;  %v652_v6 = vld [vmem:[%s811_s1 + $0x20] sm:$0xff]   ;;  %v658_v10 = vld [vmem:[%s812_s0 + $0x8] sm:$0xff]   ;;  %v660_v12 = vld [vmem:[%s812_s0 + $0x10] sm:$0xff]  }
   0x5   :  { %616 = vmatprep.mubr.bf16.mxu0 %v656_v4  ;;  %624 = vmatprep.mubr.bf16.mxu1 %v657_v5  ;;  %v659_v11 = vld [vmem:[%s812_s0 + $0x28] sm:$0xff]   ;;  %v661_v13 = vld [vmem:[%s812_s0 + $0x30] sm:$0xff]   ;;  %v662_v14 = vld [vmem:[%s812_s0 + $0x18] sm:$0xff]  }
   0x6   :  { %v663_v15 = vld [vmem:[%s812_s0 + $0x38] sm:$0xff]   ;;  %v745_v16 = vld [vmem:[%s813_s2] ss:$0 sm:$0xff] }
   0x7   :  { %603 = vmatpush3.bf16.msra.mxu0 %v649_v1  ;;  %641 = vmatpush3.bf16.msra.mxu1 %v649_v1  ;;  %v750_v18 = vld [vmem:[%s814_s3] ss:$0 sm:$0xff] }
   0x8   :  { %604 = vmatprep.subr.bf16.mxu0 %v650_v2  ;;  %634 = vmatprep.subr.bf16.mxu1 %v650_v2  ;;  %v504_v34 = vld [vmem:[%s815_s4] ss:$0 sm:$0xff] }
   0xb   :  { %605 = vmatpush3.bf16.msra.mxu0 %v650_v2  ;;  %642 = vmatpush3.bf16.msra.mxu1 %v650_v2 }
   0xc   :  { %606 = vmatprep.subr.bf16.mxu0 %v651_v3  ;;  %635 = vmatprep.subr.bf16.mxu1 %v651_v3 }
   0xf   :  { %607 = vmatpush3.bf16.msra.mxu0 %v651_v3  ;;  %643 = vmatpush3.bf16.msra.mxu1 %v651_v3 }
  0x10   :  { %608 = vmatprep.subr.bf16.mxu0 %v652_v6  ;;  %636 = vmatprep.subr.bf16.mxu1 %v652_v6 }
  0x13   :  { %609 = vmatpush3.bf16.msra.mxu0 %v652_v6  ;;  %644 = vmatpush3.bf16.msra.mxu1 %v652_v6 }
  0x14   :  { %610 = vmatprep.subr.bf16.mxu0 %v653_v7  ;;  %637 = vmatprep.subr.bf16.mxu1 %v653_v7 }
  0x17   :  { %611 = vmatpush3.bf16.msra.mxu0 %v653_v7  ;;  %645 = vmatpush3.bf16.msra.mxu1 %v653_v7 }
  0x18   :  { %612 = vmatprep.subr.bf16.mxu0 %v654_v8  ;;  %638 = vmatprep.subr.bf16.mxu1 %v654_v8 }
  0x1b   :  { %613 = vmatpush3.bf16.msra.mxu0 %v654_v8  ;;  %646 = vmatpush3.bf16.msra.mxu1 %v654_v8 }
  0x1c   :  { %614 = vmatprep.subr.bf16.mxu0 %v655_v9  ;;  %639 = vmatprep.subr.bf16.mxu1 %v655_v9 }
  0x1f   :  { %615 = vmatpush3.bf16.msra.mxu0 %v655_v9  ;;  %647 = vmatpush3.bf16.msra.mxu1 %v655_v9 }
  0x22   :  { %617 = vmatmul.mubr.bf16.vlgmr.msra.gmra.mrb[0].mxu0 %v658_v10  ;;  %625 = vmatmul.mubr.bf16.vlgmr.msra.gmra.mrb[0].mxu1 %v659_v11 }
  0x23   :  { %620 = vmatprep.mubr.bf16.mxu0 %v660_v12  ;;  %628 = vmatprep.mubr.bf16.mxu1 %v661_v13 }
  0x2a   :  { %621 = vmatmul.mubr.bf16.gmra.mrb[4].mxu0 %v662_v14  ;;  %629 = vmatmul.mubr.bf16.gmra.mrb[4].mxu1 %v663_v15 }
  0xf5   :  { %v618_v17 = vpop.f32.mrb[0].mxu0  ;;  %v626_v19 = vpop.f32.mrb[0].mxu1 }
  0xf6   :  { %v342_v20 = vadd.f32 %v618_v17, %v745_v16  ;;  %v350_v21 = vadd.f32 %v626_v19, %v745_v16  ;;  %v219_v22 = vpop.f32.mrb[1].mxu0  ;;  %v251_v23 = vpop.f32.mrb[1].mxu1 }
  0xf7   :  { %v340_v24 = vadd.f32 %v745_v16, %v219_v22  ;;  %v348_v25 = vadd.f32 %v745_v16, %v251_v23  ;;  %v619_v26 = vpop.f32.mrb[2].mxu0  ;;  %v627_v27 = vpop.f32.mrb[2].mxu1 }
  0xf8   :  { %v365_v28 = vmul.f32 %v750_v18, %v342_v20  ;;  %v373_v29 = vmul.f32 %v750_v18, %v350_v21  ;;  %v343_v30 = vadd.f32 %v619_v26, %v745_v16  ;;  %v351_v31 = vadd.f32 %v627_v27, %v745_v16  ;;  %v222_v32 = vpop.f32.mrb[3].mxu0  ;;  %v254_v33 = vpop.f32.mrb[3].mxu1 }
  0xf9   :  { %v363_v35 = vmul.f32 %v750_v18, %v340_v24  ;;  %v371_v36 = vmul.f32 %v750_v18, %v348_v25  ;;  %v341_v37 = vadd.f32 %v745_v16, %v222_v32  ;;  %v349_v38 = vadd.f32 %v745_v16, %v254_v33 }
  0xfa   :  { %v366_v39 = vmul.f32 %v750_v18, %v343_v30  ;;  %v374_v40 = vmul.f32 %v750_v18, %v351_v31  ;;  %v388_v43 = vadd.f32 %v504_v34, %v365_v28  ;;  %v396_v44 = vadd.f32 %v504_v34, %v373_v29 }
  0xfb   :  { %v364_v41 = vmul.f32 %v750_v18, %v341_v37  ;;  %v372_v42 = vmul.f32 %v750_v18, %v349_v38  ;;  %v386_v47 = vadd.f32 %v504_v34, %v363_v35  ;;  %v394_v48 = vadd.f32 %v504_v34, %v371_v36 }
  0xfc   :  { %v389_v45 = vadd.f32 %v504_v34, %v366_v39  ;;  %v397_v46 = vadd.f32 %v504_v34, %v374_v40 }
  0xfd   :  { %v387_v49 = vadd.f32 %v504_v34, %v364_v41  ;;  %v395_v50 = vadd.f32 %v504_v34, %v372_v42  ;;  %v622_v51 = vpop.f32.mrb[4].mxu0  ;;  %v630_v52 = vpop.f32.mrb[4].mxu1 }
  0xfe   :  { %v545_v53 = vpack.c.bf16 %v389_v45, %v388_v43  ;;  %v565_v54 = vpack.c.bf16 %v397_v46, %v396_v44  ;;  %v346_v55 = vadd.f32 %v622_v51, %v745_v16  ;;  %v354_v56 = vadd.f32 %v630_v52, %v745_v16  ;;  %v235_v57 = vpop.f32.mrb[5].mxu0  ;;  %v267_v58 = vpop.f32.mrb[5].mxu1 }
  0xff   :  { %v540_v59 = vpack.c.bf16 %v387_v49, %v386_v47  ;;  %v560_v60 = vpack.c.bf16 %v395_v50, %v394_v48  ;;  %v344_v61 = vadd.f32 %v745_v16, %v235_v57  ;;  %v352_v62 = vadd.f32 %v745_v16, %v267_v58  ;;  %v623_v63 = vpop.f32.mrb[6].mxu0  ;;  %v631_v0 = vpop.f32.mrb[6].mxu1 }
 0x100   :  { %577 = vst [vmem:[%s816_s5 + $0x8] sm:$0xff] %v545_v53   ;;  %581 = vst [vmem:[%s816_s5 + $0x28] sm:$0xff] %v565_v54   ;;  %v369_v1 = vmul.f32 %v750_v18, %v346_v55  ;;  %v377_v2 = vmul.f32 %v750_v18, %v354_v56  ;;  %v347_v3 = vadd.f32 %v623_v63, %v745_v16  ;;  %v238_v5 = vpop.f32.mrb[7].mxu0  ;;  %v270_v6 = vpop.f32.mrb[7].mxu1 }
 0x101   :  { %v355_v4 = vadd.f32 %v631_v0, %v745_v16  ;;  %541 = vst [vmem:[%s816_s5] sm:$0xff] %v540_v59   ;;  %580 = vst [vmem:[%s816_s5 + $0x20] sm:$0xff] %v560_v60   ;;  %v367_v7 = vmul.f32 %v750_v18, %v344_v61  ;;  %v375_v8 = vmul.f32 %v750_v18, %v352_v62 }
 0x102   :  { %v345_v9 = vadd.f32 %v745_v16, %v238_v5  ;;  %v353_v10 = vadd.f32 %v745_v16, %v270_v6  ;;  %v370_v11 = vmul.f32 %v750_v18, %v347_v3  ;;  %v392_v15 = vadd.f32 %v504_v34, %v369_v1 }
 0x103   :  { %v378_v12 = vmul.f32 %v750_v18, %v355_v4  ;;  %v400_v17 = vadd.f32 %v504_v34, %v377_v2  ;;  %v390_v21 = vadd.f32 %v504_v34, %v367_v7  ;;  %v398_v22 = vadd.f32 %v504_v34, %v375_v8 }
 0x104   :  { %v368_v13 = vmul.f32 %v750_v18, %v345_v9  ;;  %v376_v14 = vmul.f32 %v750_v18, %v353_v10  ;;  %v393_v19 = vadd.f32 %v504_v34, %v370_v11 }
 0x105   :  { %v401_v20 = vadd.f32 %v504_v34, %v378_v12 }
 0x106   :  { %v391_v23 = vadd.f32 %v504_v34, %v368_v13  ;;  %v399_v24 = vadd.f32 %v504_v34, %v376_v14  ;;  %v555_v25 = vpack.c.bf16 %v393_v19, %v392_v15 }
 0x107   :  { %v575_v26 = vpack.c.bf16 %v401_v20, %v400_v17 }
 0x108   :  { %v550_v27 = vpack.c.bf16 %v391_v23, %v390_v21  ;;  %v570_v16 = vpack.c.bf16 %v399_v24, %v398_v22  ;;  %579 = vst [vmem:[%s816_s5 + $0x18] sm:$0xff] %v555_v25  }
 0x109   :  { %583 = vst [vmem:[%s816_s5 + $0x38] sm:$0xff] %v575_v26  }
 0x10a   :  { %578 = vst [vmem:[%s816_s5 + $0x10] sm:$0xff] %v550_v27   ;;  %582 = vst [vmem:[%s816_s5 + $0x30] sm:$0xff] %v570_v16  }

// kernel: _lambda_.71
= control target key start
LH: loop header
LB: loop body
LE: loop exit
PB: predicated region body
PF: predicated region fallthrough
CT: control target
= control target key end

     0   :  { %s869_s1 = inlined_call_operand.vmem [shape: f32[256,128], index: 1, kind: input, shape index: {}]   ;;  %s870_s0 = inlined_call_operand.vmem [shape: f32[128,256], index: 0, kind: input, shape index: {}]   ;;  %s871_s2 = inlined_call_operand.vmem [shape: f32[1,128], index: 2, kind: input, shape index: {}]   ;;  %s872_s3 = inlined_call_operand.vmem [shape: f32[1,128], index: 3, kind: input, shape index: {}]   ;;  %s873_s4 = inlined_call_operand.vmem [shape: f32[1,128], index: 4, kind: input, shape index: {}]   ;;  %s874_s5 = inlined_call_operand.vmem [shape: f32[128,128], index: 5, kind: output, shape index: {}]  }
   0x1   :  { %v104_v0 = vld [vmem:[%s869_s1 + $0x80] sm:$0xff]  ;;  %v105_v1 = vld [vmem:[%s869_s1 + $0x88] sm:$0xff]  ;;  %v106_v5 = vld [vmem:[%s869_s1 + $0x90] sm:$0xff] }
   0x2   :  { %v88_v2 = vld [vmem:[%s869_s1] sm:$0xff]  ;;  %v488_v3 = vpack.c.bf16 %v105_v1, %v104_v0  ;;  %v89_v4 = vld [vmem:[%s869_s1 + $0x8] sm:$0xff]  ;;  %v107_v6 = vld [vmem:[%s869_s1 + $0x98] sm:$0xff] }
   0x3   :  { %v490_v7 = vpack.c.bf16 %v89_v4, %v88_v2  ;;  %v492_v8 = vpack.c.bf16 %v107_v6, %v106_v5  ;;  %v90_v9 = vld [vmem:[%s869_s1 + $0x10] sm:$0xff]  ;;  %v91_v10 = vld [vmem:[%s869_s1 + $0x18] sm:$0xff]  ;;  %v108_v11 = vld [vmem:[%s869_s1 + $0xa0] sm:$0xff] }
   0x4   :  { %489 = vmatprep.subr.bf16.mxu0 %v488_v3  ;;  %520 = vmatprep.subr.bf16.mxu1 %v488_v3  ;;  %v109_v12 = vld [vmem:[%s869_s1 + $0xa8] sm:$0xff]  ;;  %v494_v13 = vpack.c.bf16 %v91_v10, %v90_v9  ;;  %v92_v15 = vld [vmem:[%s869_s1 + $0x20] sm:$0xff]  ;;  %v110_v17 = vld [vmem:[%s869_s1 + $0xb0] sm:$0xff] }
   0x5   :  { %491 = vmatpush3.bf16.msra.mxu0 %v490_v7  ;;  %528 = vmatpush3.bf16.msra.mxu1 %v490_v7  ;;  %v496_v14 = vpack.c.bf16 %v109_v12, %v108_v11  ;;  %v93_v16 = vld [vmem:[%s869_s1 + $0x28] sm:$0xff]  ;;  %v111_v18 = vld [vmem:[%s869_s1 + $0xb8] sm:$0xff]  ;;  %v94_v21 = vld [vmem:[%s869_s1 + $0x30] sm:$0xff] }
   0x6   :  { %493 = vmatprep.subr.bf16.mxu0 %v492_v8  ;;  %521 = vmatprep.subr.bf16.mxu1 %v492_v8  ;;  %v498_v19 = vpack.c.bf16 %v93_v16, %v92_v15  ;;  %v500_v20 = vpack.c.bf16 %v111_v18, %v110_v17  ;;  %v95_v22 = vld [vmem:[%s869_s1 + $0x38] sm:$0xff]  ;;  %v112_v23 = vld [vmem:[%s869_s1 + $0xc0] sm:$0xff]  ;;  %v113_v24 = vld [vmem:[%s869_s1 + $0xc8] sm:$0xff] }
   0x7   :  { %v57_v25 = vld [vmem:[%s870_s0 + $0x8] sm:$0xff]  ;;  %v502_v27 = vpack.c.bf16 %v95_v22, %v94_v21  ;;  %v504_v28 = vpack.c.bf16 %v113_v24, %v112_v23  ;;  %v96_v29 = vld [vmem:[%s869_s1 + $0x40] sm:$0xff]  ;;  %v114_v31 = vld [vmem:[%s869_s1 + $0xd0] sm:$0xff] }
   0x8   :  { %184 = vmatprep.mubr.f32.mxu0 %v57_v25  ;;  %v73_v26 = vld [vmem:[%s870_s0 + $0x88] sm:$0xff]  ;;  %v115_v32 = vld [vmem:[%s869_s1 + $0xd8] sm:$0xff]  ;;  %v98_v35 = vld [vmem:[%s869_s1 + $0x50] sm:$0xff] }
   0x9   :  { %495 = vmatpush3.bf16.msra.mxu0 %v494_v13  ;;  %529 = vmatpush3.bf16.msra.mxu1 %v494_v13  ;;  %v97_v30 = vld [vmem:[%s869_s1 + $0x48] sm:$0xff]  ;;  %v508_v34 = vpack.c.bf16 %v115_v32, %v114_v31  ;;  %v99_v36 = vld [vmem:[%s869_s1 + $0x58] sm:$0xff]  ;;  %v116_v37 = vld [vmem:[%s869_s1 + $0xe0] sm:$0xff] }
   0xa   :  { %497 = vmatprep.subr.bf16.mxu0 %v496_v14  ;;  %522 = vmatprep.subr.bf16.mxu1 %v496_v14  ;;  %v506_v33 = vpack.c.bf16 %v97_v30, %v96_v29  ;;  %v117_v38 = vld [vmem:[%s869_s1 + $0xe8] sm:$0xff]  ;;  %v510_v39 = vpack.c.bf16 %v99_v36, %v98_v35  ;;  %v100_v41 = vld [vmem:[%s869_s1 + $0x60] sm:$0xff]  ;;  %v118_v43 = vld [vmem:[%s869_s1 + $0xf0] sm:$0xff] }
   0xb   :  { %224 = vmatprep.mubr.f32.mxu1 %v73_v26  ;;  %v512_v40 = vpack.c.bf16 %v117_v38, %v116_v37  ;;  %v101_v42 = vld [vmem:[%s869_s1 + $0x68] sm:$0xff]  ;;  %v119_v44 = vld [vmem:[%s869_s1 + $0xf8] sm:$0xff]  ;;  %v102_v47 = vld [vmem:[%s869_s1 + $0x70] sm:$0xff] }
   0xc   :  { %v514_v45 = vpack.c.bf16 %v101_v42, %v100_v41  ;;  %v516_v46 = vpack.c.bf16 %v119_v44, %v118_v43  ;;  %v103_v48 = vld [vmem:[%s869_s1 + $0x78] sm:$0xff]  ;;  %v56_v50 = vld [vmem:[%s870_s0] sm:$0xff]  ;;  %v58_v54 = vld [vmem:[%s870_s0 + $0x10] sm:$0xff] }
   0xd   :  { %499 = vmatpush3.bf16.msra.mxu0 %v498_v19  ;;  %530 = vmatpush3.bf16.msra.mxu1 %v498_v19  ;;  %v518_v49 = vpack.c.bf16 %v103_v48, %v102_v47  ;;  %v72_v51 = vld [vmem:[%s870_s0 + $0x80] sm:$0xff]  ;;  %v59_v52 = vld [vmem:[%s870_s0 + $0x18] sm:$0xff]  ;;  %v74_v55 = vld [vmem:[%s870_s0 + $0x90] sm:$0xff] }
   0xe   :  { %501 = vmatprep.subr.bf16.mxu0 %v500_v20  ;;  %523 = vmatprep.subr.bf16.mxu1 %v500_v20  ;;  %v75_v53 = vld [vmem:[%s870_s0 + $0x98] sm:$0xff]  ;;  %v61_v56 = vld [vmem:[%s870_s0 + $0x28] sm:$0xff]  ;;  %v60_v58 = vld [vmem:[%s870_s0 + $0x20] sm:$0xff] }
   0xf   :  { %v77_v57 = vld [vmem:[%s870_s0 + $0xa8] sm:$0xff]  ;;  %v76_v59 = vld [vmem:[%s870_s0 + $0xa0] sm:$0xff]  ;;  %v63_v60 = vld [vmem:[%s870_s0 + $0x38] sm:$0xff] }
  0x10   :  { %v79_v61 = vld [vmem:[%s870_s0 + $0xb8] sm:$0xff]  ;;  %v62_v62 = vld [vmem:[%s870_s0 + $0x30] sm:$0xff]  ;;  %v65_v0 = vld [vmem:[%s870_s0 + $0x48] sm:$0xff] }
  0x11   :  { %503 = vmatpush3.bf16.msra.mxu0 %v502_v27  ;;  %531 = vmatpush3.bf16.msra.mxu1 %v502_v27  ;;  %v78_v63 = vld [vmem:[%s870_s0 + $0xb0] sm:$0xff]  ;;  %v81_v1 = vld [vmem:[%s870_s0 + $0xc8] sm:$0xff]  ;;  %v64_v2 = vld [vmem:[%s870_s0 + $0x40] sm:$0xff] }
  0x12   :  { %505 = vmatprep.subr.bf16.mxu0 %v504_v28  ;;  %524 = vmatprep.subr.bf16.mxu1 %v504_v28  ;;  %v80_v3 = vld [vmem:[%s870_s0 + $0xc0] sm:$0xff]  ;;  %v67_v4 = vld [vmem:[%s870_s0 + $0x58] sm:$0xff]  ;;  %v66_v6 = vld [vmem:[%s870_s0 + $0x50] sm:$0xff] }
  0x13   :  { %v83_v5 = vld [vmem:[%s870_s0 + $0xd8] sm:$0xff]  ;;  %v82_v7 = vld [vmem:[%s870_s0 + $0xd0] sm:$0xff]  ;;  %v69_v8 = vld [vmem:[%s870_s0 + $0x68] sm:$0xff] }
  0x14   :  { %v85_v9 = vld [vmem:[%s870_s0 + $0xe8] sm:$0xff]  ;;  %v68_v10 = vld [vmem:[%s870_s0 + $0x60] sm:$0xff]  ;;  %v71_v12 = vld [vmem:[%s870_s0 + $0x78] sm:$0xff] }
  0x15   :  { %507 = vmatpush3.bf16.msra.mxu0 %v506_v33  ;;  %532 = vmatpush3.bf16.msra.mxu1 %v506_v33  ;;  %v84_v11 = vld [vmem:[%s870_s0 + $0xe0] sm:$0xff]  ;;  %v87_v13 = vld [vmem:[%s870_s0 + $0xf8] sm:$0xff]  ;;  %v70_v14 = vld [vmem:[%s870_s0 + $0x70] sm:$0xff] }
  0x16   :  { %509 = vmatprep.subr.bf16.mxu0 %v508_v34  ;;  %525 = vmatprep.subr.bf16.mxu1 %v508_v34  ;;  %v86_v15 = vld [vmem:[%s870_s0 + $0xf0] sm:$0xff]  ;;  %v761_v19 = vld [vmem:[%s871_s2] ss:$0 sm:$0xff] }
  0x17   :  { %v766_v23 = vld [vmem:[%s872_s3] ss:$0 sm:$0xff] }
  0x18   :  { %v773_v28 = vld [vmem:[%s873_s4] ss:$0 sm:$0xff] }
  0x19   :  { %511 = vmatpush3.bf16.msra.mxu0 %v510_v39  ;;  %533 = vmatpush3.bf16.msra.mxu1 %v510_v39 }
  0x1a   :  { %513 = vmatprep.subr.bf16.mxu0 %v512_v40  ;;  %526 = vmatprep.subr.bf16.mxu1 %v512_v40 }
  0x1d   :  { %515 = vmatpush3.bf16.msra.mxu0 %v514_v45  ;;  %534 = vmatpush3.bf16.msra.mxu1 %v514_v45 }
  0x1e   :  { %517 = vmatprep.subr.bf16.mxu0 %v516_v46  ;;  %527 = vmatprep.subr.bf16.mxu1 %v516_v46 }
  0x21   :  { %519 = vmatpush3.bf16.msra.mxu0 %v518_v49  ;;  %535 = vmatpush3.bf16.msra.mxu1 %v518_v49 }
  0x24   :  { %185 = vmatmul.mubr.f32.vlgmr.msra.gmra.mrb[0].mxu0 %v56_v50  ;;  %225 = vmatmul.mubr.f32.vlgmr.msra.gmra.mrb[0].mxu1 %v72_v51 }
  0x25   :  { %189 = vmatprep.mubr.f32.mxu0 %v59_v52  ;;  %229 = vmatprep.mubr.f32.mxu1 %v75_v53 }
  0x28   :  { %190 = vmatmul.mubr.f32.gmra.mrb[2].mxu0 %v58_v54  ;;  %230 = vmatmul.mubr.f32.gmra.mrb[2].mxu1 %v74_v55 }
  0x29   :  { %194 = vmatprep.mubr.f32.mxu0 %v61_v56  ;;  %234 = vmatprep.mubr.f32.mxu1 %v77_v57 }
  0x2c   :  { %195 = vmatmul.mubr.f32.gmra.mrb[4].mxu0 %v60_v58  ;;  %235 = vmatmul.mubr.f32.gmra.mrb[4].mxu1 %v76_v59 }
  0x2d   :  { %199 = vmatprep.mubr.f32.mxu0 %v63_v60  ;;  %239 = vmatprep.mubr.f32.mxu1 %v79_v61 }
  0x30   :  { %200 = vmatmul.mubr.f32.gmra.mrb[6].mxu0 %v62_v62  ;;  %240 = vmatmul.mubr.f32.gmra.mrb[6].mxu1 %v78_v63 }
  0x31   :  { %204 = vmatprep.mubr.f32.mxu0 %v65_v0  ;;  %244 = vmatprep.mubr.f32.mxu1 %v81_v1 }
  0x34   :  { %205 = vmatmul.mubr.f32.gmra.mrb[8].mxu0 %v64_v2  ;;  %245 = vmatmul.mubr.f32.gmra.mrb[8].mxu1 %v80_v3 }
  0x35   :  { %209 = vmatprep.mubr.f32.mxu0 %v67_v4  ;;  %249 = vmatprep.mubr.f32.mxu1 %v83_v5 }
  0x38   :  { %210 = vmatmul.mubr.f32.gmra.mrb[10].mxu0 %v66_v6  ;;  %250 = vmatmul.mubr.f32.gmra.mrb[10].mxu1 %v82_v7 }
  0x39   :  { %214 = vmatprep.mubr.f32.mxu0 %v69_v8  ;;  %254 = vmatprep.mubr.f32.mxu1 %v85_v9 }
  0x3c   :  { %215 = vmatmul.mubr.f32.gmra.mrb[12].mxu0 %v68_v10  ;;  %255 = vmatmul.mubr.f32.gmra.mrb[12].mxu1 %v84_v11 }
  0x3d   :  { %219 = vmatprep.mubr.f32.mxu0 %v71_v12  ;;  %259 = vmatprep.mubr.f32.mxu1 %v87_v13 }
  0x40   :  { %220 = vmatmul.mubr.f32.gmra.mrb[14].mxu0 %v70_v14  ;;  %260 = vmatmul.mubr.f32.gmra.mrb[14].mxu1 %v86_v15 }
  0xf7   :  { %v440_v16 = vpop.f32.mrb[0].mxu0  ;;  %v464_v17 = vpop.f32.mrb[0].mxu1 }
  0xf8   :  { %v441_v18 = vpop.f32.mrb[1].mxu0  ;;  %v465_v20 = vpop.f32.mrb[1].mxu1 }
  0xf9   :  { %v442_v21 = vadd.f32 %v441_v18, %v440_v16  ;;  %v466_v22 = vadd.f32 %v465_v20, %v464_v17 }
  0xfb   :  { %v323_v24 = vadd.f32 %v442_v21, %v761_v19  ;;  %v331_v25 = vadd.f32 %v466_v22, %v761_v19  ;;  %v443_v26 = vpop.f32.mrb[2].mxu0  ;;  %v467_v27 = vpop.f32.mrb[2].mxu1 }
  0xfc   :  { %v444_v29 = vpop.f32.mrb[3].mxu0  ;;  %v468_v30 = vpop.f32.mrb[3].mxu1 }
  0xfd   :  { %v346_v31 = vmul.f32 %v766_v23, %v323_v24  ;;  %v354_v32 = vmul.f32 %v766_v23, %v331_v25  ;;  %v445_v33 = vadd.f32 %v444_v29, %v443_v26  ;;  %v469_v34 = vadd.f32 %v468_v30, %v467_v27 }
  0xff   :  { %v369_v35 = vadd.f32 %v773_v28, %v346_v31  ;;  %v377_v36 = vadd.f32 %v773_v28, %v354_v32  ;;  %v324_v37 = vadd.f32 %v445_v33, %v761_v19  ;;  %v332_v38 = vadd.f32 %v469_v34, %v761_v19  ;;  %v446_v39 = vpop.f32.mrb[4].mxu0  ;;  %v470_v40 = vpop.f32.mrb[4].mxu1 }
 0x100   :  { %v447_v41 = vpop.f32.mrb[5].mxu0  ;;  %v471_v42 = vpop.f32.mrb[5].mxu1 }
 0x101   :  { %385 = vst [vmem:[%s874_s5] sm:$0xff] %v369_v35  ;;  %393 = vst [vmem:[%s874_s5 + $0x40] sm:$0xff] %v377_v36  ;;  %v347_v43 = vmul.f32 %v766_v23, %v324_v37  ;;  %v355_v44 = vmul.f32 %v766_v23, %v332_v38  ;;  %v448_v45 = vadd.f32 %v447_v41, %v446_v39 }
 0x102   :  { %v472_v46 = vadd.f32 %v471_v42, %v470_v40 }
 0x103   :  { %v370_v47 = vadd.f32 %v773_v28, %v347_v43  ;;  %v378_v48 = vadd.f32 %v773_v28, %v355_v44  ;;  %v325_v49 = vadd.f32 %v448_v45, %v761_v19  ;;  %v449_v51 = vpop.f32.mrb[6].mxu0  ;;  %v473_v52 = vpop.f32.mrb[6].mxu1 }
 0x104   :  { %v333_v50 = vadd.f32 %v472_v46, %v761_v19  ;;  %v450_v53 = vpop.f32.mrb[7].mxu0  ;;  %v474_v54 = vpop.f32.mrb[7].mxu1 }
 0x105   :  { %386 = vst [vmem:[%s874_s5 + $0x8] sm:$0xff] %v370_v47  ;;  %394 = vst [vmem:[%s874_s5 + $0x48] sm:$0xff] %v378_v48  ;;  %v348_v55 = vmul.f32 %v766_v23, %v325_v49  ;;  %v451_v57 = vadd.f32 %v450_v53, %v449_v51  ;;  %v475_v58 = vadd.f32 %v474_v54, %v473_v52 }
 0x106   :  { %v356_v56 = vmul.f32 %v766_v23, %v333_v50 }
 0x107   :  { %v371_v59 = vadd.f32 %v773_v28, %v348_v55  ;;  %v326_v61 = vadd.f32 %v451_v57, %v761_v19  ;;  %v334_v62 = vadd.f32 %v475_v58, %v761_v19  ;;  %v452_v63 = vpop.f32.mrb[8].mxu0  ;;  %v476_v0 = vpop.f32.mrb[8].mxu1 }
 0x108   :  { %v379_v60 = vadd.f32 %v773_v28, %v356_v56  ;;  %v453_v1 = vpop.f32.mrb[9].mxu0  ;;  %v477_v2 = vpop.f32.mrb[9].mxu1 }
 0x109   :  { %387 = vst [vmem:[%s874_s5 + $0x10] sm:$0xff] %v371_v59  ;;  %v349_v3 = vmul.f32 %v766_v23, %v326_v61  ;;  %v357_v4 = vmul.f32 %v766_v23, %v334_v62  ;;  %v454_v5 = vadd.f32 %v453_v1, %v452_v63  ;;  %v478_v6 = vadd.f32 %v477_v2, %v476_v0 }
 0x10a   :  { %395 = vst [vmem:[%s874_s5 + $0x50] sm:$0xff] %v379_v60 }
 0x10b   :  { %v372_v7 = vadd.f32 %v773_v28, %v349_v3  ;;  %v380_v8 = vadd.f32 %v773_v28, %v357_v4  ;;  %v327_v9 = vadd.f32 %v454_v5, %v761_v19  ;;  %v335_v10 = vadd.f32 %v478_v6, %v761_v19  ;;  %v455_v11 = vpop.f32.mrb[10].mxu0  ;;  %v479_v12 = vpop.f32.mrb[10].mxu1 }
 0x10c   :  { %v456_v13 = vpop.f32.mrb[11].mxu0  ;;  %v480_v14 = vpop.f32.mrb[11].mxu1 }
 0x10d   :  { %388 = vst [vmem:[%s874_s5 + $0x18] sm:$0xff] %v372_v7  ;;  %396 = vst [vmem:[%s874_s5 + $0x58] sm:$0xff] %v380_v8  ;;  %v350_v15 = vmul.f32 %v766_v23, %v327_v9  ;;  %v358_v16 = vmul.f32 %v766_v23, %v335_v10  ;;  %v457_v17 = vadd.f32 %v456_v13, %v455_v11 }
 0x10e   :  { %v481_v18 = vadd.f32 %v480_v14, %v479_v12 }
 0x10f   :  { %v373_v20 = vadd.f32 %v773_v28, %v350_v15  ;;  %v381_v21 = vadd.f32 %v773_v28, %v358_v16  ;;  %v328_v22 = vadd.f32 %v457_v17, %v761_v19  ;;  %v458_v25 = vpop.f32.mrb[12].mxu0  ;;  %v482_v26 = vpop.f32.mrb[12].mxu1 }
 0x110   :  { %v336_v24 = vadd.f32 %v481_v18, %v761_v19  ;;  %v459_v27 = vpop.f32.mrb[13].mxu0  ;;  %v483_v29 = vpop.f32.mrb[13].mxu1 }
 0x111   :  { %389 = vst [vmem:[%s874_s5 + $0x20] sm:$0xff] %v373_v20  ;;  %397 = vst [vmem:[%s874_s5 + $0x60] sm:$0xff] %v381_v21  ;;  %v351_v30 = vmul.f32 %v766_v23, %v328_v22  ;;  %v460_v32 = vadd.f32 %v459_v27, %v458_v25  ;;  %v484_v33 = vadd.f32 %v483_v29, %v482_v26 }
 0x112   :  { %v359_v31 = vmul.f32 %v766_v23, %v336_v24 }
 0x113   :  { %v374_v34 = vadd.f32 %v773_v28, %v351_v30  ;;  %v329_v36 = vadd.f32 %v460_v32, %v761_v19  ;;  %v337_v37 = vadd.f32 %v484_v33, %v761_v19  ;;  %v461_v38 = vpop.f32.mrb[14].mxu0  ;;  %v485_v39 = vpop.f32.mrb[14].mxu1 }
 0x114   :  { %v382_v35 = vadd.f32 %v773_v28, %v359_v31  ;;  %v462_v40 = vpop.f32.mrb[15].mxu0  ;;  %v486_v41 = vpop.f32.mrb[15].mxu1 }
 0x115   :  { %390 = vst [vmem:[%s874_s5 + $0x28] sm:$0xff] %v374_v34  ;;  %v352_v42 = vmul.f32 %v766_v23, %v329_v36  ;;  %v360_v43 = vmul.f32 %v766_v23, %v337_v37  ;;  %v463_v44 = vadd.f32 %v462_v40, %v461_v38  ;;  %v487_v45 = vadd.f32 %v486_v41, %v485_v39 }
 0x116   :  { %398 = vst [vmem:[%s874_s5 + $0x68] sm:$0xff] %v382_v35 }
 0x117   :  { %v375_v46 = vadd.f32 %v773_v28, %v352_v42  ;;  %v383_v47 = vadd.f32 %v773_v28, %v360_v43  ;;  %v330_v48 = vadd.f32 %v463_v44, %v761_v19  ;;  %v338_v49 = vadd.f32 %v487_v45, %v761_v19 }
 0x119   :  { %391 = vst [vmem:[%s874_s5 + $0x30] sm:$0xff] %v375_v46  ;;  %399 = vst [vmem:[%s874_s5 + $0x70] sm:$0xff] %v383_v47  ;;  %v353_v50 = vmul.f32 %v766_v23, %v330_v48  ;;  %v361_v51 = vmul.f32 %v766_v23, %v338_v49 }
 0x11b   :  { %v376_v52 = vadd.f32 %v773_v28, %v353_v50  ;;  %v384_v53 = vadd.f32 %v773_v28, %v361_v51 }
 0x11d   :  { %392 = vst [vmem:[%s874_s5 + $0x38] sm:$0xff] %v376_v52  ;;  %400 = vst [vmem:[%s874_s5 + $0x78] sm:$0xff] %v384_v53 }

</bundles_post_ra>
